<compile_context>
chip_gen: v5e
topology: v5e:2x2
jax: 0.10.0
libtpu: 0.0.40
codegen_flags: <defaults>
</compile_context>

<pallas_src>
import jax
import jax.numpy as jnp
import numpy as np
from jax import lax
from jax.experimental import pallas as pl
from jax.experimental.pallas import tpu as pltpu


# ----------------------------------------------------------------------------- helpers
def _round_up(x, m):
    return ((x + m - 1) // m) * m


def _pad_gate_cols(w, h, hp):
    """Zero-pad each of the three (..., h) gate blocks of a (..., 3h) array to (..., hp)."""
    if hp == h:
        return w
    pad = [(0, 0)] * (w.ndim - 1) + [(0, hp - h)]
    return jnp.concatenate(
        [jnp.pad(w[..., i * h:(i + 1) * h], pad) for i in range(3)], axis=-1)


# ----------------------------------------------------------------------------- forward
def _build_forward(single_buffer_consts=True):
    # Single-buffer the constant operands (their index_map is constant -> never re-DMA'd).
    const_kw = {"pipeline_mode": pl.Buffered(1)} if single_buffer_consts else {}

    @jax.jit
    def gru_prepare_forward(x_bti, params):
        """x_bti: (B, T, input_size), batch_first like the PyTorch module.
        Returns (output (B, T, O), hidden (num_layers=1, B, H))."""
        B, T, _I = x_bti.shape
        H = params["w_h_cat"].shape[0]
        O = params["w_fc_T"].shape[1]
        Hp = _round_up(H, 128)   # lane-aligned gate splits
        Op = _round_up(O, 128)   # lane-dense FC writeback

        # --- pad params; zero padding is exact (padded hidden lanes stay identically 0) --
        w_i  = _pad_gate_cols(params["w_i_cat"], H, Hp)                                 # (I, 3Hp)
        b_i  = _pad_gate_cols(params["b_i_cat"], H, Hp)                                 # (1, 3Hp)
        w_h  = _pad_gate_cols(jnp.pad(params["w_h_cat"], ((0, Hp - H), (0, 0))), H, Hp) # (Hp, 3Hp)
        b_hn = jnp.pad(params["b_hn"], ((0, 0), (0, Hp - H)))                           # (1, Hp)
        w_fc = jnp.pad(params["w_fc_T"], ((0, Hp - H), (0, Op - O)))                    # (Hp, Op)
        b_fc = jnp.pad(params["b_fc"], ((0, 0), (0, Op - O)))                           # (1, Op)

        # --- phase 1 (parallel, hoisted): input projection, time-major ------------------
        gates = jnp.einsum("bti,ig->tbg", x_bti, w_i) + b_i                             # (T, B, 3Hp)

        # --- derive the time-chunk size from an explicit VMEM budget --------------------
        itemsize = 4
        per_t = 2 * B * (3 * Hp + Op) * itemsize                 # double-buffered gates-in + out
        fixed = (Hp * 3 * Hp + Hp + Hp * Op + Op) * itemsize     # single-buffered constants
        fixed += 3 * B * Hp * itemsize                           # carry scratch + hid out buffers
        budget = 40 * 1024 * 1024                                # headroom under v7x's 64 MiB VMEM
        Tc = int(max(1, min(T, (budget - fixed) // per_t, 256)))
        T_pad = ((T + Tc - 1) // Tc) * Tc
        if T_pad != T:
            gates = jnp.pad(gates, ((0, T_pad - T), (0, 0), (0, 0)))

        # --- phase 2 (serial, Pallas): GRU recurrence + fused FC head -------------------
        def gru_kernel(gates_ref, w_h_ref, b_hn_ref, w_fc_ref, b_fc_ref,
                       out_ref, hid_ref, h_carry):
            c = pl.program_id(0)

            @pl.when(c == 0)
            def _():
                # nn.GRU uses a zero initial hidden state when h0 is not supplied.
                h_carry[...] = jnp.zeros_like(h_carry)

            # Hoisted out of the (unrolled) loop: weight loads + bias broadcasts
            # (JAX does not CSE broadcast_in_dim -> do them exactly once per chunk).
            w_hh = w_h_ref[...]                                   # (Hp, 3Hp)
            w_o  = w_fc_ref[...]                                  # (Hp, Op)
            b_n  = jnp.broadcast_to(b_hn_ref[...], (B, Hp))       # (B, Hp)
            b_o  = jnp.broadcast_to(b_fc_ref[...], (B, Op))       # (B, Op)
            base = c * Tc

            def step(t, h_prev):
                g = gates_ref[t]                                  # (B, 3Hp), 128-aligned slices
                hh = jnp.dot(h_prev, w_hh, preferred_element_type=jnp.float32)  # (B, 3Hp)
                r = jax.nn.sigmoid(g[:, :Hp] + hh[:, :Hp])
                z = jax.nn.sigmoid(g[:, Hp:2 * Hp] + hh[:, Hp:2 * Hp])
                n = jnp.tanh(g[:, 2 * Hp:] + r * (hh[:, 2 * Hp:] + b_n))
                h_new = (1.0 - z) * n + z * h_prev
                if T_pad != T:
                    # Freeze the carry on padded tail timesteps (keeps h_n exact).
                    h_new = jnp.where(base + t < T, h_new, h_prev)
                # Fused FC head: lane-dense (B, Op) writeback; no (T,B,H) HBM intermediate.
                out_ref[t] = (jnp.dot(h_new, w_o, preferred_element_type=jnp.float32)
                              + b_o).astype(out_ref.dtype)
                return h_new

            # Partial unroll: LLO scheduling visibility without blowing the vreg budget.
            h_last = lax.fori_loop(0, Tc, step, h_carry[...], unroll=min(8, Tc))
            h_carry[...] = h_last
            hid_ref[...] = h_last

        const = lambda c: (0, 0)
        out_tbo, hid = pl.pallas_call(
            gru_kernel,
            out_shape=(jax.ShapeDtypeStruct((T_pad, B, Op), jnp.float32),
                       jax.ShapeDtypeStruct((B, Hp), jnp.float32)),
            grid_spec=pltpu.PrefetchScalarGridSpec(
                num_scalar_prefetch=0,
                grid=(T_pad // Tc,),
                in_specs=[
                    pl.BlockSpec((Tc, B, 3 * Hp), lambda c: (c, 0, 0)),
                    pl.BlockSpec((Hp, 3 * Hp), const, **const_kw),
                    pl.BlockSpec((1, Hp), const, **const_kw),
                    pl.BlockSpec((Hp, Op), const, **const_kw),
                    pl.BlockSpec((1, Op), const, **const_kw),
                ],
                out_specs=[
                    pl.BlockSpec((Tc, B, Op), lambda c: (c, 0, 0)),
                    pl.BlockSpec((B, Hp), const),
                ],
                scratch_shapes=[pltpu.VMEM((B, Hp), jnp.float32)],   # recurrent carry
            ),
            compiler_params=pltpu.CompilerParams(
                dimension_semantics=("arbitrary",),   # time recurrence is inherently serial
                vmem_limit_bytes=64 * 1024 * 1024,
            ),
        )(gates, w_h, b_hn, w_fc, b_fc)

        output = jnp.transpose(out_tbo[:T, :, :O], (1, 0, 2))     # (B, T, O)
        hidden = hid[:, :H][None]                                  # (1, B, H)
        return output, hidden

    return gru_prepare_forward


# ----------------------------------------------------------------------------- params
def init_params(key, input_size, hidden_size, output_size):
    """Deterministic init matching nn.GRU(bias=True) + nn.Linear shapes (gate order r,z,n)."""
    I, H, O = input_size, hidden_size, output_size
    ks = jax.random.split(key, 6)
    s = 1.0 / np.sqrt(H)
    u = lambda k, shape: jax.random.uniform(k, shape, jnp.float32, -s, s)

    w_ih = u(ks[0], (3 * H, I))   # weight_ih_l0
    w_hh = u(ks[1], (3 * H, H))   # weight_hh_l0
    b_ih = u(ks[2], (3 * H,))     # bias_ih_l0
    b_hh = u(ks[3], (3 * H,))     # bias_hh_l0
    w_fc = u(ks[4], (O, H))       # fc.weight
    b_fc = u(ks[5], (O,))         # fc.bias

    w_ir, w_iz, w_in = w_ih[:H], w_ih[H:2 * H], w_ih[2 * H:]
    w_hr, w_hz, w_hn = w_hh[:H], w_hh[H:2 * H], w_hh[2 * H:]
    b_ir, b_iz, b_in = b_ih[:H], b_ih[H:2 * H], b_ih[2 * H:]
    b_hr, b_hz, b_hn = b_hh[:H], b_hh[H:2 * H], b_hh[2 * H:]

    # Fused layouts: one (I,3H) input-projection matrix (r/z biases folded), one (H,3H)
    # hidden-gate matrix; b_hn stays separate because of r*( h@W_hn + b_hn ).
    w_i_cat = jnp.concatenate([w_ir.T, w_iz.T, w_in.T], axis=1)              # (I, 3H)
    w_h_cat = jnp.concatenate([w_hr.T, w_hz.T, w_hn.T], axis=1)              # (H, 3H)
    b_i_cat = jnp.concatenate([b_ir + b_hr, b_iz + b_hz, b_in])[None, :]     # (1, 3H)

    return dict(
        w_i_cat=w_i_cat,
        w_h_cat=w_h_cat,
        b_i_cat=b_i_cat,
        b_hn=b_hn[None, :],     # (1, H)
        w_fc_T=w_fc.T,          # (H, O)
        b_fc=b_fc[None, :],     # (1, O)
    )


# ----------------------------------------------------------------------------- reference
def gru_prepare_ref(x, p):
    B, T, _ = x.shape
    H = p["w_h_cat"].shape[0]
    h = jnp.zeros((B, H), jnp.float32)
    outs = []
    for t in range(T):
        gi = x[:, t] @ p["w_i_cat"] + p["b_i_cat"]     # (B, 3H)
        gh = h @ p["w_h_cat"]                          # (B, 3H)
        r = jax.nn.sigmoid(gi[:, :H] + gh[:, :H])
        z = jax.nn.sigmoid(gi[:, H:2 * H] + gh[:, H:2 * H])
        n = jnp.tanh(gi[:, 2 * H:] + r * (gh[:, 2 * H:] + p["b_hn"]))
        h = (1.0 - z) * n + z * h
        outs.append(h)
    gru_out = jnp.stack(outs, axis=1)                  # (B, T, H)
    return gru_out @ p["w_fc_T"] + p["b_fc"], h[None]


# ----------------------------------------------------------------------------- main
if __name__ == "__main__":
    B, T = 2, 8
    input_size, hidden_size, output_size = 4, 32, 16

    key = jax.random.PRNGKey(0)
    k_x, k_p = jax.random.split(key)
    x = jax.random.normal(k_x, (B, T, input_size), jnp.float32)
    params = init_params(k_p, input_size, hidden_size, output_size)

    try:
        fwd = _build_forward(single_buffer_consts=True)
        out, hidden = jax.block_until_ready(fwd(x, params))
    except Exception:
        # pl.Buffered(1) on constant operands not supported on this jax build ->
        # fall back to default double-buffering (correctness identical).
        fwd = _build_forward(single_buffer_consts=False)
        out, hidden = jax.block_until_ready(fwd(x, params))

    ref_out, ref_hidden = gru_prepare_ref(x, params)
    assert out.shape == (B, T, output_size)
    assert hidden.shape == (1, B, hidden_size)
    np.testing.assert_allclose(np.asarray(out), np.asarray(ref_out), rtol=1e-5, atol=1e-5)
    np.testing.assert_allclose(np.asarray(hidden), np.asarray(ref_hidden), rtol=1e-5, atol=1e-5)

    print("KERNEL_OK")
</pallas_src>

<mosaic_0001>
module attributes {stable_mosaic.version = 11 : i64} {
  func.func @gru_kernel(%arg0: i32, %arg1: memref<8x2x384xf32, #tpu.memory_space<vmem>>, %arg2: memref<128x384xf32, #tpu.memory_space<vmem>>, %arg3: memref<1x128xf32, #tpu.memory_space<vmem>>, %arg4: memref<128x128xf32, #tpu.memory_space<vmem>>, %arg5: memref<1x128xf32, #tpu.memory_space<vmem>>, %arg6: memref<8x2x128xf32, #tpu.memory_space<vmem>>, %arg7: memref<2x128xf32, #tpu.memory_space<vmem>>, %arg8: memref<2x128xf32, #tpu.memory_space<vmem>>) attributes {dimension_semantics = [#tpu.dimension_semantics<arbitrary>], iteration_bounds = array<i64: 1>, scalar_prefetch = 0 : i64, scratch_operands = 1 : i64, tpu.core_type = #tpu.core_type<tc>, window_params = [{transform_indices = @transform_0, window_bounds = array<i64: 8, 2, 384>}, {pipeline_mode = #tpu.pipeline_mode<synchronous>, transform_indices = @transform_1, window_bounds = array<i64: 128, 384>}, {pipeline_mode = #tpu.pipeline_mode<synchronous>, transform_indices = @transform_2, window_bounds = array<i64: 1, 128>}, {pipeline_mode = #tpu.pipeline_mode<synchronous>, transform_indices = @transform_3, window_bounds = array<i64: 128, 128>}, {pipeline_mode = #tpu.pipeline_mode<synchronous>, transform_indices = @transform_4, window_bounds = array<i64: 1, 128>}, {transform_indices = @transform_5, window_bounds = array<i64: 8, 2, 128>}, {pipeline_mode = #tpu.pipeline_mode<synchronous>, transform_indices = @transform_6, window_bounds = array<i64: 2, 128>}]} {
    %c0_i32 = arith.constant 0 : i32
    %0 = arith.cmpi eq, %arg0, %c0_i32 : i32
    %1 = arith.extui %0 : i1 to i32
    %c0_i32_0 = arith.constant 0 : i32
    %2 = arith.cmpi ne, %1, %c0_i32_0 : i32
    scf.if %2 {
      %cst_86 = arith.constant 0.000000e+00 : f32
      %310 = vector.broadcast %cst_86 : f32 to vector<2x128xf32>
      %c0_87 = arith.constant 0 : index
      %c0_88 = arith.constant 0 : index
      %311 = vector.load %arg8[%c0_87, %c0_88] : memref<2x128xf32, #tpu.memory_space<vmem>>, vector<2x128xf32>
      tpu.vector_store %arg8[%c0_87, %c0_88], %310 {strides = array<i32>} : memref<2x128xf32, #tpu.memory_space<vmem>>, vector<2x128xf32>,
    } else {
    }
    %c0 = arith.constant 0 : index
    %c0_1 = arith.constant 0 : index
    %3 = vector.load %arg2[%c0, %c0_1] : memref<128x384xf32, #tpu.memory_space<vmem>>, vector<128x384xf32>
    %c0_2 = arith.constant 0 : index
    %c0_3 = arith.constant 0 : index
    %4 = vector.load %arg4[%c0_2, %c0_3] : memref<128x128xf32, #tpu.memory_space<vmem>>, vector<128x128xf32>
    %c0_4 = arith.constant 0 : index
    %c0_5 = arith.constant 0 : index
    %5 = vector.load %arg3[%c0_4, %c0_5] : memref<1x128xf32, #tpu.memory_space<vmem>>, vector<1x128xf32>
    %6 = vector.shape_cast %5 : vector<1x128xf32> to vector<1x128xf32>
    %7 = vector.broadcast %6 : vector<1x128xf32> to vector<2x128xf32>
    %c0_6 = arith.constant 0 : index
    %c0_7 = arith.constant 0 : index
    %8 = vector.load %arg5[%c0_6, %c0_7] : memref<1x128xf32, #tpu.memory_space<vmem>>, vector<1x128xf32>
    %9 = vector.shape_cast %8 : vector<1x128xf32> to vector<1x128xf32>
    %10 = vector.broadcast %9 : vector<1x128xf32> to vector<2x128xf32>
    %c0_8 = arith.constant 0 : index
    %c0_9 = arith.constant 0 : index
    %11 = vector.load %arg8[%c0_8, %c0_9] : memref<2x128xf32, #tpu.memory_space<vmem>>, vector<2x128xf32>
    %c0_i32_10 = arith.constant 0 : i32
    %12 = arith.index_cast %c0_i32_10 : i32 to index
    %c0_11 = arith.constant 0 : index
    %c0_12 = arith.constant 0 : index
    %13 = vector.load %arg1[%12, %c0_11, %c0_12] : memref<8x2x384xf32, #tpu.memory_space<vmem>>, vector<1x2x384xf32>
    %14 = vector.shape_cast %13 : vector<1x2x384xf32> to vector<2x384xf32>
    %cst = arith.constant dense<0.000000e+00> : vector<2x384xf32>
    %15 = tpu.matmul %11, %3, %cst {dimension_numbers = #tpu.dot_dimension_numbers<[1], [0], [0], [1], [0, 0, 1, 1], [], []>} : vector<2x128xf32>, vector<128x384xf32>, vector<2x384xf32> -> vector<2x384xf32>
    %16 = vector.extract_strided_slice %14 {offsets = [0, 0], sizes = [2, 128], strides = [1, 1]} : vector<2x384xf32> to vector<2x128xf32>
    %17 = vector.extract_strided_slice %15 {offsets = [0, 0], sizes = [2, 128], strides = [1, 1]} : vector<2x384xf32> to vector<2x128xf32>
    %18 = arith.addf %16, %17 : vector<2x128xf32>
    %19 = arith.negf %18 : vector<2x128xf32>
    %20 = math.exp %19 : vector<2x128xf32>
    %cst_13 = arith.constant 1.000000e+00 : f32
    %21 = vector.broadcast %cst_13 : f32 to vector<2x128xf32>
    %22 = arith.addf %21, %20 : vector<2x128xf32>
    %23 = arith.divf %21, %22 : vector<2x128xf32>
    %24 = vector.extract_strided_slice %14 {offsets = [0, 128], sizes = [2, 128], strides = [1, 1]} : vector<2x384xf32> to vector<2x128xf32>
    %25 = vector.extract_strided_slice %15 {offsets = [0, 128], sizes = [2, 128], strides = [1, 1]} : vector<2x384xf32> to vector<2x128xf32>
    %26 = arith.addf %24, %25 : vector<2x128xf32>
    %27 = arith.negf %26 : vector<2x128xf32>
    %28 = math.exp %27 : vector<2x128xf32>
    %cst_14 = arith.constant 1.000000e+00 : f32
    %29 = vector.broadcast %cst_14 : f32 to vector<2x128xf32>
    %30 = arith.addf %29, %28 : vector<2x128xf32>
    %31 = arith.divf %29, %30 : vector<2x128xf32>
    %32 = vector.extract_strided_slice %14 {offsets = [0, 256], sizes = [2, 128], strides = [1, 1]} : vector<2x384xf32> to vector<2x128xf32>
    %33 = vector.extract_strided_slice %15 {offsets = [0, 256], sizes = [2, 128], strides = [1, 1]} : vector<2x384xf32> to vector<2x128xf32>
    %34 = arith.addf %33, %7 : vector<2x128xf32>
    %35 = arith.mulf %23, %34 : vector<2x128xf32>
    %36 = arith.addf %32, %35 : vector<2x128xf32>
    %37 = math.tanh %36 : vector<2x128xf32>
    %cst_15 = arith.constant 1.000000e+00 : f32
    %38 = vector.broadcast %cst_15 : f32 to vector<2x128xf32>
    %39 = arith.subf %38, %31 : vector<2x128xf32>
    %40 = arith.mulf %39, %37 : vector<2x128xf32>
    %41 = arith.mulf %31, %11 : vector<2x128xf32>
    %42 = arith.addf %40, %41 : vector<2x128xf32>
    %cst_16 = arith.constant dense<0.000000e+00> : vector<2x128xf32>
    %43 = tpu.matmul %42, %4, %cst_16 {dimension_numbers = #tpu.dot_dimension_numbers<[1], [0], [0], [1], [0, 0, 1, 1], [], []>} : vector<2x128xf32>, vector<128x128xf32>, vector<2x128xf32> -> vector<2x128xf32>
    %44 = arith.addf %43, %10 : vector<2x128xf32>
    %45 = arith.index_cast %c0_i32_10 : i32 to index
    %c0_17 = arith.constant 0 : index
    %c0_18 = arith.constant 0 : index
    %46 = vector.load %arg6[%45, %c0_17, %c0_18] : memref<8x2x128xf32, #tpu.memory_space<vmem>>, vector<1x2x128xf32>
    %47 = vector.shape_cast %46 : vector<1x2x128xf32> to vector<2x128xf32>
    %48 = vector.shape_cast %44 : vector<2x128xf32> to vector<1x2x128xf32>
    tpu.vector_store %arg6[%45, %c0_17, %c0_18], %48 {strides = array<i32>} : memref<8x2x128xf32, #tpu.memory_space<vmem>>, vector<1x2x128xf32>,
    %c1_i32 = arith.constant 1 : i32
    %49 = arith.index_cast %c1_i32 : i32 to index
    %c0_19 = arith.constant 0 : index
    %c0_20 = arith.constant 0 : index
    %50 = vector.load %arg1[%49, %c0_19, %c0_20] : memref<8x2x384xf32, #tpu.memory_space<vmem>>, vector<1x2x384xf32>
    %51 = vector.shape_cast %50 : vector<1x2x384xf32> to vector<2x384xf32>
    %cst_21 = arith.constant dense<0.000000e+00> : vector<2x384xf32>
    %52 = tpu.matmul %42, %3, %cst_21 {dimension_numbers = #tpu.dot_dimension_numbers<[1], [0], [0], [1], [0, 0, 1, 1], [], []>} : vector<2x128xf32>, vector<128x384xf32>, vector<2x384xf32> -> vector<2x384xf32>
    %53 = vector.extract_strided_slice %51 {offsets = [0, 0], sizes = [2, 128], strides = [1, 1]} : vector<2x384xf32> to vector<2x128xf32>
    %54 = vector.extract_strided_slice %52 {offsets = [0, 0], sizes = [2, 128], strides = [1, 1]} : vector<2x384xf32> to vector<2x128xf32>
    %55 = arith.addf %53, %54 : vector<2x128xf32>
    %56 = arith.negf %55 : vector<2x128xf32>
    %57 = math.exp %56 : vector<2x128xf32>
    %cst_22 = arith.constant 1.000000e+00 : f32
    %58 = vector.broadcast %cst_22 : f32 to vector<2x128xf32>
    %59 = arith.addf %58, %57 : vector<2x128xf32>
    %60 = arith.divf %58, %59 : vector<2x128xf32>
    %61 = vector.extract_strided_slice %51 {offsets = [0, 128], sizes = [2, 128], strides = [1, 1]} : vector<2x384xf32> to vector<2x128xf32>
    %62 = vector.extract_strided_slice %52 {offsets = [0, 128], sizes = [2, 128], strides = [1, 1]} : vector<2x384xf32> to vector<2x128xf32>
    %63 = arith.addf %61, %62 : vector<2x128xf32>
    %64 = arith.negf %63 : vector<2x128xf32>
    %65 = math.exp %64 : vector<2x128xf32>
    %cst_23 = arith.constant 1.000000e+00 : f32
    %66 = vector.broadcast %cst_23 : f32 to vector<2x128xf32>
    %67 = arith.addf %66, %65 : vector<2x128xf32>
    %68 = arith.divf %66, %67 : vector<2x128xf32>
    %69 = vector.extract_strided_slice %51 {offsets = [0, 256], sizes = [2, 128], strides = [1, 1]} : vector<2x384xf32> to vector<2x128xf32>
    %70 = vector.extract_strided_slice %52 {offsets = [0, 256], sizes = [2, 128], strides = [1, 1]} : vector<2x384xf32> to vector<2x128xf32>
    %71 = arith.addf %70, %7 : vector<2x128xf32>
    %72 = arith.mulf %60, %71 : vector<2x128xf32>
    %73 = arith.addf %69, %72 : vector<2x128xf32>
    %74 = math.tanh %73 : vector<2x128xf32>
    %cst_24 = arith.constant 1.000000e+00 : f32
    %75 = vector.broadcast %cst_24 : f32 to vector<2x128xf32>
    %76 = arith.subf %75, %68 : vector<2x128xf32>
    %77 = arith.mulf %76, %74 : vector<2x128xf32>
    %78 = arith.mulf %68, %42 : vector<2x128xf32>
    %79 = arith.addf %77, %78 : vector<2x128xf32>
    %cst_25 = arith.constant dense<0.000000e+00> : vector<2x128xf32>
    %80 = tpu.matmul %79, %4, %cst_25 {dimension_numbers = #tpu.dot_dimension_numbers<[1], [0], [0], [1], [0, 0, 1, 1], [], []>} : vector<2x128xf32>, vector<128x128xf32>, vector<2x128xf32> -> vector<2x128xf32>
    %81 = arith.addf %80, %10 : vector<2x128xf32>
    %82 = arith.index_cast %c1_i32 : i32 to index
    %c0_26 = arith.constant 0 : index
    %c0_27 = arith.constant 0 : index
    %83 = vector.load %arg6[%82, %c0_26, %c0_27] : memref<8x2x128xf32, #tpu.memory_space<vmem>>, vector<1x2x128xf32>
    %84 = vector.shape_cast %83 : vector<1x2x128xf32> to vector<2x128xf32>
    %85 = vector.shape_cast %81 : vector<2x128xf32> to vector<1x2x128xf32>
    tpu.vector_store %arg6[%82, %c0_26, %c0_27], %85 {strides = array<i32>} : memref<8x2x128xf32, #tpu.memory_space<vmem>>, vector<1x2x128xf32>,
    %c2_i32 = arith.constant 2 : i32
    %86 = arith.index_cast %c2_i32 : i32 to index
    %c0_28 = arith.constant 0 : index
    %c0_29 = arith.constant 0 : index
    %87 = vector.load %arg1[%86, %c0_28, %c0_29] : memref<8x2x384xf32, #tpu.memory_space<vmem>>, vector<1x2x384xf32>
    %88 = vector.shape_cast %87 : vector<1x2x384xf32> to vector<2x384xf32>
    %cst_30 = arith.constant dense<0.000000e+00> : vector<2x384xf32>
    %89 = tpu.matmul %79, %3, %cst_30 {dimension_numbers = #tpu.dot_dimension_numbers<[1], [0], [0], [1], [0, 0, 1, 1], [], []>} : vector<2x128xf32>, vector<128x384xf32>, vector<2x384xf32> -> vector<2x384xf32>
    %90 = vector.extract_strided_slice %88 {offsets = [0, 0], sizes = [2, 128], strides = [1, 1]} : vector<2x384xf32> to vector<2x128xf32>
    %91 = vector.extract_strided_slice %89 {offsets = [0, 0], sizes = [2, 128], strides = [1, 1]} : vector<2x384xf32> to vector<2x128xf32>
    %92 = arith.addf %90, %91 : vector<2x128xf32>
    %93 = arith.negf %92 : vector<2x128xf32>
    %94 = math.exp %93 : vector<2x128xf32>
    %cst_31 = arith.constant 1.000000e+00 : f32
    %95 = vector.broadcast %cst_31 : f32 to vector<2x128xf32>
    %96 = arith.addf %95, %94 : vector<2x128xf32>
    %97 = arith.divf %95, %96 : vector<2x128xf32>
    %98 = vector.extract_strided_slice %88 {offsets = [0, 128], sizes = [2, 128], strides = [1, 1]} : vector<2x384xf32> to vector<2x128xf32>
    %99 = vector.extract_strided_slice %89 {offsets = [0, 128], sizes = [2, 128], strides = [1, 1]} : vector<2x384xf32> to vector<2x128xf32>
    %100 = arith.addf %98, %99 : vector<2x128xf32>
    %101 = arith.negf %100 : vector<2x128xf32>
    %102 = math.exp %101 : vector<2x128xf32>
    %cst_32 = arith.constant 1.000000e+00 : f32
    %103 = vector.broadcast %cst_32 : f32 to vector<2x128xf32>
    %104 = arith.addf %103, %102 : vector<2x128xf32>
    %105 = arith.divf %103, %104 : vector<2x128xf32>
    %106 = vector.extract_strided_slice %88 {offsets = [0, 256], sizes = [2, 128], strides = [1, 1]} : vector<2x384xf32> to vector<2x128xf32>
    %107 = vector.extract_strided_slice %89 {offsets = [0, 256], sizes = [2, 128], strides = [1, 1]} : vector<2x384xf32> to vector<2x128xf32>
    %108 = arith.addf %107, %7 : vector<2x128xf32>
    %109 = arith.mulf %97, %108 : vector<2x128xf32>
    %110 = arith.addf %106, %109 : vector<2x128xf32>
    %111 = math.tanh %110 : vector<2x128xf32>
    %cst_33 = arith.constant 1.000000e+00 : f32
    %112 = vector.broadcast %cst_33 : f32 to vector<2x128xf32>
    %113 = arith.subf %112, %105 : vector<2x128xf32>
    %114 = arith.mulf %113, %111 : vector<2x128xf32>
    %115 = arith.mulf %105, %79 : vector<2x128xf32>
    %116 = arith.addf %114, %115 : vector<2x128xf32>
    %cst_34 = arith.constant dense<0.000000e+00> : vector<2x128xf32>
    %117 = tpu.matmul %116, %4, %cst_34 {dimension_numbers = #tpu.dot_dimension_numbers<[1], [0], [0], [1], [0, 0, 1, 1], [], []>} : vector<2x128xf32>, vector<128x128xf32>, vector<2x128xf32> -> vector<2x128xf32>
    %118 = arith.addf %117, %10 : vector<2x128xf32>
    %119 = arith.index_cast %c2_i32 : i32 to index
    %c0_35 = arith.constant 0 : index
    %c0_36 = arith.constant 0 : index
    %120 = vector.load %arg6[%119, %c0_35, %c0_36] : memref<8x2x128xf32, #tpu.memory_space<vmem>>, vector<1x2x128xf32>
    %121 = vector.shape_cast %120 : vector<1x2x128xf32> to vector<2x128xf32>
    %122 = vector.shape_cast %118 : vector<2x128xf32> to vector<1x2x128xf32>
    tpu.vector_store %arg6[%119, %c0_35, %c0_36], %122 {strides = array<i32>} : memref<8x2x128xf32, #tpu.memory_space<vmem>>, vector<1x2x128xf32>,
    %c3_i32 = arith.constant 3 : i32
    %123 = arith.index_cast %c3_i32 : i32 to index
    %c0_37 = arith.constant 0 : index
    %c0_38 = arith.constant 0 : index
    %124 = vector.load %arg1[%123, %c0_37, %c0_38] : memref<8x2x384xf32, #tpu.memory_space<vmem>>, vector<1x2x384xf32>
    %125 = vector.shape_cast %124 : vector<1x2x384xf32> to vector<2x384xf32>
    %cst_39 = arith.constant dense<0.000000e+00> : vector<2x384xf32>
    %126 = tpu.matmul %116, %3, %cst_39 {dimension_numbers = #tpu.dot_dimension_numbers<[1], [0], [0], [1], [0, 0, 1, 1], [], []>} : vector<2x128xf32>, vector<128x384xf32>, vector<2x384xf32> -> vector<2x384xf32>
    %127 = vector.extract_strided_slice %125 {offsets = [0, 0], sizes = [2, 128], strides = [1, 1]} : vector<2x384xf32> to vector<2x128xf32>
    %128 = vector.extract_strided_slice %126 {offsets = [0, 0], sizes = [2, 128], strides = [1, 1]} : vector<2x384xf32> to vector<2x128xf32>
    %129 = arith.addf %127, %128 : vector<2x128xf32>
    %130 = arith.negf %129 : vector<2x128xf32>
    %131 = math.exp %130 : vector<2x128xf32>
    %cst_40 = arith.constant 1.000000e+00 : f32
    %132 = vector.broadcast %cst_40 : f32 to vector<2x128xf32>
    %133 = arith.addf %132, %131 : vector<2x128xf32>
    %134 = arith.divf %132, %133 : vector<2x128xf32>
    %135 = vector.extract_strided_slice %125 {offsets = [0, 128], sizes = [2, 128], strides = [1, 1]} : vector<2x384xf32> to vector<2x128xf32>
    %136 = vector.extract_strided_slice %126 {offsets = [0, 128], sizes = [2, 128], strides = [1, 1]} : vector<2x384xf32> to vector<2x128xf32>
    %137 = arith.addf %135, %136 : vector<2x128xf32>
    %138 = arith.negf %137 : vector<2x128xf32>
    %139 = math.exp %138 : vector<2x128xf32>
    %cst_41 = arith.constant 1.000000e+00 : f32
    %140 = vector.broadcast %cst_41 : f32 to vector<2x128xf32>
    %141 = arith.addf %140, %139 : vector<2x128xf32>
    %142 = arith.divf %140, %141 : vector<2x128xf32>
    %143 = vector.extract_strided_slice %125 {offsets = [0, 256], sizes = [2, 128], strides = [1, 1]} : vector<2x384xf32> to vector<2x128xf32>
    %144 = vector.extract_strided_slice %126 {offsets = [0, 256], sizes = [2, 128], strides = [1, 1]} : vector<2x384xf32> to vector<2x128xf32>
    %145 = arith.addf %144, %7 : vector<2x128xf32>
    %146 = arith.mulf %134, %145 : vector<2x128xf32>
    %147 = arith.addf %143, %146 : vector<2x128xf32>
    %148 = math.tanh %147 : vector<2x128xf32>
    %cst_42 = arith.constant 1.000000e+00 : f32
    %149 = vector.broadcast %cst_42 : f32 to vector<2x128xf32>
    %150 = arith.subf %149, %142 : vector<2x128xf32>
    %151 = arith.mulf %150, %148 : vector<2x128xf32>
    %152 = arith.mulf %142, %116 : vector<2x128xf32>
    %153 = arith.addf %151, %152 : vector<2x128xf32>
    %cst_43 = arith.constant dense<0.000000e+00> : vector<2x128xf32>
    %154 = tpu.matmul %153, %4, %cst_43 {dimension_numbers = #tpu.dot_dimension_numbers<[1], [0], [0], [1], [0, 0, 1, 1], [], []>} : vector<2x128xf32>, vector<128x128xf32>, vector<2x128xf32> -> vector<2x128xf32>
    %155 = arith.addf %154, %10 : vector<2x128xf32>
    %156 = arith.index_cast %c3_i32 : i32 to index
    %c0_44 = arith.constant 0 : index
    %c0_45 = arith.constant 0 : index
    %157 = vector.load %arg6[%156, %c0_44, %c0_45] : memref<8x2x128xf32, #tpu.memory_space<vmem>>, vector<1x2x128xf32>
    %158 = vector.shape_cast %157 : vector<1x2x128xf32> to vector<2x128xf32>
    %159 = vector.shape_cast %155 : vector<2x128xf32> to vector<1x2x128xf32>
    tpu.vector_store %arg6[%156, %c0_44, %c0_45], %159 {strides = array<i32>} : memref<8x2x128xf32, #tpu.memory_space<vmem>>, vector<1x2x128xf32>,
    %c4_i32 = arith.constant 4 : i32
    %160 = arith.index_cast %c4_i32 : i32 to index
    %c0_46 = arith.constant 0 : index
    %c0_47 = arith.constant 0 : index
    %161 = vector.load %arg1[%160, %c0_46, %c0_47] : memref<8x2x384xf32, #tpu.memory_space<vmem>>, vector<1x2x384xf32>
    %162 = vector.shape_cast %161 : vector<1x2x384xf32> to vector<2x384xf32>
    %cst_48 = arith.constant dense<0.000000e+00> : vector<2x384xf32>
    %163 = tpu.matmul %153, %3, %cst_48 {dimension_numbers = #tpu.dot_dimension_numbers<[1], [0], [0], [1], [0, 0, 1, 1], [], []>} : vector<2x128xf32>, vector<128x384xf32>, vector<2x384xf32> -> vector<2x384xf32>
    %164 = vector.extract_strided_slice %162 {offsets = [0, 0], sizes = [2, 128], strides = [1, 1]} : vector<2x384xf32> to vector<2x128xf32>
    %165 = vector.extract_strided_slice %163 {offsets = [0, 0], sizes = [2, 128], strides = [1, 1]} : vector<2x384xf32> to vector<2x128xf32>
    %166 = arith.addf %164, %165 : vector<2x128xf32>
    %167 = arith.negf %166 : vector<2x128xf32>
    %168 = math.exp %167 : vector<2x128xf32>
    %cst_49 = arith.constant 1.000000e+00 : f32
    %169 = vector.broadcast %cst_49 : f32 to vector<2x128xf32>
    %170 = arith.addf %169, %168 : vector<2x128xf32>
    %171 = arith.divf %169, %170 : vector<2x128xf32>
    %172 = vector.extract_strided_slice %162 {offsets = [0, 128], sizes = [2, 128], strides = [1, 1]} : vector<2x384xf32> to vector<2x128xf32>
    %173 = vector.extract_strided_slice %163 {offsets = [0, 128], sizes = [2, 128], strides = [1, 1]} : vector<2x384xf32> to vector<2x128xf32>
    %174 = arith.addf %172, %173 : vector<2x128xf32>
    %175 = arith.negf %174 : vector<2x128xf32>
    %176 = math.exp %175 : vector<2x128xf32>
    %cst_50 = arith.constant 1.000000e+00 : f32
    %177 = vector.broadcast %cst_50 : f32 to vector<2x128xf32>
    %178 = arith.addf %177, %176 : vector<2x128xf32>
    %179 = arith.divf %177, %178 : vector<2x128xf32>
    %180 = vector.extract_strided_slice %162 {offsets = [0, 256], sizes = [2, 128], strides = [1, 1]} : vector<2x384xf32> to vector<2x128xf32>
    %181 = vector.extract_strided_slice %163 {offsets = [0, 256], sizes = [2, 128], strides = [1, 1]} : vector<2x384xf32> to vector<2x128xf32>
    %182 = arith.addf %181, %7 : vector<2x128xf32>
    %183 = arith.mulf %171, %182 : vector<2x128xf32>
    %184 = arith.addf %180, %183 : vector<2x128xf32>
    %185 = math.tanh %184 : vector<2x128xf32>
    %cst_51 = arith.constant 1.000000e+00 : f32
    %186 = vector.broadcast %cst_51 : f32 to vector<2x128xf32>
    %187 = arith.subf %186, %179 : vector<2x128xf32>
    %188 = arith.mulf %187, %185 : vector<2x128xf32>
    %189 = arith.mulf %179, %153 : vector<2x128xf32>
    %190 = arith.addf %188, %189 : vector<2x128xf32>
    %cst_52 = arith.constant dense<0.000000e+00> : vector<2x128xf32>
    %191 = tpu.matmul %190, %4, %cst_52 {dimension_numbers = #tpu.dot_dimension_numbers<[1], [0], [0], [1], [0, 0, 1, 1], [], []>} : vector<2x128xf32>, vector<128x128xf32>, vector<2x128xf32> -> vector<2x128xf32>
    %192 = arith.addf %191, %10 : vector<2x128xf32>
    %193 = arith.index_cast %c4_i32 : i32 to index
    %c0_53 = arith.constant 0 : index
    %c0_54 = arith.constant 0 : index
    %194 = vector.load %arg6[%193, %c0_53, %c0_54] : memref<8x2x128xf32, #tpu.memory_space<vmem>>, vector<1x2x128xf32>
    %195 = vector.shape_cast %194 : vector<1x2x128xf32> to vector<2x128xf32>
    %196 = vector.shape_cast %192 : vector<2x128xf32> to vector<1x2x128xf32>
    tpu.vector_store %arg6[%193, %c0_53, %c0_54], %196 {strides = array<i32>} : memref<8x2x128xf32, #tpu.memory_space<vmem>>, vector<1x2x128xf32>,
    %c5_i32 = arith.constant 5 : i32
    %197 = arith.index_cast %c5_i32 : i32 to index
    %c0_55 = arith.constant 0 : index
    %c0_56 = arith.constant 0 : index
    %198 = vector.load %arg1[%197, %c0_55, %c0_56] : memref<8x2x384xf32, #tpu.memory_space<vmem>>, vector<1x2x384xf32>
    %199 = vector.shape_cast %198 : vector<1x2x384xf32> to vector<2x384xf32>
    %cst_57 = arith.constant dense<0.000000e+00> : vector<2x384xf32>
    %200 = tpu.matmul %190, %3, %cst_57 {dimension_numbers = #tpu.dot_dimension_numbers<[1], [0], [0], [1], [0, 0, 1, 1], [], []>} : vector<2x128xf32>, vector<128x384xf32>, vector<2x384xf32> -> vector<2x384xf32>
    %201 = vector.extract_strided_slice %199 {offsets = [0, 0], sizes = [2, 128], strides = [1, 1]} : vector<2x384xf32> to vector<2x128xf32>
    %202 = vector.extract_strided_slice %200 {offsets = [0, 0], sizes = [2, 128], strides = [1, 1]} : vector<2x384xf32> to vector<2x128xf32>
    %203 = arith.addf %201, %202 : vector<2x128xf32>
    %204 = arith.negf %203 : vector<2x128xf32>
    %205 = math.exp %204 : vector<2x128xf32>
    %cst_58 = arith.constant 1.000000e+00 : f32
    %206 = vector.broadcast %cst_58 : f32 to vector<2x128xf32>
    %207 = arith.addf %206, %205 : vector<2x128xf32>
    %208 = arith.divf %206, %207 : vector<2x128xf32>
    %209 = vector.extract_strided_slice %199 {offsets = [0, 128], sizes = [2, 128], strides = [1, 1]} : vector<2x384xf32> to vector<2x128xf32>
    %210 = vector.extract_strided_slice %200 {offsets = [0, 128], sizes = [2, 128], strides = [1, 1]} : vector<2x384xf32> to vector<2x128xf32>
    %211 = arith.addf %209, %210 : vector<2x128xf32>
    %212 = arith.negf %211 : vector<2x128xf32>
    %213 = math.exp %212 : vector<2x128xf32>
    %cst_59 = arith.constant 1.000000e+00 : f32
    %214 = vector.broadcast %cst_59 : f32 to vector<2x128xf32>
    %215 = arith.addf %214, %213 : vector<2x128xf32>
    %216 = arith.divf %214, %215 : vector<2x128xf32>
    %217 = vector.extract_strided_slice %199 {offsets = [0, 256], sizes = [2, 128], strides = [1, 1]} : vector<2x384xf32> to vector<2x128xf32>
    %218 = vector.extract_strided_slice %200 {offsets = [0, 256], sizes = [2, 128], strides = [1, 1]} : vector<2x384xf32> to vector<2x128xf32>
    %219 = arith.addf %218, %7 : vector<2x128xf32>
    %220 = arith.mulf %208, %219 : vector<2x128xf32>
    %221 = arith.addf %217, %220 : vector<2x128xf32>
    %222 = math.tanh %221 : vector<2x128xf32>
    %cst_60 = arith.constant 1.000000e+00 : f32
    %223 = vector.broadcast %cst_60 : f32 to vector<2x128xf32>
    %224 = arith.subf %223, %216 : vector<2x128xf32>
    %225 = arith.mulf %224, %222 : vector<2x128xf32>
    %226 = arith.mulf %216, %190 : vector<2x128xf32>
    %227 = arith.addf %225, %226 : vector<2x128xf32>
    %cst_61 = arith.constant dense<0.000000e+00> : vector<2x128xf32>
    %228 = tpu.matmul %227, %4, %cst_61 {dimension_numbers = #tpu.dot_dimension_numbers<[1], [0], [0], [1], [0, 0, 1, 1], [], []>} : vector<2x128xf32>, vector<128x128xf32>, vector<2x128xf32> -> vector<2x128xf32>
    %229 = arith.addf %228, %10 : vector<2x128xf32>
    %230 = arith.index_cast %c5_i32 : i32 to index
    %c0_62 = arith.constant 0 : index
    %c0_63 = arith.constant 0 : index
    %231 = vector.load %arg6[%230, %c0_62, %c0_63] : memref<8x2x128xf32, #tpu.memory_space<vmem>>, vector<1x2x128xf32>
    %232 = vector.shape_cast %231 : vector<1x2x128xf32> to vector<2x128xf32>
    %233 = vector.shape_cast %229 : vector<2x128xf32> to vector<1x2x128xf32>
    tpu.vector_store %arg6[%230, %c0_62, %c0_63], %233 {strides = array<i32>} : memref<8x2x128xf32, #tpu.memory_space<vmem>>, vector<1x2x128xf32>,
    %c6_i32 = arith.constant 6 : i32
    %234 = arith.index_cast %c6_i32 : i32 to index
    %c0_64 = arith.constant 0 : index
    %c0_65 = arith.constant 0 : index
    %235 = vector.load %arg1[%234, %c0_64, %c0_65] : memref<8x2x384xf32, #tpu.memory_space<vmem>>, vector<1x2x384xf32>
    %236 = vector.shape_cast %235 : vector<1x2x384xf32> to vector<2x384xf32>
    %cst_66 = arith.constant dense<0.000000e+00> : vector<2x384xf32>
    %237 = tpu.matmul %227, %3, %cst_66 {dimension_numbers = #tpu.dot_dimension_numbers<[1], [0], [0], [1], [0, 0, 1, 1], [], []>} : vector<2x128xf32>, vector<128x384xf32>, vector<2x384xf32> -> vector<2x384xf32>
    %238 = vector.extract_strided_slice %236 {offsets = [0, 0], sizes = [2, 128], strides = [1, 1]} : vector<2x384xf32> to vector<2x128xf32>
    %239 = vector.extract_strided_slice %237 {offsets = [0, 0], sizes = [2, 128], strides = [1, 1]} : vector<2x384xf32> to vector<2x128xf32>
    %240 = arith.addf %238, %239 : vector<2x128xf32>
    %241 = arith.negf %240 : vector<2x128xf32>
    %242 = math.exp %241 : vector<2x128xf32>
    %cst_67 = arith.constant 1.000000e+00 : f32
    %243 = vector.broadcast %cst_67 : f32 to vector<2x128xf32>
    %244 = arith.addf %243, %242 : vector<2x128xf32>
    %245 = arith.divf %243, %244 : vector<2x128xf32>
    %246 = vector.extract_strided_slice %236 {offsets = [0, 128], sizes = [2, 128], strides = [1, 1]} : vector<2x384xf32> to vector<2x128xf32>
    %247 = vector.extract_strided_slice %237 {offsets = [0, 128], sizes = [2, 128], strides = [1, 1]} : vector<2x384xf32> to vector<2x128xf32>
    %248 = arith.addf %246, %247 : vector<2x128xf32>
    %249 = arith.negf %248 : vector<2x128xf32>
    %250 = math.exp %249 : vector<2x128xf32>
    %cst_68 = arith.constant 1.000000e+00 : f32
    %251 = vector.broadcast %cst_68 : f32 to vector<2x128xf32>
    %252 = arith.addf %251, %250 : vector<2x128xf32>
    %253 = arith.divf %251, %252 : vector<2x128xf32>
    %254 = vector.extract_strided_slice %236 {offsets = [0, 256], sizes = [2, 128], strides = [1, 1]} : vector<2x384xf32> to vector<2x128xf32>
    %255 = vector.extract_strided_slice %237 {offsets = [0, 256], sizes = [2, 128], strides = [1, 1]} : vector<2x384xf32> to vector<2x128xf32>
    %256 = arith.addf %255, %7 : vector<2x128xf32>
    %257 = arith.mulf %245, %256 : vector<2x128xf32>
    %258 = arith.addf %254, %257 : vector<2x128xf32>
    %259 = math.tanh %258 : vector<2x128xf32>
    %cst_69 = arith.constant 1.000000e+00 : f32
    %260 = vector.broadcast %cst_69 : f32 to vector<2x128xf32>
    %261 = arith.subf %260, %253 : vector<2x128xf32>
    %262 = arith.mulf %261, %259 : vector<2x128xf32>
    %263 = arith.mulf %253, %227 : vector<2x128xf32>
    %264 = arith.addf %262, %263 : vector<2x128xf32>
    %cst_70 = arith.constant dense<0.000000e+00> : vector<2x128xf32>
    %265 = tpu.matmul %264, %4, %cst_70 {dimension_numbers = #tpu.dot_dimension_numbers<[1], [0], [0], [1], [0, 0, 1, 1], [], []>} : vector<2x128xf32>, vector<128x128xf32>, vector<2x128xf32> -> vector<2x128xf32>
    %266 = arith.addf %265, %10 : vector<2x128xf32>
    %267 = arith.index_cast %c6_i32 : i32 to index
    %c0_71 = arith.constant 0 : index
    %c0_72 = arith.constant 0 : index
    %268 = vector.load %arg6[%267, %c0_71, %c0_72] : memref<8x2x128xf32, #tpu.memory_space<vmem>>, vector<1x2x128xf32>
    %269 = vector.shape_cast %268 : vector<1x2x128xf32> to vector<2x128xf32>
    %270 = vector.shape_cast %266 : vector<2x128xf32> to vector<1x2x128xf32>
    tpu.vector_store %arg6[%267, %c0_71, %c0_72], %270 {strides = array<i32>} : memref<8x2x128xf32, #tpu.memory_space<vmem>>, vector<1x2x128xf32>,
    %c7_i32 = arith.constant 7 : i32
    %271 = arith.index_cast %c7_i32 : i32 to index
    %c0_73 = arith.constant 0 : index
    %c0_74 = arith.constant 0 : index
    %272 = vector.load %arg1[%271, %c0_73, %c0_74] : memref<8x2x384xf32, #tpu.memory_space<vmem>>, vector<1x2x384xf32>
    %273 = vector.shape_cast %272 : vector<1x2x384xf32> to vector<2x384xf32>
    %cst_75 = arith.constant dense<0.000000e+00> : vector<2x384xf32>
    %274 = tpu.matmul %264, %3, %cst_75 {dimension_numbers = #tpu.dot_dimension_numbers<[1], [0], [0], [1], [0, 0, 1, 1], [], []>} : vector<2x128xf32>, vector<128x384xf32>, vector<2x384xf32> -> vector<2x384xf32>
    %275 = vector.extract_strided_slice %273 {offsets = [0, 0], sizes = [2, 128], strides = [1, 1]} : vector<2x384xf32> to vector<2x128xf32>
    %276 = vector.extract_strided_slice %274 {offsets = [0, 0], sizes = [2, 128], strides = [1, 1]} : vector<2x384xf32> to vector<2x128xf32>
    %277 = arith.addf %275, %276 : vector<2x128xf32>
    %278 = arith.negf %277 : vector<2x128xf32>
    %279 = math.exp %278 : vector<2x128xf32>
    %cst_76 = arith.constant 1.000000e+00 : f32
    %280 = vector.broadcast %cst_76 : f32 to vector<2x128xf32>
    %281 = arith.addf %280, %279 : vector<2x128xf32>
    %282 = arith.divf %280, %281 : vector<2x128xf32>
    %283 = vector.extract_strided_slice %273 {offsets = [0, 128], sizes = [2, 128], strides = [1, 1]} : vector<2x384xf32> to vector<2x128xf32>
    %284 = vector.extract_strided_slice %274 {offsets = [0, 128], sizes = [2, 128], strides = [1, 1]} : vector<2x384xf32> to vector<2x128xf32>
    %285 = arith.addf %283, %284 : vector<2x128xf32>
    %286 = arith.negf %285 : vector<2x128xf32>
    %287 = math.exp %286 : vector<2x128xf32>
    %cst_77 = arith.constant 1.000000e+00 : f32
    %288 = vector.broadcast %cst_77 : f32 to vector<2x128xf32>
    %289 = arith.addf %288, %287 : vector<2x128xf32>
    %290 = arith.divf %288, %289 : vector<2x128xf32>
    %291 = vector.extract_strided_slice %273 {offsets = [0, 256], sizes = [2, 128], strides = [1, 1]} : vector<2x384xf32> to vector<2x128xf32>
    %292 = vector.extract_strided_slice %274 {offsets = [0, 256], sizes = [2, 128], strides = [1, 1]} : vector<2x384xf32> to vector<2x128xf32>
    %293 = arith.addf %292, %7 : vector<2x128xf32>
    %294 = arith.mulf %282, %293 : vector<2x128xf32>
    %295 = arith.addf %291, %294 : vector<2x128xf32>
    %296 = math.tanh %295 : vector<2x128xf32>
    %cst_78 = arith.constant 1.000000e+00 : f32
    %297 = vector.broadcast %cst_78 : f32 to vector<2x128xf32>
    %298 = arith.subf %297, %290 : vector<2x128xf32>
    %299 = arith.mulf %298, %296 : vector<2x128xf32>
    %300 = arith.mulf %290, %264 : vector<2x128xf32>
    %301 = arith.addf %299, %300 : vector<2x128xf32>
    %cst_79 = arith.constant dense<0.000000e+00> : vector<2x128xf32>
    %302 = tpu.matmul %301, %4, %cst_79 {dimension_numbers = #tpu.dot_dimension_numbers<[1], [0], [0], [1], [0, 0, 1, 1], [], []>} : vector<2x128xf32>, vector<128x128xf32>, vector<2x128xf32> -> vector<2x128xf32>
    %303 = arith.addf %302, %10 : vector<2x128xf32>
    %304 = arith.index_cast %c7_i32 : i32 to index
    %c0_80 = arith.constant 0 : index
    %c0_81 = arith.constant 0 : index
    %305 = vector.load %arg6[%304, %c0_80, %c0_81] : memref<8x2x128xf32, #tpu.memory_space<vmem>>, vector<1x2x128xf32>
    %306 = vector.shape_cast %305 : vector<1x2x128xf32> to vector<2x128xf32>
    %307 = vector.shape_cast %303 : vector<2x128xf32> to vector<1x2x128xf32>
    tpu.vector_store %arg6[%304, %c0_80, %c0_81], %307 {strides = array<i32>} : memref<8x2x128xf32, #tpu.memory_space<vmem>>, vector<1x2x128xf32>,
    %c8_i32 = arith.constant 8 : i32
    %c0_82 = arith.constant 0 : index
    %c0_83 = arith.constant 0 : index
    %308 = vector.load %arg8[%c0_82, %c0_83] : memref<2x128xf32, #tpu.memory_space<vmem>>, vector<2x128xf32>
    tpu.vector_store %arg8[%c0_82, %c0_83], %301 {strides = array<i32>} : memref<2x128xf32, #tpu.memory_space<vmem>>, vector<2x128xf32>,
    %c0_84 = arith.constant 0 : index
    %c0_85 = arith.constant 0 : index
    %309 = vector.load %arg7[%c0_84, %c0_85] : memref<2x128xf32, #tpu.memory_space<vmem>>, vector<2x128xf32>
    tpu.vector_store %arg7[%c0_84, %c0_85], %301 {strides = array<i32>} : memref<2x128xf32, #tpu.memory_space<vmem>>, vector<2x128xf32>,
    return
  }
  func.func @transform_0(%arg0: i32) -> (i32, i32, i32) {
    %c0_i32 = arith.constant 0 : i32
    %c0_i32_0 = arith.constant 0 : i32
    %c0_i32_1 = arith.constant 0 : i32
    return %arg0, %c0_i32, %c0_i32_0 : i32, i32, i32
  }
  func.func @transform_1(%arg0: i32) -> (i32, i32) {
    %c0_i32 = arith.constant 0 : i32
    %c0_i32_0 = arith.constant 0 : i32
    %c0_i32_1 = arith.constant 0 : i32
    return %c0_i32, %c0_i32_0 : i32, i32
  }
  func.func @transform_2(%arg0: i32) -> (i32, i32) {
    %c0_i32 = arith.constant 0 : i32
    %c0_i32_0 = arith.constant 0 : i32
    %c0_i32_1 = arith.constant 0 : i32
    return %c0_i32, %c0_i32_0 : i32, i32
  }
  func.func @transform_3(%arg0: i32) -> (i32, i32) {
    %c0_i32 = arith.constant 0 : i32
    %c0_i32_0 = arith.constant 0 : i32
    %c0_i32_1 = arith.constant 0 : i32
    return %c0_i32, %c0_i32_0 : i32, i32
  }
  func.func @transform_4(%arg0: i32) -> (i32, i32) {
    %c0_i32 = arith.constant 0 : i32
    %c0_i32_0 = arith.constant 0 : i32
    %c0_i32_1 = arith.constant 0 : i32
    return %c0_i32, %c0_i32_0 : i32, i32
  }
  func.func @transform_5(%arg0: i32) -> (i32, i32, i32) {
    %c0_i32 = arith.constant 0 : i32
    %c0_i32_0 = arith.constant 0 : i32
    %c0_i32_1 = arith.constant 0 : i32
    return %arg0, %c0_i32, %c0_i32_0 : i32, i32, i32
  }
  func.func @transform_6(%arg0: i32) -> (i32, i32) {
    %c0_i32 = arith.constant 0 : i32
    %c0_i32_0 = arith.constant 0 : i32
    %c0_i32_1 = arith.constant 0 : i32
    return %c0_i32, %c0_i32_0 : i32, i32
  }
}

module attributes {stable_mosaic.version = 11 : i64} {
  func.func @gru_kernel(%arg0: i32, %arg1: memref<8x2x384xf32, #tpu.memory_space<vmem>>, %arg2: memref<128x384xf32, #tpu.memory_space<vmem>>, %arg3: memref<1x128xf32, #tpu.memory_space<vmem>>, %arg4: memref<128x128xf32, #tpu.memory_space<vmem>>, %arg5: memref<1x128xf32, #tpu.memory_space<vmem>>, %arg6: memref<8x2x128xf32, #tpu.memory_space<vmem>>, %arg7: memref<2x128xf32, #tpu.memory_space<vmem>>, %arg8: memref<2x128xf32, #tpu.memory_space<vmem>>) attributes {dimension_semantics = [#tpu.dimension_semantics<arbitrary>], iteration_bounds = array<i64: 1>, scalar_prefetch = 0 : i64, scratch_operands = 1 : i64, tpu.core_type = #tpu.core_type<tc>, window_params = [{transform_indices = @transform_0, window_bounds = array<i64: 8, 2, 384>}, {pipeline_mode = #tpu.pipeline_mode<synchronous>, transform_indices = @transform_1, window_bounds = array<i64: 128, 384>}, {pipeline_mode = #tpu.pipeline_mode<synchronous>, transform_indices = @transform_2, window_bounds = array<i64: 1, 128>}, {pipeline_mode = #tpu.pipeline_mode<synchronous>, transform_indices = @transform_3, window_bounds = array<i64: 128, 128>}, {pipeline_mode = #tpu.pipeline_mode<synchronous>, transform_indices = @transform_4, window_bounds = array<i64: 1, 128>}, {transform_indices = @transform_5, window_bounds = array<i64: 8, 2, 128>}, {pipeline_mode = #tpu.pipeline_mode<synchronous>, transform_indices = @transform_6, window_bounds = array<i64: 2, 128>}]} {
    %c0_i32 = arith.constant 0 : i32
    %0 = arith.cmpi eq, %arg0, %c0_i32 : i32
    %1 = arith.extui %0 : i1 to i32
    %c0_i32_0 = arith.constant 0 : i32
    %2 = arith.cmpi ne, %1, %c0_i32_0 : i32
    scf.if %2 {
      %cst_86 = arith.constant 0.000000e+00 : f32
      %310 = vector.broadcast %cst_86 : f32 to vector<2x128xf32>
      %c0_87 = arith.constant 0 : index
      %c0_88 = arith.constant 0 : index
      %311 = vector.load %arg8[%c0_87, %c0_88] : memref<2x128xf32, #tpu.memory_space<vmem>>, vector<2x128xf32>
      tpu.vector_store %arg8[%c0_87, %c0_88], %310 {strides = array<i32>} : memref<2x128xf32, #tpu.memory_space<vmem>>, vector<2x128xf32>,
    } else {
    }
    %c0 = arith.constant 0 : index
    %c0_1 = arith.constant 0 : index
    %3 = vector.load %arg2[%c0, %c0_1] : memref<128x384xf32, #tpu.memory_space<vmem>>, vector<128x384xf32>
    %c0_2 = arith.constant 0 : index
    %c0_3 = arith.constant 0 : index
    %4 = vector.load %arg4[%c0_2, %c0_3] : memref<128x128xf32, #tpu.memory_space<vmem>>, vector<128x128xf32>
    %c0_4 = arith.constant 0 : index
    %c0_5 = arith.constant 0 : index
    %5 = vector.load %arg3[%c0_4, %c0_5] : memref<1x128xf32, #tpu.memory_space<vmem>>, vector<1x128xf32>
    %6 = vector.shape_cast %5 : vector<1x128xf32> to vector<1x128xf32>
    %7 = vector.broadcast %6 : vector<1x128xf32> to vector<2x128xf32>
    %c0_6 = arith.constant 0 : index
    %c0_7 = arith.constant 0 : index
    %8 = vector.load %arg5[%c0_6, %c0_7] : memref<1x128xf32, #tpu.memory_space<vmem>>, vector<1x128xf32>
    %9 = vector.shape_cast %8 : vector<1x128xf32> to vector<1x128xf32>
    %10 = vector.broadcast %9 : vector<1x128xf32> to vector<2x128xf32>
    %c0_8 = arith.constant 0 : index
    %c0_9 = arith.constant 0 : index
    %11 = vector.load %arg8[%c0_8, %c0_9] : memref<2x128xf32, #tpu.memory_space<vmem>>, vector<2x128xf32>
    %c0_i32_10 = arith.constant 0 : i32
    %12 = arith.index_cast %c0_i32_10 : i32 to index
    %c0_11 = arith.constant 0 : index
    %c0_12 = arith.constant 0 : index
    %13 = vector.load %arg1[%12, %c0_11, %c0_12] : memref<8x2x384xf32, #tpu.memory_space<vmem>>, vector<1x2x384xf32>
    %14 = vector.shape_cast %13 : vector<1x2x384xf32> to vector<2x384xf32>
    %cst = arith.constant dense<0.000000e+00> : vector<2x384xf32>
    %15 = tpu.matmul %11, %3, %cst {dimension_numbers = #tpu.dot_dimension_numbers<[1], [0], [0], [1], [0, 0, 1, 1], [], []>} : vector<2x128xf32>, vector<128x384xf32>, vector<2x384xf32> -> vector<2x384xf32>
    %16 = vector.extract_strided_slice %14 {offsets = [0, 0], sizes = [2, 128], strides = [1, 1]} : vector<2x384xf32> to vector<2x128xf32>
    %17 = vector.extract_strided_slice %15 {offsets = [0, 0], sizes = [2, 128], strides = [1, 1]} : vector<2x384xf32> to vector<2x128xf32>
    %18 = arith.addf %16, %17 : vector<2x128xf32>
    %19 = arith.negf %18 : vector<2x128xf32>
    %20 = math.exp %19 : vector<2x128xf32>
    %cst_13 = arith.constant 1.000000e+00 : f32
    %21 = vector.broadcast %cst_13 : f32 to vector<2x128xf32>
    %22 = arith.addf %21, %20 : vector<2x128xf32>
    %23 = arith.divf %21, %22 : vector<2x128xf32>
    %24 = vector.extract_strided_slice %14 {offsets = [0, 128], sizes = [2, 128], strides = [1, 1]} : vector<2x384xf32> to vector<2x128xf32>
    %25 = vector.extract_strided_slice %15 {offsets = [0, 128], sizes = [2, 128], strides = [1, 1]} : vector<2x384xf32> to vector<2x128xf32>
    %26 = arith.addf %24, %25 : vector<2x128xf32>
    %27 = arith.negf %26 : vector<2x128xf32>
    %28 = math.exp %27 : vector<2x128xf32>
    %cst_14 = arith.constant 1.000000e+00 : f32
    %29 = vector.broadcast %cst_14 : f32 to vector<2x128xf32>
    %30 = arith.addf %29, %28 : vector<2x128xf32>
    %31 = arith.divf %29, %30 : vector<2x128xf32>
    %32 = vector.extract_strided_slice %14 {offsets = [0, 256], sizes = [2, 128], strides = [1, 1]} : vector<2x384xf32> to vector<2x128xf32>
    %33 = vector.extract_strided_slice %15 {offsets = [0, 256], sizes = [2, 128], strides = [1, 1]} : vector<2x384xf32> to vector<2x128xf32>
    %34 = arith.addf %33, %7 : vector<2x128xf32>
    %35 = arith.mulf %23, %34 : vector<2x128xf32>
    %36 = arith.addf %32, %35 : vector<2x128xf32>
    %37 = math.tanh %36 : vector<2x128xf32>
    %cst_15 = arith.constant 1.000000e+00 : f32
    %38 = vector.broadcast %cst_15 : f32 to vector<2x128xf32>
    %39 = arith.subf %38, %31 : vector<2x128xf32>
    %40 = arith.mulf %39, %37 : vector<2x128xf32>
    %41 = arith.mulf %31, %11 : vector<2x128xf32>
    %42 = arith.addf %40, %41 : vector<2x128xf32>
    %cst_16 = arith.constant dense<0.000000e+00> : vector<2x128xf32>
    %43 = tpu.matmul %42, %4, %cst_16 {dimension_numbers = #tpu.dot_dimension_numbers<[1], [0], [0], [1], [0, 0, 1, 1], [], []>} : vector<2x128xf32>, vector<128x128xf32>, vector<2x128xf32> -> vector<2x128xf32>
    %44 = arith.addf %43, %10 : vector<2x128xf32>
    %45 = arith.index_cast %c0_i32_10 : i32 to index
    %c0_17 = arith.constant 0 : index
    %c0_18 = arith.constant 0 : index
    %46 = vector.load %arg6[%45, %c0_17, %c0_18] : memref<8x2x128xf32, #tpu.memory_space<vmem>>, vector<1x2x128xf32>
    %47 = vector.shape_cast %46 : vector<1x2x128xf32> to vector<2x128xf32>
    %48 = vector.shape_cast %44 : vector<2x128xf32> to vector<1x2x128xf32>
    tpu.vector_store %arg6[%45, %c0_17, %c0_18], %48 {strides = array<i32>} : memref<8x2x128xf32, #tpu.memory_space<vmem>>, vector<1x2x128xf32>,
    %c1_i32 = arith.constant 1 : i32
    %49 = arith.index_cast %c1_i32 : i32 to index
    %c0_19 = arith.constant 0 : index
    %c0_20 = arith.constant 0 : index
    %50 = vector.load %arg1[%49, %c0_19, %c0_20] : memref<8x2x384xf32, #tpu.memory_space<vmem>>, vector<1x2x384xf32>
    %51 = vector.shape_cast %50 : vector<1x2x384xf32> to vector<2x384xf32>
    %cst_21 = arith.constant dense<0.000000e+00> : vector<2x384xf32>
    %52 = tpu.matmul %42, %3, %cst_21 {dimension_numbers = #tpu.dot_dimension_numbers<[1], [0], [0], [1], [0, 0, 1, 1], [], []>} : vector<2x128xf32>, vector<128x384xf32>, vector<2x384xf32> -> vector<2x384xf32>
    %53 = vector.extract_strided_slice %51 {offsets = [0, 0], sizes = [2, 128], strides = [1, 1]} : vector<2x384xf32> to vector<2x128xf32>
    %54 = vector.extract_strided_slice %52 {offsets = [0, 0], sizes = [2, 128], strides = [1, 1]} : vector<2x384xf32> to vector<2x128xf32>
    %55 = arith.addf %53, %54 : vector<2x128xf32>
    %56 = arith.negf %55 : vector<2x128xf32>
    %57 = math.exp %56 : vector<2x128xf32>
    %cst_22 = arith.constant 1.000000e+00 : f32
    %58 = vector.broadcast %cst_22 : f32 to vector<2x128xf32>
    %59 = arith.addf %58, %57 : vector<2x128xf32>
    %60 = arith.divf %58, %59 : vector<2x128xf32>
    %61 = vector.extract_strided_slice %51 {offsets = [0, 128], sizes = [2, 128], strides = [1, 1]} : vector<2x384xf32> to vector<2x128xf32>
    %62 = vector.extract_strided_slice %52 {offsets = [0, 128], sizes = [2, 128], strides = [1, 1]} : vector<2x384xf32> to vector<2x128xf32>
    %63 = arith.addf %61, %62 : vector<2x128xf32>
    %64 = arith.negf %63 : vector<2x128xf32>
    %65 = math.exp %64 : vector<2x128xf32>
    %cst_23 = arith.constant 1.000000e+00 : f32
    %66 = vector.broadcast %cst_23 : f32 to vector<2x128xf32>
    %67 = arith.addf %66, %65 : vector<2x128xf32>
    %68 = arith.divf %66, %67 : vector<2x128xf32>
    %69 = vector.extract_strided_slice %51 {offsets = [0, 256], sizes = [2, 128], strides = [1, 1]} : vector<2x384xf32> to vector<2x128xf32>
    %70 = vector.extract_strided_slice %52 {offsets = [0, 256], sizes = [2, 128], strides = [1, 1]} : vector<2x384xf32> to vector<2x128xf32>
    %71 = arith.addf %70, %7 : vector<2x128xf32>
    %72 = arith.mulf %60, %71 : vector<2x128xf32>
    %73 = arith.addf %69, %72 : vector<2x128xf32>
    %74 = math.tanh %73 : vector<2x128xf32>
    %cst_24 = arith.constant 1.000000e+00 : f32
    %75 = vector.broadcast %cst_24 : f32 to vector<2x128xf32>
    %76 = arith.subf %75, %68 : vector<2x128xf32>
    %77 = arith.mulf %76, %74 : vector<2x128xf32>
    %78 = arith.mulf %68, %42 : vector<2x128xf32>
    %79 = arith.addf %77, %78 : vector<2x128xf32>
    %cst_25 = arith.constant dense<0.000000e+00> : vector<2x128xf32>
    %80 = tpu.matmul %79, %4, %cst_25 {dimension_numbers = #tpu.dot_dimension_numbers<[1], [0], [0], [1], [0, 0, 1, 1], [], []>} : vector<2x128xf32>, vector<128x128xf32>, vector<2x128xf32> -> vector<2x128xf32>
    %81 = arith.addf %80, %10 : vector<2x128xf32>
    %82 = arith.index_cast %c1_i32 : i32 to index
    %c0_26 = arith.constant 0 : index
    %c0_27 = arith.constant 0 : index
    %83 = vector.load %arg6[%82, %c0_26, %c0_27] : memref<8x2x128xf32, #tpu.memory_space<vmem>>, vector<1x2x128xf32>
    %84 = vector.shape_cast %83 : vector<1x2x128xf32> to vector<2x128xf32>
    %85 = vector.shape_cast %81 : vector<2x128xf32> to vector<1x2x128xf32>
    tpu.vector_store %arg6[%82, %c0_26, %c0_27], %85 {strides = array<i32>} : memref<8x2x128xf32, #tpu.memory_space<vmem>>, vector<1x2x128xf32>,
    %c2_i32 = arith.constant 2 : i32
    %86 = arith.index_cast %c2_i32 : i32 to index
    %c0_28 = arith.constant 0 : index
    %c0_29 = arith.constant 0 : index
    %87 = vector.load %arg1[%86, %c0_28, %c0_29] : memref<8x2x384xf32, #tpu.memory_space<vmem>>, vector<1x2x384xf32>
    %88 = vector.shape_cast %87 : vector<1x2x384xf32> to vector<2x384xf32>
    %cst_30 = arith.constant dense<0.000000e+00> : vector<2x384xf32>
    %89 = tpu.matmul %79, %3, %cst_30 {dimension_numbers = #tpu.dot_dimension_numbers<[1], [0], [0], [1], [0, 0, 1, 1], [], []>} : vector<2x128xf32>, vector<128x384xf32>, vector<2x384xf32> -> vector<2x384xf32>
    %90 = vector.extract_strided_slice %88 {offsets = [0, 0], sizes = [2, 128], strides = [1, 1]} : vector<2x384xf32> to vector<2x128xf32>
    %91 = vector.extract_strided_slice %89 {offsets = [0, 0], sizes = [2, 128], strides = [1, 1]} : vector<2x384xf32> to vector<2x128xf32>
    %92 = arith.addf %90, %91 : vector<2x128xf32>
    %93 = arith.negf %92 : vector<2x128xf32>
    %94 = math.exp %93 : vector<2x128xf32>
    %cst_31 = arith.constant 1.000000e+00 : f32
    %95 = vector.broadcast %cst_31 : f32 to vector<2x128xf32>
    %96 = arith.addf %95, %94 : vector<2x128xf32>
    %97 = arith.divf %95, %96 : vector<2x128xf32>
    %98 = vector.extract_strided_slice %88 {offsets = [0, 128], sizes = [2, 128], strides = [1, 1]} : vector<2x384xf32> to vector<2x128xf32>
    %99 = vector.extract_strided_slice %89 {offsets = [0, 128], sizes = [2, 128], strides = [1, 1]} : vector<2x384xf32> to vector<2x128xf32>
    %100 = arith.addf %98, %99 : vector<2x128xf32>
    %101 = arith.negf %100 : vector<2x128xf32>
    %102 = math.exp %101 : vector<2x128xf32>
    %cst_32 = arith.constant 1.000000e+00 : f32
    %103 = vector.broadcast %cst_32 : f32 to vector<2x128xf32>
    %104 = arith.addf %103, %102 : vector<2x128xf32>
    %105 = arith.divf %103, %104 : vector<2x128xf32>
    %106 = vector.extract_strided_slice %88 {offsets = [0, 256], sizes = [2, 128], strides = [1, 1]} : vector<2x384xf32> to vector<2x128xf32>
    %107 = vector.extract_strided_slice %89 {offsets = [0, 256], sizes = [2, 128], strides = [1, 1]} : vector<2x384xf32> to vector<2x128xf32>
    %108 = arith.addf %107, %7 : vector<2x128xf32>
    %109 = arith.mulf %97, %108 : vector<2x128xf32>
    %110 = arith.addf %106, %109 : vector<2x128xf32>
    %111 = math.tanh %110 : vector<2x128xf32>
    %cst_33 = arith.constant 1.000000e+00 : f32
    %112 = vector.broadcast %cst_33 : f32 to vector<2x128xf32>
    %113 = arith.subf %112, %105 : vector<2x128xf32>
    %114 = arith.mulf %113, %111 : vector<2x128xf32>
    %115 = arith.mulf %105, %79 : vector<2x128xf32>
    %116 = arith.addf %114, %115 : vector<2x128xf32>
    %cst_34 = arith.constant dense<0.000000e+00> : vector<2x128xf32>
    %117 = tpu.matmul %116, %4, %cst_34 {dimension_numbers = #tpu.dot_dimension_numbers<[1], [0], [0], [1], [0, 0, 1, 1], [], []>} : vector<2x128xf32>, vector<128x128xf32>, vector<2x128xf32> -> vector<2x128xf32>
    %118 = arith.addf %117, %10 : vector<2x128xf32>
    %119 = arith.index_cast %c2_i32 : i32 to index
    %c0_35 = arith.constant 0 : index
    %c0_36 = arith.constant 0 : index
    %120 = vector.load %arg6[%119, %c0_35, %c0_36] : memref<8x2x128xf32, #tpu.memory_space<vmem>>, vector<1x2x128xf32>
    %121 = vector.shape_cast %120 : vector<1x2x128xf32> to vector<2x128xf32>
    %122 = vector.shape_cast %118 : vector<2x128xf32> to vector<1x2x128xf32>
    tpu.vector_store %arg6[%119, %c0_35, %c0_36], %122 {strides = array<i32>} : memref<8x2x128xf32, #tpu.memory_space<vmem>>, vector<1x2x128xf32>,
    %c3_i32 = arith.constant 3 : i32
    %123 = arith.index_cast %c3_i32 : i32 to index
    %c0_37 = arith.constant 0 : index
    %c0_38 = arith.constant 0 : index
    %124 = vector.load %arg1[%123, %c0_37, %c0_38] : memref<8x2x384xf32, #tpu.memory_space<vmem>>, vector<1x2x384xf32>
    %125 = vector.shape_cast %124 : vector<1x2x384xf32> to vector<2x384xf32>
    %cst_39 = arith.constant dense<0.000000e+00> : vector<2x384xf32>
    %126 = tpu.matmul %116, %3, %cst_39 {dimension_numbers = #tpu.dot_dimension_numbers<[1], [0], [0], [1], [0, 0, 1, 1], [], []>} : vector<2x128xf32>, vector<128x384xf32>, vector<2x384xf32> -> vector<2x384xf32>
    %127 = vector.extract_strided_slice %125 {offsets = [0, 0], sizes = [2, 128], strides = [1, 1]} : vector<2x384xf32> to vector<2x128xf32>
    %128 = vector.extract_strided_slice %126 {offsets = [0, 0], sizes = [2, 128], strides = [1, 1]} : vector<2x384xf32> to vector<2x128xf32>
    %129 = arith.addf %127, %128 : vector<2x128xf32>
    %130 = arith.negf %129 : vector<2x128xf32>
    %131 = math.exp %130 : vector<2x128xf32>
    %cst_40 = arith.constant 1.000000e+00 : f32
    %132 = vector.broadcast %cst_40 : f32 to vector<2x128xf32>
    %133 = arith.addf %132, %131 : vector<2x128xf32>
    %134 = arith.divf %132, %133 : vector<2x128xf32>
    %135 = vector.extract_strided_slice %125 {offsets = [0, 128], sizes = [2, 128], strides = [1, 1]} : vector<2x384xf32> to vector<2x128xf32>
    %136 = vector.extract_strided_slice %126 {offsets = [0, 128], sizes = [2, 128], strides = [1, 1]} : vector<2x384xf32> to vector<2x128xf32>
    %137 = arith.addf %135, %136 : vector<2x128xf32>
    %138 = arith.negf %137 : vector<2x128xf32>
    %139 = math.exp %138 : vector<2x128xf32>
    %cst_41 = arith.constant 1.000000e+00 : f32
    %140 = vector.broadcast %cst_41 : f32 to vector<2x128xf32>
    %141 = arith.addf %140, %139 : vector<2x128xf32>
    %142 = arith.divf %140, %141 : vector<2x128xf32>
    %143 = vector.extract_strided_slice %125 {offsets = [0, 256], sizes = [2, 128], strides = [1, 1]} : vector<2x384xf32> to vector<2x128xf32>
    %144 = vector.extract_strided_slice %126 {offsets = [0, 256], sizes = [2, 128], strides = [1, 1]} : vector<2x384xf32> to vector<2x128xf32>
    %145 = arith.addf %144, %7 : vector<2x128xf32>
    %146 = arith.mulf %134, %145 : vector<2x128xf32>
    %147 = arith.addf %143, %146 : vector<2x128xf32>
    %148 = math.tanh %147 : vector<2x128xf32>
    %cst_42 = arith.constant 1.000000e+00 : f32
    %149 = vector.broadcast %cst_42 : f32 to vector<2x128xf32>
    %150 = arith.subf %149, %142 : vector<2x128xf32>
    %151 = arith.mulf %150, %148 : vector<2x128xf32>
    %152 = arith.mulf %142, %116 : vector<2x128xf32>
    %153 = arith.addf %151, %152 : vector<2x128xf32>
    %cst_43 = arith.constant dense<0.000000e+00> : vector<2x128xf32>
    %154 = tpu.matmul %153, %4, %cst_43 {dimension_numbers = #tpu.dot_dimension_numbers<[1], [0], [0], [1], [0, 0, 1, 1], [], []>} : vector<2x128xf32>, vector<128x128xf32>, vector<2x128xf32> -> vector<2x128xf32>
    %155 = arith.addf %154, %10 : vector<2x128xf32>
    %156 = arith.index_cast %c3_i32 : i32 to index
    %c0_44 = arith.constant 0 : index
    %c0_45 = arith.constant 0 : index
    %157 = vector.load %arg6[%156, %c0_44, %c0_45] : memref<8x2x128xf32, #tpu.memory_space<vmem>>, vector<1x2x128xf32>
    %158 = vector.shape_cast %157 : vector<1x2x128xf32> to vector<2x128xf32>
    %159 = vector.shape_cast %155 : vector<2x128xf32> to vector<1x2x128xf32>
    tpu.vector_store %arg6[%156, %c0_44, %c0_45], %159 {strides = array<i32>} : memref<8x2x128xf32, #tpu.memory_space<vmem>>, vector<1x2x128xf32>,
    %c4_i32 = arith.constant 4 : i32
    %160 = arith.index_cast %c4_i32 : i32 to index
    %c0_46 = arith.constant 0 : index
    %c0_47 = arith.constant 0 : index
    %161 = vector.load %arg1[%160, %c0_46, %c0_47] : memref<8x2x384xf32, #tpu.memory_space<vmem>>, vector<1x2x384xf32>
    %162 = vector.shape_cast %161 : vector<1x2x384xf32> to vector<2x384xf32>
    %cst_48 = arith.constant dense<0.000000e+00> : vector<2x384xf32>
    %163 = tpu.matmul %153, %3, %cst_48 {dimension_numbers = #tpu.dot_dimension_numbers<[1], [0], [0], [1], [0, 0, 1, 1], [], []>} : vector<2x128xf32>, vector<128x384xf32>, vector<2x384xf32> -> vector<2x384xf32>
    %164 = vector.extract_strided_slice %162 {offsets = [0, 0], sizes = [2, 128], strides = [1, 1]} : vector<2x384xf32> to vector<2x128xf32>
    %165 = vector.extract_strided_slice %163 {offsets = [0, 0], sizes = [2, 128], strides = [1, 1]} : vector<2x384xf32> to vector<2x128xf32>
    %166 = arith.addf %164, %165 : vector<2x128xf32>
    %167 = arith.negf %166 : vector<2x128xf32>
    %168 = math.exp %167 : vector<2x128xf32>
    %cst_49 = arith.constant 1.000000e+00 : f32
    %169 = vector.broadcast %cst_49 : f32 to vector<2x128xf32>
    %170 = arith.addf %169, %168 : vector<2x128xf32>
    %171 = arith.divf %169, %170 : vector<2x128xf32>
    %172 = vector.extract_strided_slice %162 {offsets = [0, 128], sizes = [2, 128], strides = [1, 1]} : vector<2x384xf32> to vector<2x128xf32>
    %173 = vector.extract_strided_slice %163 {offsets = [0, 128], sizes = [2, 128], strides = [1, 1]} : vector<2x384xf32> to vector<2x128xf32>
    %174 = arith.addf %172, %173 : vector<2x128xf32>
    %175 = arith.negf %174 : vector<2x128xf32>
    %176 = math.exp %175 : vector<2x128xf32>
    %cst_50 = arith.constant 1.000000e+00 : f32
    %177 = vector.broadcast %cst_50 : f32 to vector<2x128xf32>
    %178 = arith.addf %177, %176 : vector<2x128xf32>
    %179 = arith.divf %177, %178 : vector<2x128xf32>
    %180 = vector.extract_strided_slice %162 {offsets = [0, 256], sizes = [2, 128], strides = [1, 1]} : vector<2x384xf32> to vector<2x128xf32>
    %181 = vector.extract_strided_slice %163 {offsets = [0, 256], sizes = [2, 128], strides = [1, 1]} : vector<2x384xf32> to vector<2x128xf32>
    %182 = arith.addf %181, %7 : vector<2x128xf32>
    %183 = arith.mulf %171, %182 : vector<2x128xf32>
    %184 = arith.addf %180, %183 : vector<2x128xf32>
    %185 = math.tanh %184 : vector<2x128xf32>
    %cst_51 = arith.constant 1.000000e+00 : f32
    %186 = vector.broadcast %cst_51 : f32 to vector<2x128xf32>
    %187 = arith.subf %186, %179 : vector<2x128xf32>
    %188 = arith.mulf %187, %185 : vector<2x128xf32>
    %189 = arith.mulf %179, %153 : vector<2x128xf32>
    %190 = arith.addf %188, %189 : vector<2x128xf32>
    %cst_52 = arith.constant dense<0.000000e+00> : vector<2x128xf32>
    %191 = tpu.matmul %190, %4, %cst_52 {dimension_numbers = #tpu.dot_dimension_numbers<[1], [0], [0], [1], [0, 0, 1, 1], [], []>} : vector<2x128xf32>, vector<128x128xf32>, vector<2x128xf32> -> vector<2x128xf32>
    %192 = arith.addf %191, %10 : vector<2x128xf32>
    %193 = arith.index_cast %c4_i32 : i32 to index
    %c0_53 = arith.constant 0 : index
    %c0_54 = arith.constant 0 : index
    %194 = vector.load %arg6[%193, %c0_53, %c0_54] : memref<8x2x128xf32, #tpu.memory_space<vmem>>, vector<1x2x128xf32>
    %195 = vector.shape_cast %194 : vector<1x2x128xf32> to vector<2x128xf32>
    %196 = vector.shape_cast %192 : vector<2x128xf32> to vector<1x2x128xf32>
    tpu.vector_store %arg6[%193, %c0_53, %c0_54], %196 {strides = array<i32>} : memref<8x2x128xf32, #tpu.memory_space<vmem>>, vector<1x2x128xf32>,
    %c5_i32 = arith.constant 5 : i32
    %197 = arith.index_cast %c5_i32 : i32 to index
    %c0_55 = arith.constant 0 : index
    %c0_56 = arith.constant 0 : index
    %198 = vector.load %arg1[%197, %c0_55, %c0_56] : memref<8x2x384xf32, #tpu.memory_space<vmem>>, vector<1x2x384xf32>
    %199 = vector.shape_cast %198 : vector<1x2x384xf32> to vector<2x384xf32>
    %cst_57 = arith.constant dense<0.000000e+00> : vector<2x384xf32>
    %200 = tpu.matmul %190, %3, %cst_57 {dimension_numbers = #tpu.dot_dimension_numbers<[1], [0], [0], [1], [0, 0, 1, 1], [], []>} : vector<2x128xf32>, vector<128x384xf32>, vector<2x384xf32> -> vector<2x384xf32>
    %201 = vector.extract_strided_slice %199 {offsets = [0, 0], sizes = [2, 128], strides = [1, 1]} : vector<2x384xf32> to vector<2x128xf32>
    %202 = vector.extract_strided_slice %200 {offsets = [0, 0], sizes = [2, 128], strides = [1, 1]} : vector<2x384xf32> to vector<2x128xf32>
    %203 = arith.addf %201, %202 : vector<2x128xf32>
    %204 = arith.negf %203 : vector<2x128xf32>
    %205 = math.exp %204 : vector<2x128xf32>
    %cst_58 = arith.constant 1.000000e+00 : f32
    %206 = vector.broadcast %cst_58 : f32 to vector<2x128xf32>
    %207 = arith.addf %206, %205 : vector<2x128xf32>
    %208 = arith.divf %206, %207 : vector<2x128xf32>
    %209 = vector.extract_strided_slice %199 {offsets = [0, 128], sizes = [2, 128], strides = [1, 1]} : vector<2x384xf32> to vector<2x128xf32>
    %210 = vector.extract_strided_slice %200 {offsets = [0, 128], sizes = [2, 128], strides = [1, 1]} : vector<2x384xf32> to vector<2x128xf32>
    %211 = arith.addf %209, %210 : vector<2x128xf32>
    %212 = arith.negf %211 : vector<2x128xf32>
    %213 = math.exp %212 : vector<2x128xf32>
    %cst_59 = arith.constant 1.000000e+00 : f32
    %214 = vector.broadcast %cst_59 : f32 to vector<2x128xf32>
    %215 = arith.addf %214, %213 : vector<2x128xf32>
    %216 = arith.divf %214, %215 : vector<2x128xf32>
    %217 = vector.extract_strided_slice %199 {offsets = [0, 256], sizes = [2, 128], strides = [1, 1]} : vector<2x384xf32> to vector<2x128xf32>
    %218 = vector.extract_strided_slice %200 {offsets = [0, 256], sizes = [2, 128], strides = [1, 1]} : vector<2x384xf32> to vector<2x128xf32>
    %219 = arith.addf %218, %7 : vector<2x128xf32>
    %220 = arith.mulf %208, %219 : vector<2x128xf32>
    %221 = arith.addf %217, %220 : vector<2x128xf32>
    %222 = math.tanh %221 : vector<2x128xf32>
    %cst_60 = arith.constant 1.000000e+00 : f32
    %223 = vector.broadcast %cst_60 : f32 to vector<2x128xf32>
    %224 = arith.subf %223, %216 : vector<2x128xf32>
    %225 = arith.mulf %224, %222 : vector<2x128xf32>
    %226 = arith.mulf %216, %190 : vector<2x128xf32>
    %227 = arith.addf %225, %226 : vector<2x128xf32>
    %cst_61 = arith.constant dense<0.000000e+00> : vector<2x128xf32>
    %228 = tpu.matmul %227, %4, %cst_61 {dimension_numbers = #tpu.dot_dimension_numbers<[1], [0], [0], [1], [0, 0, 1, 1], [], []>} : vector<2x128xf32>, vector<128x128xf32>, vector<2x128xf32> -> vector<2x128xf32>
    %229 = arith.addf %228, %10 : vector<2x128xf32>
    %230 = arith.index_cast %c5_i32 : i32 to index
    %c0_62 = arith.constant 0 : index
    %c0_63 = arith.constant 0 : index
    %231 = vector.load %arg6[%230, %c0_62, %c0_63] : memref<8x2x128xf32, #tpu.memory_space<vmem>>, vector<1x2x128xf32>
    %232 = vector.shape_cast %231 : vector<1x2x128xf32> to vector<2x128xf32>
    %233 = vector.shape_cast %229 : vector<2x128xf32> to vector<1x2x128xf32>
    tpu.vector_store %arg6[%230, %c0_62, %c0_63], %233 {strides = array<i32>} : memref<8x2x128xf32, #tpu.memory_space<vmem>>, vector<1x2x128xf32>,
    %c6_i32 = arith.constant 6 : i32
    %234 = arith.index_cast %c6_i32 : i32 to index
    %c0_64 = arith.constant 0 : index
    %c0_65 = arith.constant 0 : index
    %235 = vector.load %arg1[%234, %c0_64, %c0_65] : memref<8x2x384xf32, #tpu.memory_space<vmem>>, vector<1x2x384xf32>
    %236 = vector.shape_cast %235 : vector<1x2x384xf32> to vector<2x384xf32>
    %cst_66 = arith.constant dense<0.000000e+00> : vector<2x384xf32>
    %237 = tpu.matmul %227, %3, %cst_66 {dimension_numbers = #tpu.dot_dimension_numbers<[1], [0], [0], [1], [0, 0, 1, 1], [], []>} : vector<2x128xf32>, vector<128x384xf32>, vector<2x384xf32> -> vector<2x384xf32>
    %238 = vector.extract_strided_slice %236 {offsets = [0, 0], sizes = [2, 128], strides = [1, 1]} : vector<2x384xf32> to vector<2x128xf32>
    %239 = vector.extract_strided_slice %237 {offsets = [0, 0], sizes = [2, 128], strides = [1, 1]} : vector<2x384xf32> to vector<2x128xf32>
    %240 = arith.addf %238, %239 : vector<2x128xf32>
    %241 = arith.negf %240 : vector<2x128xf32>
    %242 = math.exp %241 : vector<2x128xf32>
    %cst_67 = arith.constant 1.000000e+00 : f32
    %243 = vector.broadcast %cst_67 : f32 to vector<2x128xf32>
    %244 = arith.addf %243, %242 : vector<2x128xf32>
    %245 = arith.divf %243, %244 : vector<2x128xf32>
    %246 = vector.extract_strided_slice %236 {offsets = [0, 128], sizes = [2, 128], strides = [1, 1]} : vector<2x384xf32> to vector<2x128xf32>
    %247 = vector.extract_strided_slice %237 {offsets = [0, 128], sizes = [2, 128], strides = [1, 1]} : vector<2x384xf32> to vector<2x128xf32>
    %248 = arith.addf %246, %247 : vector<2x128xf32>
    %249 = arith.negf %248 : vector<2x128xf32>
    %250 = math.exp %249 : vector<2x128xf32>
    %cst_68 = arith.constant 1.000000e+00 : f32
    %251 = vector.broadcast %cst_68 : f32 to vector<2x128xf32>
    %252 = arith.addf %251, %250 : vector<2x128xf32>
    %253 = arith.divf %251, %252 : vector<2x128xf32>
    %254 = vector.extract_strided_slice %236 {offsets = [0, 256], sizes = [2, 128], strides = [1, 1]} : vector<2x384xf32> to vector<2x128xf32>
    %255 = vector.extract_strided_slice %237 {offsets = [0, 256], sizes = [2, 128], strides = [1, 1]} : vector<2x384xf32> to vector<2x128xf32>
    %256 = arith.addf %255, %7 : vector<2x128xf32>
    %257 = arith.mulf %245, %256 : vector<2x128xf32>
    %258 = arith.addf %254, %257 : vector<2x128xf32>
    %259 = math.tanh %258 : vector<2x128xf32>
    %cst_69 = arith.constant 1.000000e+00 : f32
    %260 = vector.broadcast %cst_69 : f32 to vector<2x128xf32>
    %261 = arith.subf %260, %253 : vector<2x128xf32>
    %262 = arith.mulf %261, %259 : vector<2x128xf32>
    %263 = arith.mulf %253, %227 : vector<2x128xf32>
    %264 = arith.addf %262, %263 : vector<2x128xf32>
    %cst_70 = arith.constant dense<0.000000e+00> : vector<2x128xf32>
    %265 = tpu.matmul %264, %4, %cst_70 {dimension_numbers = #tpu.dot_dimension_numbers<[1], [0], [0], [1], [0, 0, 1, 1], [], []>} : vector<2x128xf32>, vector<128x128xf32>, vector<2x128xf32> -> vector<2x128xf32>
    %266 = arith.addf %265, %10 : vector<2x128xf32>
    %267 = arith.index_cast %c6_i32 : i32 to index
    %c0_71 = arith.constant 0 : index
    %c0_72 = arith.constant 0 : index
    %268 = vector.load %arg6[%267, %c0_71, %c0_72] : memref<8x2x128xf32, #tpu.memory_space<vmem>>, vector<1x2x128xf32>
    %269 = vector.shape_cast %268 : vector<1x2x128xf32> to vector<2x128xf32>
    %270 = vector.shape_cast %266 : vector<2x128xf32> to vector<1x2x128xf32>
    tpu.vector_store %arg6[%267, %c0_71, %c0_72], %270 {strides = array<i32>} : memref<8x2x128xf32, #tpu.memory_space<vmem>>, vector<1x2x128xf32>,
    %c7_i32 = arith.constant 7 : i32
    %271 = arith.index_cast %c7_i32 : i32 to index
    %c0_73 = arith.constant 0 : index
    %c0_74 = arith.constant 0 : index
    %272 = vector.load %arg1[%271, %c0_73, %c0_74] : memref<8x2x384xf32, #tpu.memory_space<vmem>>, vector<1x2x384xf32>
    %273 = vector.shape_cast %272 : vector<1x2x384xf32> to vector<2x384xf32>
    %cst_75 = arith.constant dense<0.000000e+00> : vector<2x384xf32>
    %274 = tpu.matmul %264, %3, %cst_75 {dimension_numbers = #tpu.dot_dimension_numbers<[1], [0], [0], [1], [0, 0, 1, 1], [], []>} : vector<2x128xf32>, vector<128x384xf32>, vector<2x384xf32> -> vector<2x384xf32>
    %275 = vector.extract_strided_slice %273 {offsets = [0, 0], sizes = [2, 128], strides = [1, 1]} : vector<2x384xf32> to vector<2x128xf32>
    %276 = vector.extract_strided_slice %274 {offsets = [0, 0], sizes = [2, 128], strides = [1, 1]} : vector<2x384xf32> to vector<2x128xf32>
    %277 = arith.addf %275, %276 : vector<2x128xf32>
    %278 = arith.negf %277 : vector<2x128xf32>
    %279 = math.exp %278 : vector<2x128xf32>
    %cst_76 = arith.constant 1.000000e+00 : f32
    %280 = vector.broadcast %cst_76 : f32 to vector<2x128xf32>
    %281 = arith.addf %280, %279 : vector<2x128xf32>
    %282 = arith.divf %280, %281 : vector<2x128xf32>
    %283 = vector.extract_strided_slice %273 {offsets = [0, 128], sizes = [2, 128], strides = [1, 1]} : vector<2x384xf32> to vector<2x128xf32>
    %284 = vector.extract_strided_slice %274 {offsets = [0, 128], sizes = [2, 128], strides = [1, 1]} : vector<2x384xf32> to vector<2x128xf32>
    %285 = arith.addf %283, %284 : vector<2x128xf32>
    %286 = arith.negf %285 : vector<2x128xf32>
    %287 = math.exp %286 : vector<2x128xf32>
    %cst_77 = arith.constant 1.000000e+00 : f32
    %288 = vector.broadcast %cst_77 : f32 to vector<2x128xf32>
    %289 = arith.addf %288, %287 : vector<2x128xf32>
    %290 = arith.divf %288, %289 : vector<2x128xf32>
    %291 = vector.extract_strided_slice %273 {offsets = [0, 256], sizes = [2, 128], strides = [1, 1]} : vector<2x384xf32> to vector<2x128xf32>
    %292 = vector.extract_strided_slice %274 {offsets = [0, 256], sizes = [2, 128], strides = [1, 1]} : vector<2x384xf32> to vector<2x128xf32>
    %293 = arith.addf %292, %7 : vector<2x128xf32>
    %294 = arith.mulf %282, %293 : vector<2x128xf32>
    %295 = arith.addf %291, %294 : vector<2x128xf32>
    %296 = math.tanh %295 : vector<2x128xf32>
    %cst_78 = arith.constant 1.000000e+00 : f32
    %297 = vector.broadcast %cst_78 : f32 to vector<2x128xf32>
    %298 = arith.subf %297, %290 : vector<2x128xf32>
    %299 = arith.mulf %298, %296 : vector<2x128xf32>
    %300 = arith.mulf %290, %264 : vector<2x128xf32>
    %301 = arith.addf %299, %300 : vector<2x128xf32>
    %cst_79 = arith.constant dense<0.000000e+00> : vector<2x128xf32>
    %302 = tpu.matmul %301, %4, %cst_79 {dimension_numbers = #tpu.dot_dimension_numbers<[1], [0], [0], [1], [0, 0, 1, 1], [], []>} : vector<2x128xf32>, vector<128x128xf32>, vector<2x128xf32> -> vector<2x128xf32>
    %303 = arith.addf %302, %10 : vector<2x128xf32>
    %304 = arith.index_cast %c7_i32 : i32 to index
    %c0_80 = arith.constant 0 : index
    %c0_81 = arith.constant 0 : index
    %305 = vector.load %arg6[%304, %c0_80, %c0_81] : memref<8x2x128xf32, #tpu.memory_space<vmem>>, vector<1x2x128xf32>
    %306 = vector.shape_cast %305 : vector<1x2x128xf32> to vector<2x128xf32>
    %307 = vector.shape_cast %303 : vector<2x128xf32> to vector<1x2x128xf32>
    tpu.vector_store %arg6[%304, %c0_80, %c0_81], %307 {strides = array<i32>} : memref<8x2x128xf32, #tpu.memory_space<vmem>>, vector<1x2x128xf32>,
    %c8_i32 = arith.constant 8 : i32
    %c0_82 = arith.constant 0 : index
    %c0_83 = arith.constant 0 : index
    %308 = vector.load %arg8[%c0_82, %c0_83] : memref<2x128xf32, #tpu.memory_space<vmem>>, vector<2x128xf32>
    tpu.vector_store %arg8[%c0_82, %c0_83], %301 {strides = array<i32>} : memref<2x128xf32, #tpu.memory_space<vmem>>, vector<2x128xf32>,
    %c0_84 = arith.constant 0 : index
    %c0_85 = arith.constant 0 : index
    %309 = vector.load %arg7[%c0_84, %c0_85] : memref<2x128xf32, #tpu.memory_space<vmem>>, vector<2x128xf32>
    tpu.vector_store %arg7[%c0_84, %c0_85], %301 {strides = array<i32>} : memref<2x128xf32, #tpu.memory_space<vmem>>, vector<2x128xf32>,
    return
  }
  func.func @transform_0(%arg0: i32) -> (i32, i32, i32) {
    %c0_i32 = arith.constant 0 : i32
    %c0_i32_0 = arith.constant 0 : i32
    %c0_i32_1 = arith.constant 0 : i32
    return %arg0, %c0_i32, %c0_i32_0 : i32, i32, i32
  }
  func.func @transform_1(%arg0: i32) -> (i32, i32) {
    %c0_i32 = arith.constant 0 : i32
    %c0_i32_0 = arith.constant 0 : i32
    %c0_i32_1 = arith.constant 0 : i32
    return %c0_i32, %c0_i32_0 : i32, i32
  }
  func.func @transform_2(%arg0: i32) -> (i32, i32) {
    %c0_i32 = arith.constant 0 : i32
    %c0_i32_0 = arith.constant 0 : i32
    %c0_i32_1 = arith.constant 0 : i32
    return %c0_i32, %c0_i32_0 : i32, i32
  }
  func.func @transform_3(%arg0: i32) -> (i32, i32) {
    %c0_i32 = arith.constant 0 : i32
    %c0_i32_0 = arith.constant 0 : i32
    %c0_i32_1 = arith.constant 0 : i32
    return %c0_i32, %c0_i32_0 : i32, i32
  }
  func.func @transform_4(%arg0: i32) -> (i32, i32) {
    %c0_i32 = arith.constant 0 : i32
    %c0_i32_0 = arith.constant 0 : i32
    %c0_i32_1 = arith.constant 0 : i32
    return %c0_i32, %c0_i32_0 : i32, i32
  }
  func.func @transform_5(%arg0: i32) -> (i32, i32, i32) {
    %c0_i32 = arith.constant 0 : i32
    %c0_i32_0 = arith.constant 0 : i32
    %c0_i32_1 = arith.constant 0 : i32
    return %arg0, %c0_i32, %c0_i32_0 : i32, i32, i32
  }
  func.func @transform_6(%arg0: i32) -> (i32, i32) {
    %c0_i32 = arith.constant 0 : i32
    %c0_i32_0 = arith.constant 0 : i32
    %c0_i32_1 = arith.constant 0 : i32
    return %c0_i32, %c0_i32_0 : i32, i32
  }
}

</mosaic_0001>

<bundles_post_ra>
// kernel: gru_prepare_forward.1
= control target key start
LH: loop header
LB: loop body
LE: loop exit
PB: predicated region body
PF: predicated region fallthrough
CT: control target
= control target key end

     0   :  { %v1383_v3 = vmov 0.0   ;;  %s2711_s1 = inlined_call_operand.vmem [shape: f32[128,384], index: 1, kind: input, shape index: {}]   ;;  %s2712_s2 = inlined_call_operand.vmem [shape: f32[1,128], index: 2, kind: input, shape index: {}]   ;;  %s2713_s3 = inlined_call_operand.vmem [shape: f32[128,128], index: 3, kind: input, shape index: {}]   ;;  %s2714_s0 = inlined_call_operand.vmem [shape: f32[8,2,384], index: 0, kind: input, shape index: {}]   ;;  %s2715_s4 = inlined_call_operand.vmem [shape: f32[1,128], index: 4, kind: input, shape index: {}]   ;;  %s2716_s5 = inlined_call_operand.vmem [shape: f32[8,2,128], index: 5, kind: output, shape index: {0}]   ;;  %s2717_s6 = inlined_call_operand.vmem [shape: f32[2,128], index: 6, kind: output, shape index: {1}]  }
   0x1   :  { %v1422_v0 = vld [vmem:[%s2711_s1 + $0x168] sm:$0xff]  ;;  %v1427_v1 = vld [vmem:[%s2711_s1 + $0x170] sm:$0xff]  ;;  %26 = vst [vmem:[#allocation2] sm:$0x3] %v1383_v3  ;;  %v1439_v4 = vld [vmem:[%s2711_s1 + $0x158] sm:$0xff] }
   0x2   :  { %v1432_v2 = vld [vmem:[%s2711_s1 + $0x150] sm:$0xff]  ;;  %101 = vmatpush.msra.mxu0 %v1422_v0  ;;  %121 = vmatpush.msra.mxu1 %v1427_v1  ;;  %v1444_v5 = vld [vmem:[%s2711_s1 + $0x138] sm:$0xff]  ;;  %v1449_v6 = vld [vmem:[%s2711_s1 + $0x140] sm:$0xff] }
   0x3   :  { %v1456_v7 = vld [vmem:[%s2711_s1 + $0x120] sm:$0xff]  ;;  %v1461_v8 = vld [vmem:[%s2711_s1 + $0x128] sm:$0xff]  ;;  %v1473_v10 = vld [vmem:[%s2711_s1 + $0x110] sm:$0xff] }
   0x4   :  { %102 = vmatpush.msra.mxu0 %v1432_v2  ;;  %122 = vmatpush.msra.mxu1 %v1439_v4  ;;  %v1468_v9 = vld [vmem:[%s2711_s1 + $0x108] sm:$0xff]  ;;  %v1480_v11 = vld [vmem:[%s2711_s1 + $0xf0] sm:$0xff]  ;;  %v1485_v12 = vld [vmem:[%s2711_s1 + $0xf8] sm:$0xff] }
   0x5   :  { %v1490_v13 = vld [vmem:[%s2711_s1 + $0x178] sm:$0xff]  ;;  %v1497_v14 = vld [vmem:[%s2711_s1 + $0x160] sm:$0xff]  ;;  %v1515_v17 = vld [vmem:[%s2711_s1 + $0x148] sm:$0xff] }
   0x6   :  { %103 = vmatpush.msra.mxu0 %v1444_v5  ;;  %123 = vmatpush.msra.mxu1 %v1449_v6  ;;  %v1502_v15 = vld [vmem:[%s2711_s1 + $0xd8] sm:$0xff]  ;;  %v1507_v16 = vld [vmem:[%s2711_s1 + $0xe0] sm:$0xff]  ;;  %v1525_v19 = vld [vmem:[%s2711_s1 + $0xc8] sm:$0xff] }
   0x7   :  { %141 = vmatpush.msra.mxu2 %v1490_v13  ;;  %v1520_v18 = vld [vmem:[%s2711_s1 + $0xc0] sm:$0xff]  ;;  %v1533_v20 = vld [vmem:[%s2711_s1 + $0x130] sm:$0xff]  ;;  %v1538_v21 = vld [vmem:[%s2711_s1 + $0xa8] sm:$0xff] }
   0x8   :  { %104 = vmatpush.msra.mxu0 %v1456_v7  ;;  %124 = vmatpush.msra.mxu1 %v1461_v8  ;;  %v1543_v22 = vld [vmem:[%s2711_s1 + $0xb0] sm:$0xff]  ;;  %v1551_v23 = vld [vmem:[%s2711_s1 + $0x118] sm:$0xff]  ;;  %v1569_v26 = vld [vmem:[%s2711_s1 + $0x100] sm:$0xff] }
   0x9   :  { %142 = vmatpush.msra.mxu2 %v1497_v14  ;;  %v1556_v24 = vld [vmem:[%s2711_s1 + $0x90] sm:$0xff]  ;;  %v1561_v25 = vld [vmem:[%s2711_s1 + $0x98] sm:$0xff]  ;;  %v1579_v28 = vld [vmem:[%s2711_s1 + $0x80] sm:$0xff] }
   0xa   :  { %105 = vmatpush.msra.mxu0 %v1468_v9  ;;  %125 = vmatpush.msra.mxu1 %v1473_v10  ;;  %2819 = vst [vmem:[#allocation3_spill] sm:$0xff] %v1556_v24  ;;  %v1574_v27 = vld [vmem:[%s2711_s1 + $0x78] sm:$0xff]  ;;  %v1587_v29 = vld [vmem:[%s2711_s1 + $0xe8] sm:$0xff]  ;;  %v1592_v30 = vld [vmem:[%s2711_s1 + $0x60] sm:$0xff] }
   0xb   :  { %143 = vmatpush.msra.mxu2 %v1515_v17  ;;  %2820 = vst [vmem:[#allocation4_spill] sm:$0xff] %v1561_v25  ;;  %v1597_v31 = vld [vmem:[%s2711_s1 + $0x68] sm:$0xff]  ;;  %v1605_v32 = vld [vmem:[%s2711_s1 + $0xd0] sm:$0xff]  ;;  %v1623_v35 = vld [vmem:[%s2711_s1 + $0xb8] sm:$0xff] }
   0xc   :  { %106 = vmatpush.msra.mxu0 %v1480_v11  ;;  %126 = vmatpush.msra.mxu1 %v1485_v12  ;;  %2821 = vst [vmem:[#allocation5_spill] sm:$0xff] %v1574_v27  ;;  %v1610_v33 = vld [vmem:[%s2711_s1 + $0x48] sm:$0xff]  ;;  %v1615_v34 = vld [vmem:[%s2711_s1 + $0x50] sm:$0xff]  ;;  %v1633_v37 = vld [vmem:[%s2711_s1 + $0x38] sm:$0xff] }
   0xd   :  { %144 = vmatpush.msra.mxu2 %v1533_v20  ;;  %2822 = vst [vmem:[#allocation6_spill] sm:$0xff] %v1579_v28  ;;  %v1628_v36 = vld [vmem:[%s2711_s1 + $0x30] sm:$0xff]  ;;  %v1641_v38 = vld [vmem:[%s2711_s1 + $0xa0] sm:$0xff]  ;;  %v1646_v39 = vld [vmem:[%s2711_s1 + $0x18] sm:$0xff] }
   0xe   :  { %107 = vmatpush.msra.mxu0 %v1502_v15  ;;  %127 = vmatpush.msra.mxu1 %v1507_v16  ;;  %2823 = vst [vmem:[#allocation7_spill] sm:$0xff] %v1592_v30  ;;  %v1651_v40 = vld [vmem:[%s2711_s1 + $0x20] sm:$0xff]  ;;  %v1659_v41 = vld [vmem:[%s2711_s1 + $0x88] sm:$0xff]  ;;  %v1680_v45 = vld [vmem:[%s2711_s1 + $0x70] sm:$0xff] }
   0xf   :  { %145 = vmatpush.msra.mxu2 %v1551_v23  ;;  %2824 = vst [vmem:[#allocation8_spill] sm:$0xff] %v1597_v31  ;;  %v1664_v42 = vld [vmem:[%s2711_s1] sm:$0xff]  ;;  %v1669_v43 = vld [vmem:[%s2711_s1 + $0x8] sm:$0xff]  ;;  %v1689_v46 = vld [vmem:[%s2711_s1 + $0x58] sm:$0xff] }
  0x10   :  { %108 = vmatpush.msra.mxu0 %v1520_v18  ;;  %128 = vmatpush.msra.mxu1 %v1525_v19  ;;  %2825 = vst [vmem:[#allocation9_spill] sm:$0xff] %v1610_v33  ;;  %v1674_v44 = vld [vmem:[#allocation2] sm:$0x3]  ;;  %v1704_v48 = vld [vmem:[%s2711_s1 + $0x28] sm:$0xff]  ;;  %v1712_v49 = vld [vmem:[%s2711_s1 + $0x10] sm:$0xff] }
  0x11   :  { %146 = vmatpush.msra.mxu2 %v1569_v26  ;;  %2826 = vst [vmem:[#allocation10_spill] sm:$0xff] %v1615_v34  ;;  %v1696_v47 = vld [vmem:[%s2711_s1 + $0x40] sm:$0xff]  ;;  %v1811_v50 = vld [vmem:[%s2713_s3 + $0x78] sm:$0xff]  ;;  %v1817_v51 = vld [vmem:[%s2713_s3 + $0x70] sm:$0xff] }
  0x12   :  { %109 = vmatpush.msra.mxu0 %v1538_v21  ;;  %129 = vmatpush.msra.mxu1 %v1543_v22  ;;  %2827 = vst [vmem:[#allocation11_spill] sm:$0xff] %v1628_v36  ;;  %v1823_v52 = vld [vmem:[%s2713_s3 + $0x68] sm:$0xff]  ;;  %v1829_v53 = vld [vmem:[%s2713_s3 + $0x60] sm:$0xff]  ;;  %v1835_v54 = vld [vmem:[%s2713_s3 + $0x58] sm:$0xff] }
  0x13   :  { %147 = vmatpush.msra.mxu2 %v1587_v29  ;;  %2828 = vst [vmem:[#allocation12_spill] sm:$0xff] %v1633_v37  ;;  %214 = vmatpush.msra.mxu3 %v1811_v50  ;;  %v1841_v55 = vld [vmem:[%s2713_s3 + $0x50] sm:$0xff]  ;;  %v1846_v56 = vld [vmem:[%s2714_s0] sm:$0x3f]  ;;  %v1852_v57 = vld [vmem:[%s2713_s3 + $0x48] sm:$0xff] }
  0x14   :  { %110 = vmatpush.msra.mxu0 %v1556_v24  ;;  %130 = vmatpush.msra.mxu1 %v1561_v25  ;;  %2829 = vst [vmem:[#allocation13_spill] sm:$0xff] %v1641_v38  ;;  %v182_v58 = vrot.slane %v1846_v56, 2  ;;  %v1859_v59 = vld [vmem:[%s2713_s3 + $0x40] sm:$0xff]  ;;  %v1865_v60 = vld [vmem:[%s2713_s3 + $0x38] sm:$0xff] }
  0x15   :  { %148 = vmatpush.msra.mxu2 %v1605_v32  ;;  %2830 = vst [vmem:[#allocation14_spill] sm:$0xff] %v1646_v39  ;;  %215 = vmatpush.msra.mxu3 %v1817_v51 }
  0x16   :  { %111 = vmatpush.msra.mxu0 %v1574_v27  ;;  %131 = vmatpush.msra.mxu1 %v1579_v28  ;;  %2831 = vst [vmem:[#allocation15_spill] sm:$0xff] %v1651_v40 }
  0x17   :  { %149 = vmatpush.msra.mxu2 %v1623_v35  ;;  %2832 = vst [vmem:[#allocation16_spill] sm:$0xff] %v1659_v41  ;;  %216 = vmatpush.msra.mxu3 %v1823_v52 }
  0x18   :  { %112 = vmatpush.msra.mxu0 %v1592_v30  ;;  %132 = vmatpush.msra.mxu1 %v1597_v31  ;;  %2833 = vst [vmem:[#allocation17_spill] sm:$0xff] %v1664_v42 }
  0x19   :  { %2834 = vst [vmem:[#allocation18_spill] sm:$0xff] %v1669_v43  ;;  %150 = vmatpush.msra.mxu2 %v1641_v38  ;;  %217 = vmatpush.msra.mxu3 %v1829_v53 }
  0x1a   :  { %113 = vmatpush.msra.mxu0 %v1610_v33  ;;  %133 = vmatpush.msra.mxu1 %v1615_v34  ;;  %2835 = vst [vmem:[#allocation19_spill] sm:$0xff] %v1680_v45 }
  0x1b   :  { %151 = vmatpush.msra.mxu2 %v1659_v41  ;;  %2836 = vst [vmem:[#allocation20_spill] sm:$0xff] %v1689_v46  ;;  %218 = vmatpush.msra.mxu3 %v1835_v54 }
  0x1c   :  { %114 = vmatpush.msra.mxu0 %v1628_v36  ;;  %134 = vmatpush.msra.mxu1 %v1633_v37  ;;  %2837 = vst [vmem:[#allocation21_spill] sm:$0xff] %v1696_v47 }
  0x1d   :  { %152 = vmatpush.msra.mxu2 %v1680_v45  ;;  %2838 = vst [vmem:[#allocation22_spill] sm:$0xff] %v1704_v48  ;;  %219 = vmatpush.msra.mxu3 %v1841_v55 }
  0x1e   :  { %115 = vmatpush.msra.mxu0 %v1646_v39  ;;  %135 = vmatpush.msra.mxu1 %v1651_v40  ;;  %2839 = vst [vmem:[#allocation23_spill] sm:$0xff] %v1712_v49 }
  0x1f   :  { %153 = vmatpush.msra.mxu2 %v1689_v46  ;;  %220 = vmatpush.msra.mxu3 %v1852_v57 }
  0x20   :  { %116 = vmatpush.msra.mxu0 %v1664_v42  ;;  %136 = vmatpush.msra.mxu1 %v1669_v43 }
  0x21   :  { %117 = vmatmul.f32.vlgmr.msra.gmra.mxu0 %v1674_v44  ;;  %137 = vmatmul.f32.vlgmr.msra.gmra.mxu1 %v1674_v44 }
  0x22   :  { %237 = vmatpush.msrb.mxu0 %v1422_v0  ;;  %257 = vmatpush.msrb.mxu1 %v1427_v1 }
  0x23   :  { %154 = vmatpush.msra.mxu2 %v1696_v47  ;;  %221 = vmatpush.msra.mxu3 %v1859_v59 }
  0x24   :  { %238 = vmatpush.msrb.mxu0 %v1432_v2  ;;  %258 = vmatpush.msrb.mxu1 %v1439_v4 }
  0x25   :  { %155 = vmatpush.msra.mxu2 %v1704_v48  ;;  %222 = vmatpush.msra.mxu3 %v1865_v60 }
  0x26   :  { %239 = vmatpush.msrb.mxu0 %v1444_v5  ;;  %259 = vmatpush.msrb.mxu1 %v1449_v6 }
  0x27   :  { %156 = vmatpush.msra.mxu2 %v1712_v49 }
  0x28   :  { %240 = vmatpush.msrb.mxu0 %v1456_v7  ;;  %260 = vmatpush.msrb.mxu1 %v1461_v8 }
  0x29   :  { %157 = vmatmul.f32.vlgmr.msra.gmra.mxu2 %v1674_v44 }
  0x2a   :  { %241 = vmatpush.msrb.mxu0 %v1468_v9  ;;  %261 = vmatpush.msrb.mxu1 %v1473_v10 }
  0x2b   :  { %277 = vmatpush.msrb.mxu2 %v1490_v13 }
  0x2c   :  { %242 = vmatpush.msrb.mxu0 %v1480_v11  ;;  %262 = vmatpush.msrb.mxu1 %v1485_v12 }
  0x2d   :  { %278 = vmatpush.msrb.mxu2 %v1497_v14 }
  0x2e   :  { %243 = vmatpush.msrb.mxu0 %v1502_v15  ;;  %263 = vmatpush.msrb.mxu1 %v1507_v16 }
  0x2f   :  { %279 = vmatpush.msrb.mxu2 %v1515_v17 }
  0x30   :  { %244 = vmatpush.msrb.mxu0 %v1520_v18  ;;  %264 = vmatpush.msrb.mxu1 %v1525_v19 }
  0x31   :  { %280 = vmatpush.msrb.mxu2 %v1533_v20 }
  0x32   :  { %245 = vmatpush.msrb.mxu0 %v1538_v21  ;;  %265 = vmatpush.msrb.mxu1 %v1543_v22 }
  0x33   :  { %281 = vmatpush.msrb.mxu2 %v1551_v23 }
  0x34   :  { %246 = vmatpush.msrb.mxu0 %v1556_v24  ;;  %266 = vmatpush.msrb.mxu1 %v1561_v25 }
  0x35   :  { %282 = vmatpush.msrb.mxu2 %v1569_v26 }
  0x36   :  { %247 = vmatpush.msrb.mxu0 %v1574_v27  ;;  %267 = vmatpush.msrb.mxu1 %v1579_v28 }
  0x37   :  { %283 = vmatpush.msrb.mxu2 %v1587_v29 }
  0x38   :  { %248 = vmatpush.msrb.mxu0 %v1592_v30  ;;  %268 = vmatpush.msrb.mxu1 %v1597_v31 }
  0x39   :  { %284 = vmatpush.msrb.mxu2 %v1605_v32 }
  0x3a   :  { %249 = vmatpush.msrb.mxu0 %v1610_v33  ;;  %269 = vmatpush.msrb.mxu1 %v1615_v34 }
  0x3b   :  { %285 = vmatpush.msrb.mxu2 %v1623_v35 }
  0x3c   :  { %250 = vmatpush.msrb.mxu0 %v1628_v36  ;;  %270 = vmatpush.msrb.mxu1 %v1633_v37 }
  0x3d   :  { %286 = vmatpush.msrb.mxu2 %v1641_v38 }
  0x3e   :  { %251 = vmatpush.msrb.mxu0 %v1646_v39  ;;  %271 = vmatpush.msrb.mxu1 %v1651_v40 }
  0x3f   :  { %287 = vmatpush.msrb.mxu2 %v1659_v41 }
  0x40   :  { %252 = vmatpush.msrb.mxu0 %v1664_v42  ;;  %272 = vmatpush.msrb.mxu1 %v1669_v43 }
  0x41   :  { %288 = vmatpush.msrb.mxu2 %v1680_v45 }
  0x42   :  { %374 = vmatpush.msra.mxu0 %v1422_v0  ;;  %394 = vmatpush.msra.mxu1 %v1427_v1 }
  0x43   :  { %289 = vmatpush.msrb.mxu2 %v1689_v46 }
  0x44   :  { %375 = vmatpush.msra.mxu0 %v1432_v2  ;;  %395 = vmatpush.msra.mxu1 %v1439_v4 }
  0x45   :  { %290 = vmatpush.msrb.mxu2 %v1696_v47 }
  0x46   :  { %376 = vmatpush.msra.mxu0 %v1444_v5  ;;  %396 = vmatpush.msra.mxu1 %v1449_v6 }
  0x47   :  { %291 = vmatpush.msrb.mxu2 %v1704_v48 }
  0x48   :  { %377 = vmatpush.msra.mxu0 %v1456_v7  ;;  %397 = vmatpush.msra.mxu1 %v1461_v8 }
  0x49   :  { %292 = vmatpush.msrb.mxu2 %v1712_v49 }
  0x4a   :  { %378 = vmatpush.msra.mxu0 %v1468_v9  ;;  %398 = vmatpush.msra.mxu1 %v1473_v10 }
  0x4b   :  { %414 = vmatpush.msra.mxu2 %v1490_v13 }
  0x4c   :  { %379 = vmatpush.msra.mxu0 %v1480_v11  ;;  %399 = vmatpush.msra.mxu1 %v1485_v12 }
  0x4d   :  { %415 = vmatpush.msra.mxu2 %v1497_v14 }
  0x4e   :  { %380 = vmatpush.msra.mxu0 %v1502_v15  ;;  %400 = vmatpush.msra.mxu1 %v1507_v16 }
  0x4f   :  { %416 = vmatpush.msra.mxu2 %v1515_v17 }
  0x50   :  { %381 = vmatpush.msra.mxu0 %v1520_v18  ;;  %401 = vmatpush.msra.mxu1 %v1525_v19 }
  0x51   :  { %417 = vmatpush.msra.mxu2 %v1533_v20 }
  0x52   :  { %382 = vmatpush.msra.mxu0 %v1538_v21  ;;  %402 = vmatpush.msra.mxu1 %v1543_v22 }
  0x53   :  { %418 = vmatpush.msra.mxu2 %v1551_v23 }
  0x54   :  { %383 = vmatpush.msra.mxu0 %v1556_v24  ;;  %403 = vmatpush.msra.mxu1 %v1561_v25 }
  0x55   :  { %419 = vmatpush.msra.mxu2 %v1569_v26 }
  0x56   :  { %384 = vmatpush.msra.mxu0 %v1574_v27  ;;  %404 = vmatpush.msra.mxu1 %v1579_v28 }
  0x57   :  { %420 = vmatpush.msra.mxu2 %v1587_v29 }
  0x58   :  { %385 = vmatpush.msra.mxu0 %v1592_v30  ;;  %405 = vmatpush.msra.mxu1 %v1597_v31 }
  0x59   :  { %421 = vmatpush.msra.mxu2 %v1605_v32 }
  0x5a   :  { %386 = vmatpush.msra.mxu0 %v1610_v33  ;;  %406 = vmatpush.msra.mxu1 %v1615_v34 }
  0x5b   :  { %422 = vmatpush.msra.mxu2 %v1623_v35 }
  0x5c   :  { %387 = vmatpush.msra.mxu0 %v1628_v36  ;;  %407 = vmatpush.msra.mxu1 %v1633_v37 }
  0x5d   :  { %423 = vmatpush.msra.mxu2 %v1641_v38 }
  0x5e   :  { %388 = vmatpush.msra.mxu0 %v1646_v39  ;;  %408 = vmatpush.msra.mxu1 %v1651_v40 }
  0x5f   :  { %424 = vmatpush.msra.mxu2 %v1659_v41 }
  0x60   :  { %389 = vmatpush.msra.mxu0 %v1664_v42  ;;  %409 = vmatpush.msra.mxu1 %v1669_v43 }
  0x61   :  { %425 = vmatpush.msra.mxu2 %v1680_v45 }
  0x63   :  { %426 = vmatpush.msra.mxu2 %v1689_v46 }
  0x65   :  { %427 = vmatpush.msra.mxu2 %v1696_v47 }
  0x67   :  { %428 = vmatpush.msra.mxu2 %v1704_v48  ;;  %v1878_v48 = vld [vmem:[%s2713_s3 + $0x28] sm:$0xff] }
  0x68   :  { %2840 = vst [vmem:[#allocation24_spill] sm:$0xff] %v1878_v48 }
  0x69   :  { %429 = vmatpush.msra.mxu2 %v1712_v49  ;;  %v1872_v49 = vld [vmem:[%s2713_s3 + $0x30] sm:$0xff] }
  0x6a   :  { %223 = vmatpush.msra.mxu3 %v1872_v49 }
  0x6c   :  { %224 = vmatpush.msra.mxu3 %v1878_v48 }
  0x9e   :  { %v118_v61 = vpop.f32.mrf.mxu0  ;;  %v138_v62 = vpop.f32.mrf.mxu1 }
  0x9f   :  { %v161_v63 = vadd.f32 %v118_v61, %v1846_v56  ;;  %v184_v3 = vadd.f32 %v182_v58, %v138_v62  ;;  %v1884_v58 = vld [vmem:[%s2713_s3 + $0x20] sm:$0xff]  ;;  %v1890_v61 = vld [vmem:[%s2713_s3 + $0x18] sm:$0xff]  ;;  %v1896_v62 = vld [vmem:[%s2713_s3 + $0x10] sm:$0xff] }
  0xa0   :  { %2841 = vst [vmem:[#allocation25_spill] sm:$0xff] %v1884_v58  ;;  %225 = vmatpush.msra.mxu3 %v1884_v58 }
  0xa1   :  { %v1204_v43 = vmul.f32 -1.442695, %v161_v63  ;;  %v1205_v42 = vmul.f32 -1.442695, %v184_v3  ;;  %2842 = vst [vmem:[#allocation26_spill] sm:$0xff] %v1890_v61  ;;  %v1907_v63 = vld [vmem:[%s2713_s3] sm:$0xff] }
  0xa2   :  { %226 = vmatpush.msra.mxu3 %v1890_v61  ;;  %2843 = vst [vmem:[#allocation27_spill] sm:$0xff] %v1896_v62 }
  0xa3   :  { %1237 = vpow2.f32 %v1204_v43  ;;  %2845 = vst [vmem:[#allocation29_spill] sm:$0xff] %v1907_v63 }
  0xa4   :  { %1239 = vpow2.f32 %v1205_v42  ;;  %227 = vmatpush.msra.mxu3 %v1896_v62  ;;  %v1902_v42 = vld [vmem:[%s2713_s3 + $0x8] sm:$0xff] }
  0xa5   :  { %2844 = vst [vmem:[#allocation28_spill] sm:$0xff] %v1902_v42 }
  0xa6   :  { %228 = vmatpush.msra.mxu3 %v1902_v42 }
  0xa8   :  { %229 = vmatpush.msra.mxu3 %v1907_v63 }
  0xa9   :  { %v1238_v43 = vpop.eup %1237 }
  0xaa   :  { %v1240_v3 = vpop.eup %1239  ;;  %v165_v40 = vadd.f32 1.0, %v1238_v43  ;;  %350 = vmatpush.msrb.mxu3 %v1811_v50  ;;  %v1918_v43 = vld [vmem:[%s2712_s2] ss:$0 sm:$0xff] }
  0xab   :  { %v188_v39 = vadd.f32 1.0, %v1240_v3 }
  0xac   :  { %1241 = vrcp.f32 %v165_v40  ;;  %351 = vmatpush.msrb.mxu3 %v1817_v51  ;;  %v158_v33 = vpop.f32.mrf.mxu2  ;;  %v177_v45 = vand.u32 2147483648, %v165_v40  ;;  %v175_v30 = vand.u32 2147483647, %v165_v40  ;;  %vm171_vm1 = vweird.f32 %v165_v40 }
  0xad   :  { %1243 = vrcp.f32 %v188_v39  ;;  %v204_v27 = vadd.f32 %v1918_v43, %v158_v33  ;;  %vm194_vm4 = vweird.f32 %v188_v39  ;;  %v200_v24 = vand.u32 2147483648, %v188_v39 }
  0xae   :  { %352 = vmatpush.msrb.mxu3 %v1823_v52  ;;  %v178_v38 = vor.u32 1.1754944e-38, %v177_v45  ;;  %vm176_vm3 = vcmp.eq.f32.partialorder %v175_v30, 8.507059e+37 }
  0xaf   :  { %v201_v45 = vor.u32 1.1754944e-38, %v200_v24  ;;  %v2846_v24 = vld [vmem:[#allocation3_spill] sm:$0xff] }
  0xb0   :  { %353 = vmatpush.msrb.mxu3 %v1829_v53 }
  0xb2   :  { %v1242_v47 = vpop.eup %1241  ;;  %354 = vmatpush.msrb.mxu3 %v1835_v54 }
  0xb3   :  { %v1244_v37 = vpop.eup %1243  ;;  %v167_v36 = vmul.f32 %v1242_v47, %v165_v40  ;;  %vm172_vm0 = vweird.f32 %v1242_v47 }
  0xb4   :  { %v190_v46 = vmul.f32 %v1244_v37, %v188_v39  ;;  %355 = vmatpush.msrb.mxu3 %v1841_v55  ;;  %vm173_vm2 = vmor %vm171_vm1, %vm172_vm0  ;;  %vm195_vm5 = vweird.f32 %v1244_v37 }
  0xb5   :  { %v168_v3 = vsub.f32 1.0, %v167_v36  ;;  %v206_v36 = vrot.slane %v1846_v56, 4  ;;  %vm196_vm6 = vmor %vm194_vm4, %vm195_vm5  ;;  %v2851_v56 = vld [vmem:[#allocation16_spill] sm:$0xff] }
  0xb6   :  { %v191_v34 = vsub.f32 1.0, %v190_v46  ;;  %356 = vmatpush.msrb.mxu3 %v1852_v57 }
  0xb7   :  { %v169_v31 = vmul.f32 %v1242_v47, %v168_v3 }
  0xb8   :  { %v192_v41 = vmul.f32 %v1244_v37, %v191_v34  ;;  %357 = vmatpush.msrb.mxu3 %v1859_v59 }
  0xb9   :  { %v170_v28 = vadd.f32 %v1242_v47, %v169_v31  ;;  %v198_v31 = vand.u32 2147483647, %v188_v39  ;;  %v2847_v39 = vld [vmem:[#allocation4_spill] sm:$0xff] }
  0xba   :  { %v193_v46 = vadd.f32 %v1244_v37, %v192_v41  ;;  %358 = vmatpush.msrb.mxu3 %v1865_v60  ;;  %v2848_v41 = vld [vmem:[#allocation13_spill] sm:$0xff] }
  0xbb   :  { %v174_v25 = vsel %vm173_vm2, %v1242_v47, %v170_v28  ;;  %vm199_vm7 = vcmp.eq.f32.partialorder %v198_v31, 8.507059e+37  ;;  %v2850_v47 = vld [vmem:[#allocation6_spill] sm:$0xff] }
  0xbc   :  { %v179_v3 = vsel %vm176_vm3, %v178_v38, %v174_v25  ;;  %359 = vmatpush.msrb.mxu3 %v1872_v49  ;;  %v197_v40 = vsel %vm196_vm6, %v1244_v37, %v193_v46  ;;  %v2853_v46 = vld [vmem:[#allocation8_spill] sm:$0xff]  ;;  %v2856_v31 = vld [vmem:[#allocation10_spill] sm:$0xff] }
  0xbd   :  { %v205_v34 = vmul.f32 %v204_v27, %v179_v3  ;;  %v202_v28 = vsel %vm199_vm7, %v201_v45, %v197_v40  ;;  %v2854_v3 = vld [vmem:[#allocation19_spill] sm:$0xff]  ;;  %v2859_v45 = vld [vmem:[#allocation12_spill] sm:$0xff] }
  0xbe   :  { %360 = vmatpush.msrb.mxu3 %v1878_v48  ;;  %v210_v25 = vsub.f32 1.0, %v202_v28  ;;  %v212_v38 = vmul.f32 %v202_v28, %v1674_v44  ;;  %v2849_v44 = vld [vmem:[#allocation5_spill] sm:$0xff]  ;;  %v2858_v40 = vld [vmem:[#allocation11_spill] sm:$0xff] }
  0xbf   :  { %v208_v33 = vadd.f32 %v206_v36, %v205_v34  ;;  %v2852_v36 = vld [vmem:[#allocation7_spill] sm:$0xff]  ;;  %v2855_v34 = vld [vmem:[#allocation9_spill] sm:$0xff] }
  0xc0   :  { %361 = vmatpush.msrb.mxu3 %v1884_v58  ;;  %v2860_v28 = vld [vmem:[#allocation21_spill] sm:$0xff] }
  0xc1   :  { %1245 = vtanh.f32 %v208_v33  ;;  %v2857_v33 = vld [vmem:[#allocation20_spill] sm:$0xff] }
  0xc2   :  { %362 = vmatpush.msrb.mxu3 %v1890_v61 }
  0xc4   :  { %363 = vmatpush.msrb.mxu3 %v1896_v62 }
  0xc6   :  { %364 = vmatpush.msrb.mxu3 %v1902_v42 }
  0xc7   :  { %v1246_v27 = vpop.eup %1245 }
  0xc8   :  { %v211_v30 = vmul.f32 %v1246_v27, %v210_v25  ;;  %365 = vmatpush.msrb.mxu3 %v1907_v63  ;;  %v2861_v25 = vld [vmem:[#allocation14_spill] sm:$0xff]  ;;  %v2862_v27 = vld [vmem:[#allocation15_spill] sm:$0xff] }
  0xca   :  { %v1934_v37 = vadd.f32 %v212_v38, %v211_v30  ;;  %v2863_v30 = vld [vmem:[#allocation22_spill] sm:$0xff]  ;;  %v2864_v38 = vld [vmem:[#allocation17_spill] sm:$0xff] }
  0xcc   :  { %230 = vmatmul.f32.vlgmr.msra.gmra.mxu3 %v1934_v37  ;;  %253 = vmatmul.f32.vlgmr.msrb.gmra.mxu0 %v1934_v37 }
  0xcd   :  { %273 = vmatmul.f32.vlgmr.msrb.gmra.mxu1 %v1934_v37  ;;  %293 = vmatmul.f32.vlgmr.msrb.gmra.mxu2 %v1934_v37 }
  0xce   :  { %487 = vmatpush.msra.mxu3 %v1811_v50  ;;  %511 = vmatpush.msrb.mxu0 %v1422_v0 }
  0xcf   :  { %531 = vmatpush.msrb.mxu1 %v1427_v1  ;;  %551 = vmatpush.msrb.mxu2 %v1490_v13 }
  0xd0   :  { %488 = vmatpush.msra.mxu3 %v1817_v51  ;;  %512 = vmatpush.msrb.mxu0 %v1432_v2 }
  0xd1   :  { %532 = vmatpush.msrb.mxu1 %v1439_v4  ;;  %552 = vmatpush.msrb.mxu2 %v1497_v14 }
  0xd2   :  { %489 = vmatpush.msra.mxu3 %v1823_v52  ;;  %513 = vmatpush.msrb.mxu0 %v1444_v5 }
  0xd3   :  { %533 = vmatpush.msrb.mxu1 %v1449_v6  ;;  %553 = vmatpush.msrb.mxu2 %v1515_v17 }
  0xd4   :  { %490 = vmatpush.msra.mxu3 %v1829_v53  ;;  %514 = vmatpush.msrb.mxu0 %v1456_v7 }
  0xd5   :  { %534 = vmatpush.msrb.mxu1 %v1461_v8  ;;  %554 = vmatpush.msrb.mxu2 %v1533_v20 }
  0xd6   :  { %491 = vmatpush.msra.mxu3 %v1835_v54  ;;  %515 = vmatpush.msrb.mxu0 %v1468_v9 }
  0xd7   :  { %535 = vmatpush.msrb.mxu1 %v1473_v10  ;;  %555 = vmatpush.msrb.mxu2 %v1551_v23 }
  0xd8   :  { %492 = vmatpush.msra.mxu3 %v1841_v55  ;;  %516 = vmatpush.msrb.mxu0 %v1480_v11 }
  0xd9   :  { %536 = vmatpush.msrb.mxu1 %v1485_v12  ;;  %556 = vmatpush.msrb.mxu2 %v1569_v26 }
  0xda   :  { %493 = vmatpush.msra.mxu3 %v1852_v57  ;;  %517 = vmatpush.msrb.mxu0 %v1502_v15 }
  0xdb   :  { %537 = vmatpush.msrb.mxu1 %v1507_v16  ;;  %557 = vmatpush.msrb.mxu2 %v1587_v29 }
  0xdc   :  { %494 = vmatpush.msra.mxu3 %v1859_v59  ;;  %518 = vmatpush.msrb.mxu0 %v1520_v18 }
  0xdd   :  { %538 = vmatpush.msrb.mxu1 %v1525_v19  ;;  %558 = vmatpush.msrb.mxu2 %v1605_v32 }
  0xde   :  { %495 = vmatpush.msra.mxu3 %v1865_v60  ;;  %519 = vmatpush.msrb.mxu0 %v1538_v21 }
  0xdf   :  { %539 = vmatpush.msrb.mxu1 %v1543_v22  ;;  %559 = vmatpush.msrb.mxu2 %v1623_v35 }
  0xe0   :  { %496 = vmatpush.msra.mxu3 %v1872_v49  ;;  %520 = vmatpush.msrb.mxu0 %v2846_v24 }
  0xe1   :  { %540 = vmatpush.msrb.mxu1 %v2847_v39  ;;  %560 = vmatpush.msrb.mxu2 %v2848_v41 }
  0xe2   :  { %497 = vmatpush.msra.mxu3 %v1878_v48  ;;  %521 = vmatpush.msrb.mxu0 %v2849_v44 }
  0xe3   :  { %541 = vmatpush.msrb.mxu1 %v2850_v47  ;;  %561 = vmatpush.msrb.mxu2 %v2851_v56 }
  0xe4   :  { %498 = vmatpush.msra.mxu3 %v1884_v58  ;;  %522 = vmatpush.msrb.mxu0 %v2852_v36 }
  0xe5   :  { %542 = vmatpush.msrb.mxu1 %v2853_v46  ;;  %562 = vmatpush.msrb.mxu2 %v2854_v3 }
  0xe6   :  { %499 = vmatpush.msra.mxu3 %v1890_v61  ;;  %523 = vmatpush.msrb.mxu0 %v2855_v34 }
  0xe7   :  { %543 = vmatpush.msrb.mxu1 %v2856_v31  ;;  %563 = vmatpush.msrb.mxu2 %v2857_v33  ;;  %v2865_v33 = vld [vmem:[#allocation18_spill] sm:$0xff] }
  0xe8   :  { %500 = vmatpush.msra.mxu3 %v1896_v62  ;;  %524 = vmatpush.msrb.mxu0 %v2858_v40  ;;  %v2866_v62 = vld [vmem:[#allocation23_spill] sm:$0xff] }
  0xe9   :  { %544 = vmatpush.msrb.mxu1 %v2859_v45  ;;  %564 = vmatpush.msrb.mxu2 %v2860_v28  ;;  %v1206_v28 = vld [vmem:[%s2714_s0 + $0x6] sm:$0x3f] }
  0xea   :  { %501 = vmatpush.msra.mxu3 %v1902_v42  ;;  %525 = vmatpush.msrb.mxu0 %v2861_v25  ;;  %v318_v45 = vrot.slane %v1206_v28, 2 }
  0xeb   :  { %545 = vmatpush.msrb.mxu1 %v2862_v27  ;;  %565 = vmatpush.msrb.mxu2 %v2863_v30 }
  0xec   :  { %502 = vmatpush.msra.mxu3 %v1907_v63  ;;  %526 = vmatpush.msrb.mxu0 %v2864_v38  ;;  %v2011_v63 = vld [vmem:[%s2715_s4] ss:$0 sm:$0xff] }
  0xed   :  { %546 = vmatpush.msrb.mxu1 %v2865_v33  ;;  %566 = vmatpush.msrb.mxu2 %v2866_v62  ;;  %2867 = vst [vmem:[#allocation3_spill] sm:$0xff] %v2011_v63 }
 0x149   :  { %v254_v42 = vpop.f32.mrf.mxu0 }
 0x14a   :  { %v297_v40 = vadd.f32 %v1206_v28, %v254_v42  ;;  %v274_v25 = vpop.f32.mrf.mxu1 }
 0x14b   :  { %v320_v31 = vadd.f32 %v318_v45, %v274_v25 }
 0x14c   :  { %v1207_v27 = vmul.f32 -1.442695, %v297_v40 }
 0x14d   :  { %v1208_v38 = vmul.f32 -1.442695, %v320_v31 }
 0x14e   :  { %1247 = vpow2.f32 %v1207_v27 }
 0x14f   :  { %1249 = vpow2.f32 %v1208_v38  ;;  %v231_v33 = vpop.f32.mrf.mxu3 }
 0x150   :  { %v232_v62 = vadd.f32 %v2011_v63, %v231_v33  ;;  %v294_v36 = vpop.f32.mrf.mxu2 }
 0x151   :  { %v340_v56 = vadd.f32 %v1918_v43, %v294_v36 }
 0x152   :  { %234 = vst [vmem:[%s2716_s5] sm:$0x3] %v232_v62 }
 0x154   :  { %v1248_v30 = vpop.eup %1247 }
 0x155   :  { %v1250_v42 = vpop.eup %1249  ;;  %v301_v34 = vadd.f32 1.0, %v1248_v30  ;;  %v342_v30 = vrot.slane %v1206_v28, 4 }
 0x156   :  { %v324_v45 = vadd.f32 1.0, %v1250_v42 }
 0x157   :  { %1251 = vrcp.f32 %v301_v34  ;;  %v313_v38 = vand.u32 2147483648, %v301_v34  ;;  %v311_v33 = vand.u32 2147483647, %v301_v34  ;;  %vm307_vm9 = vweird.f32 %v301_v34 }
 0x158   :  { %1253 = vrcp.f32 %v324_v45  ;;  %vm330_vm13 = vweird.f32 %v324_v45 }
 0x159   :  { %v314_v62 = vor.u32 1.1754944e-38, %v313_v38  ;;  %vm312_vm11 = vcmp.eq.f32.partialorder %v311_v33, 8.507059e+37 }
 0x15d   :  { %v1252_v40 = vpop.eup %1251 }
 0x15e   :  { %v1254_v25 = vpop.eup %1253  ;;  %v303_v61 = vmul.f32 %v1252_v40, %v301_v34  ;;  %vm308_vm8 = vweird.f32 %v1252_v40 }
 0x15f   :  { %v326_v3 = vmul.f32 %v1254_v25, %v324_v45  ;;  %vm309_vm10 = vmor %vm307_vm9, %vm308_vm8  ;;  %vm331_vm12 = vweird.f32 %v1254_v25 }
 0x160   :  { %v304_v31 = vsub.f32 1.0, %v303_v61  ;;  %v336_v61 = vand.u32 2147483648, %v324_v45  ;;  %vm332_vm14 = vmor %vm330_vm13, %vm331_vm12 }
 0x161   :  { %v327_v27 = vsub.f32 1.0, %v326_v3 }
 0x162   :  { %v305_v46 = vmul.f32 %v1252_v40, %v304_v31  ;;  %v334_v31 = vand.u32 2147483647, %v324_v45  ;;  %v337_v41 = vor.u32 1.1754944e-38, %v336_v61 }
 0x163   :  { %v328_v63 = vmul.f32 %v1254_v25, %v327_v27 }
 0x164   :  { %v306_v58 = vadd.f32 %v1252_v40, %v305_v46  ;;  %vm335_vm15 = vcmp.eq.f32.partialorder %v334_v31, 8.507059e+37 }
 0x165   :  { %v329_v47 = vadd.f32 %v1254_v25, %v328_v63 }
 0x166   :  { %v310_v42 = vsel %vm309_vm10, %v1252_v40, %v306_v58 }
 0x167   :  { %v315_v44 = vsel %vm312_vm11, %v314_v62, %v310_v42  ;;  %v333_v27 = vsel %vm332_vm14, %v1254_v25, %v329_v47  ;;  %v2893_v47 = vld [vmem:[#allocation3_spill] sm:$0xff] }
 0x168   :  { %v341_v3 = vmul.f32 %v340_v56, %v315_v44  ;;  %v338_v46 = vsel %vm335_vm15, %v337_v41, %v333_v27 }
 0x169   :  { %v346_v34 = vsub.f32 1.0, %v338_v46  ;;  %v348_v40 = vmul.f32 %v338_v46, %v1934_v37 }
 0x16a   :  { %v344_v48 = vadd.f32 %v342_v30, %v341_v3 }
 0x16c   :  { %1255 = vtanh.f32 %v344_v48 }
 0x172   :  { %v1256_v28 = vpop.eup %1255 }
 0x173   :  { %v347_v58 = vmul.f32 %v1256_v28, %v346_v34 }
 0x175   :  { %v2019_v36 = vadd.f32 %v348_v40, %v347_v58 }
 0x177   :  { %366 = vmatmul.f32.vlgmr.msrb.gmra.mxu3 %v2019_v36  ;;  %390 = vmatmul.f32.vlgmr.msra.gmra.mxu0 %v2019_v36 }
 0x178   :  { %410 = vmatmul.f32.vlgmr.msra.gmra.mxu1 %v2019_v36  ;;  %430 = vmatmul.f32.vlgmr.msra.gmra.mxu2 %v2019_v36 }
 0x179   :  { %624 = vmatpush.msrb.mxu3 %v1811_v50  ;;  %648 = vmatpush.msra.mxu0 %v1422_v0  ;;  %v2868_v0 = vld [vmem:[#allocation13_spill] sm:$0xff] }
 0x17a   :  { %668 = vmatpush.msra.mxu1 %v1427_v1  ;;  %688 = vmatpush.msra.mxu2 %v1490_v13  ;;  %v2869_v1 = vld [vmem:[#allocation24_spill] sm:$0xff] }
 0x17b   :  { %625 = vmatpush.msrb.mxu3 %v1817_v51  ;;  %649 = vmatpush.msra.mxu0 %v1432_v2  ;;  %v2870_v2 = vld [vmem:[#allocation5_spill] sm:$0xff]  ;;  %v2880_v13 = vld [vmem:[#allocation20_spill] sm:$0xff] }
 0x17c   :  { %669 = vmatpush.msra.mxu1 %v1439_v4  ;;  %689 = vmatpush.msra.mxu2 %v1497_v14  ;;  %v2871_v4 = vld [vmem:[#allocation6_spill] sm:$0xff]  ;;  %v2881_v14 = vld [vmem:[#allocation27_spill] sm:$0xff] }
 0x17d   :  { %626 = vmatpush.msrb.mxu3 %v1823_v52  ;;  %650 = vmatpush.msra.mxu0 %v1444_v5  ;;  %v2872_v5 = vld [vmem:[#allocation16_spill] sm:$0xff] }
 0x17e   :  { %670 = vmatpush.msra.mxu1 %v1449_v6  ;;  %690 = vmatpush.msra.mxu2 %v1515_v17  ;;  %v2873_v6 = vld [vmem:[#allocation25_spill] sm:$0xff] }
 0x17f   :  { %627 = vmatpush.msrb.mxu3 %v1829_v53  ;;  %651 = vmatpush.msra.mxu0 %v1456_v7  ;;  %v2874_v7 = vld [vmem:[#allocation7_spill] sm:$0xff]  ;;  %v2884_v17 = vld [vmem:[#allocation21_spill] sm:$0xff] }
 0x180   :  { %671 = vmatpush.msra.mxu1 %v1461_v8  ;;  %691 = vmatpush.msra.mxu2 %v1533_v20  ;;  %v2875_v8 = vld [vmem:[#allocation8_spill] sm:$0xff]  ;;  %v2887_v20 = vld [vmem:[#allocation15_spill] sm:$0xff] }
 0x181   :  { %628 = vmatpush.msrb.mxu3 %v1835_v54  ;;  %652 = vmatpush.msra.mxu0 %v1468_v9  ;;  %v2876_v9 = vld [vmem:[#allocation19_spill] sm:$0xff] }
 0x182   :  { %672 = vmatpush.msra.mxu1 %v1473_v10  ;;  %692 = vmatpush.msra.mxu2 %v1551_v23  ;;  %v2877_v10 = vld [vmem:[#allocation26_spill] sm:$0xff]  ;;  %v2890_v23 = vld [vmem:[#allocation17_spill] sm:$0xff] }
 0x183   :  { %629 = vmatpush.msrb.mxu3 %v1841_v55  ;;  %653 = vmatpush.msra.mxu0 %v1480_v11  ;;  %v2878_v11 = vld [vmem:[#allocation9_spill] sm:$0xff] }
 0x184   :  { %673 = vmatpush.msra.mxu1 %v1485_v12  ;;  %693 = vmatpush.msra.mxu2 %v1569_v26  ;;  %v2879_v12 = vld [vmem:[#allocation10_spill] sm:$0xff] }
 0x185   :  { %630 = vmatpush.msrb.mxu3 %v1852_v57  ;;  %654 = vmatpush.msra.mxu0 %v1502_v15  ;;  %v2882_v15 = vld [vmem:[#allocation11_spill] sm:$0xff]  ;;  %v2891_v26 = vld [vmem:[#allocation18_spill] sm:$0xff] }
 0x186   :  { %674 = vmatpush.msra.mxu1 %v1507_v16  ;;  %694 = vmatpush.msra.mxu2 %v1587_v29  ;;  %v2883_v16 = vld [vmem:[#allocation12_spill] sm:$0xff]  ;;  %v2892_v29 = vld [vmem:[#allocation23_spill] sm:$0xff] }
 0x187   :  { %631 = vmatpush.msrb.mxu3 %v1859_v59  ;;  %655 = vmatpush.msra.mxu0 %v1520_v18  ;;  %v2885_v18 = vld [vmem:[#allocation28_spill] sm:$0xff] }
 0x188   :  { %675 = vmatpush.msra.mxu1 %v1525_v19  ;;  %695 = vmatpush.msra.mxu2 %v1605_v32  ;;  %v2886_v19 = vld [vmem:[#allocation14_spill] sm:$0xff]  ;;  %v1210_v32 = vld [vmem:[%s2714_s0 + $0xc] sm:$0x3f] }
 0x189   :  { %632 = vmatpush.msrb.mxu3 %v1865_v60  ;;  %656 = vmatpush.msra.mxu0 %v1538_v21  ;;  %v2888_v21 = vld [vmem:[#allocation22_spill] sm:$0xff] }
 0x18a   :  { %676 = vmatpush.msra.mxu1 %v1543_v22  ;;  %696 = vmatpush.msra.mxu2 %v1623_v35  ;;  %v2889_v22 = vld [vmem:[#allocation29_spill] sm:$0xff]  ;;  %v455_v35 = vrot.slane %v1210_v32, 2 }
 0x18b   :  { %633 = vmatpush.msrb.mxu3 %v1872_v49  ;;  %657 = vmatpush.msra.mxu0 %v2846_v24 }
 0x18c   :  { %677 = vmatpush.msra.mxu1 %v2847_v39  ;;  %697 = vmatpush.msra.mxu2 %v2868_v0 }
 0x18d   :  { %634 = vmatpush.msrb.mxu3 %v2869_v1  ;;  %658 = vmatpush.msra.mxu0 %v2870_v2  ;;  %v479_v2 = vrot.slane %v1210_v32, 4 }
 0x18e   :  { %678 = vmatpush.msra.mxu1 %v2871_v4  ;;  %698 = vmatpush.msra.mxu2 %v2872_v5 }
 0x18f   :  { %635 = vmatpush.msrb.mxu3 %v2873_v6  ;;  %659 = vmatpush.msra.mxu0 %v2874_v7 }
 0x190   :  { %679 = vmatpush.msra.mxu1 %v2875_v8  ;;  %699 = vmatpush.msra.mxu2 %v2876_v9 }
 0x191   :  { %636 = vmatpush.msrb.mxu3 %v2877_v10  ;;  %660 = vmatpush.msra.mxu0 %v2878_v11 }
 0x192   :  { %680 = vmatpush.msra.mxu1 %v2879_v12  ;;  %700 = vmatpush.msra.mxu2 %v2880_v13 }
 0x193   :  { %637 = vmatpush.msrb.mxu3 %v2881_v14  ;;  %661 = vmatpush.msra.mxu0 %v2882_v15 }
 0x194   :  { %681 = vmatpush.msra.mxu1 %v2883_v16  ;;  %701 = vmatpush.msra.mxu2 %v2884_v17 }
 0x195   :  { %638 = vmatpush.msrb.mxu3 %v2885_v18  ;;  %662 = vmatpush.msra.mxu0 %v2886_v19 }
 0x196   :  { %682 = vmatpush.msra.mxu1 %v2887_v20  ;;  %702 = vmatpush.msra.mxu2 %v2888_v21 }
 0x197   :  { %639 = vmatpush.msrb.mxu3 %v2889_v22  ;;  %663 = vmatpush.msra.mxu0 %v2890_v23 }
 0x198   :  { %683 = vmatpush.msra.mxu1 %v2891_v26  ;;  %703 = vmatpush.msra.mxu2 %v2892_v29  ;;  %v2108_v29 = vld [vmem:[%s2711_s1 + $0x168] sm:$0xff] }
 0x1f4   :  { %v391_v48 = vpop.f32.mrf.mxu0 }
 0x1f5   :  { %v434_v63 = vadd.f32 %v1210_v32, %v391_v48  ;;  %v411_v37 = vpop.f32.mrf.mxu1  ;;  %v2120_v32 = vld [vmem:[%s2711_s1 + $0x178] sm:$0xff] }
 0x1f6   :  { %v457_v24 = vadd.f32 %v455_v35, %v411_v37  ;;  %v2127_v35 = vld [vmem:[%s2711_s1 + $0x150] sm:$0xff]  ;;  %v2133_v48 = vld [vmem:[%s2711_s1 + $0x158] sm:$0xff] }
 0x1f7   :  { %v1211_v39 = vmul.f32 -1.442695, %v434_v63  ;;  %v2139_v63 = vld [vmem:[%s2711_s1 + $0x160] sm:$0xff]  ;;  %v2146_v37 = vld [vmem:[%s2711_s1 + $0x138] sm:$0xff] }
 0x1f8   :  { %v1212_v41 = vmul.f32 -1.442695, %v457_v24  ;;  %v2152_v24 = vld [vmem:[%s2711_s1 + $0x140] sm:$0xff] }
 0x1f9   :  { %1257 = vpow2.f32 %v1211_v39  ;;  %v2158_v39 = vld [vmem:[%s2711_s1 + $0x148] sm:$0xff] }
 0x1fa   :  { %1259 = vpow2.f32 %v1212_v41  ;;  %v367_v44 = vpop.f32.mrf.mxu3  ;;  %v2165_v41 = vld [vmem:[%s2711_s1 + $0x120] sm:$0xff] }
 0x1fb   :  { %v368_v56 = vadd.f32 %v2893_v47, %v367_v44  ;;  %v431_v58 = vpop.f32.mrf.mxu2  ;;  %v2171_v44 = vld [vmem:[%s2711_s1 + $0x128] sm:$0xff] }
 0x1fc   :  { %v477_v5 = vadd.f32 %v1918_v43, %v431_v58  ;;  %v2272_v58 = vld [vmem:[%s2711_s1 + $0xb8] sm:$0xff] }
 0x1fd   :  { %1209 = vst [vmem:[%s2716_s5 + $0x2] sm:$0x3] %v368_v56  ;;  %v2177_v56 = vld [vmem:[%s2711_s1 + $0x130] sm:$0xff] }
 0x1ff   :  { %v1258_v45 = vpop.eup %1257 }
 0x200   :  { %v1260_v25 = vpop.eup %1259  ;;  %v438_v38 = vadd.f32 1.0, %v1258_v45  ;;  %v2184_v45 = vld [vmem:[%s2711_s1 + $0x108] sm:$0xff] }
 0x201   :  { %v461_v33 = vadd.f32 1.0, %v1260_v25  ;;  %v2190_v25 = vld [vmem:[%s2711_s1 + $0x110] sm:$0xff] }
 0x202   :  { %1261 = vrcp.f32 %v438_v38  ;;  %v450_v27 = vand.u32 2147483648, %v438_v38  ;;  %v448_v34 = vand.u32 2147483647, %v438_v38  ;;  %vm444_vm1 = vweird.f32 %v438_v38 }
 0x203   :  { %1263 = vrcp.f32 %v461_v33  ;;  %v473_v9 = vand.u32 2147483648, %v461_v33  ;;  %vm467_vm5 = vweird.f32 %v461_v33  ;;  %v471_v12 = vand.u32 2147483647, %v461_v33 }
 0x204   :  { %v451_v0 = vor.u32 1.1754944e-38, %v450_v27  ;;  %vm449_vm3 = vcmp.eq.f32.partialorder %v448_v34, 8.507059e+37  ;;  %v2247_v27 = vld [vmem:[%s2711_s1 + $0xc8] sm:$0xff] }
 0x205   :  { %v474_v16 = vor.u32 1.1754944e-38, %v473_v9  ;;  %vm472_vm7 = vcmp.eq.f32.partialorder %v471_v12, 8.507059e+37  ;;  %v2260_v34 = vld [vmem:[%s2711_s1 + $0xa8] sm:$0xff] }
 0x206   :  { %v2323_v9 = vld [vmem:[%s2711_s1 + $0x68] sm:$0xff] }
 0x207   :  { %2899 = vst [vmem:[#allocation7_spill] sm:$0xff] %v2323_v9  ;;  %v2336_v12 = vld [vmem:[%s2711_s1 + $0x48] sm:$0xff] }
 0x208   :  { %v1262_v62 = vpop.eup %1261  ;;  %2901 = vst [vmem:[#allocation19_spill] sm:$0xff] %v2336_v12 }
 0x209   :  { %v1264_v30 = vpop.eup %1263  ;;  %v440_v42 = vmul.f32 %v1262_v62, %v438_v38  ;;  %vm445_vm0 = vweird.f32 %v1262_v62  ;;  %v2196_v38 = vld [vmem:[%s2711_s1 + $0x118] sm:$0xff] }
 0x20a   :  { %v463_v61 = vmul.f32 %v1264_v30, %v461_v33  ;;  %vm446_vm2 = vmor %vm444_vm1, %vm445_vm0  ;;  %vm468_vm4 = vweird.f32 %v1264_v30  ;;  %v2203_v33 = vld [vmem:[%s2711_s1 + $0xf0] sm:$0xff] }
 0x20b   :  { %v441_v3 = vsub.f32 1.0, %v440_v42  ;;  %vm469_vm6 = vmor %vm467_vm5, %vm468_vm4  ;;  %v2222_v42 = vld [vmem:[%s2711_s1 + $0xd8] sm:$0xff] }
 0x20c   :  { %v464_v31 = vsub.f32 1.0, %v463_v61  ;;  %v2228_v61 = vld [vmem:[%s2711_s1 + $0xe0] sm:$0xff] }
 0x20d   :  { %v442_v46 = vmul.f32 %v1262_v62, %v441_v3  ;;  %v2234_v3 = vld [vmem:[%s2711_s1 + $0xe8] sm:$0xff] }
 0x20e   :  { %v465_v28 = vmul.f32 %v1264_v30, %v464_v31  ;;  %v2241_v31 = vld [vmem:[%s2711_s1 + $0xc0] sm:$0xff] }
 0x20f   :  { %v443_v40 = vadd.f32 %v1262_v62, %v442_v46  ;;  %v2253_v46 = vld [vmem:[%s2711_s1 + $0xd0] sm:$0xff] }
 0x210   :  { %v466_v7 = vadd.f32 %v1264_v30, %v465_v28  ;;  %v2266_v28 = vld [vmem:[%s2711_s1 + $0xb0] sm:$0xff] }
 0x211   :  { %v447_v4 = vsel %vm446_vm2, %v1262_v62, %v443_v40  ;;  %v2209_v62 = vld [vmem:[%s2711_s1 + $0xf8] sm:$0xff]  ;;  %v2279_v40 = vld [vmem:[%s2711_s1 + $0x90] sm:$0xff] }
 0x212   :  { %v452_v8 = vsel %vm449_vm3, %v451_v0, %v447_v4  ;;  %v470_v15 = vsel %vm469_vm6, %v1264_v30, %v466_v7  ;;  %v2215_v30 = vld [vmem:[%s2711_s1 + $0x100] sm:$0xff]  ;;  %v2285_v0 = vld [vmem:[%s2711_s1 + $0x98] sm:$0xff]  ;;  %v2310_v7 = vld [vmem:[%s2711_s1 + $0x88] sm:$0xff] }
 0x213   :  { %v478_v11 = vmul.f32 %v477_v5, %v452_v8  ;;  %v475_v17 = vsel %vm472_vm7, %v474_v16, %v470_v15  ;;  %v2298_v4 = vld [vmem:[%s2711_s1 + $0x78] sm:$0xff]  ;;  %v2304_v5 = vld [vmem:[%s2711_s1 + $0x80] sm:$0xff]  ;;  %2897 = vst [vmem:[#allocation6_spill] sm:$0xff] %v2310_v7  ;;  %v2355_v16 = vld [vmem:[%s2711_s1 + $0x30] sm:$0xff] }
 0x214   :  { %v483_v19 = vsub.f32 1.0, %v475_v17  ;;  %v485_v23 = vmul.f32 %v475_v17, %v2019_v36  ;;  %v2114_v36 = vld [vmem:[%s2711_s1 + $0x170] sm:$0xff]  ;;  %2895 = vst [vmem:[#allocation13_spill] sm:$0xff] %v2298_v4  ;;  %v2317_v8 = vld [vmem:[%s2711_s1 + $0x60] sm:$0xff]  ;;  %v2348_v15 = vld [vmem:[%s2711_s1 + $0x58] sm:$0xff] }
 0x215   :  { %v481_v13 = vadd.f32 %v479_v2, %v478_v11  ;;  %v2291_v2 = vld [vmem:[%s2711_s1 + $0xa0] sm:$0xff]  ;;  %2896 = vst [vmem:[#allocation5_spill] sm:$0xff] %v2304_v5  ;;  %v2329_v11 = vld [vmem:[%s2711_s1 + $0x70] sm:$0xff]  ;;  %v2361_v17 = vld [vmem:[%s2711_s1 + $0x38] sm:$0xff] }
 0x216   :  { %2894 = vst [vmem:[#allocation4_spill] sm:$0xff] %v2291_v2 }
 0x217   :  { %1265 = vtanh.f32 %v481_v13  ;;  %2898 = vst [vmem:[#allocation16_spill] sm:$0xff] %v2317_v8  ;;  %v2342_v13 = vld [vmem:[%s2711_s1 + $0x50] sm:$0xff] }
 0x218   :  { %2900 = vst [vmem:[#allocation8_spill] sm:$0xff] %v2329_v11 }
 0x219   :  { %2902 = vst [vmem:[#allocation9_spill] sm:$0xff] %v2342_v13 }
 0x21a   :  { %2903 = vst [vmem:[#allocation10_spill] sm:$0xff] %v2348_v15 }
 0x21b   :  { %2904 = vst [vmem:[#allocation20_spill] sm:$0xff] %v2355_v16 }
 0x21c   :  { %2905 = vst [vmem:[#allocation11_spill] sm:$0xff] %v2361_v17 }
 0x21d   :  { %v1266_v20 = vpop.eup %1265 }
 0x21e   :  { %v484_v21 = vmul.f32 %v1266_v20, %v483_v19  ;;  %v2367_v19 = vld [vmem:[%s2711_s1 + $0x40] sm:$0xff]  ;;  %v2374_v20 = vld [vmem:[%s2711_s1 + $0x18] sm:$0xff] }
 0x21f   :  { %2906 = vst [vmem:[#allocation12_spill] sm:$0xff] %v2367_v19 }
 0x220   :  { %v2098_v26 = vadd.f32 %v485_v23, %v484_v21  ;;  %2907 = vst [vmem:[#allocation21_spill] sm:$0xff] %v2374_v20  ;;  %v2380_v21 = vld [vmem:[%s2711_s1 + $0x20] sm:$0xff]  ;;  %v2386_v23 = vld [vmem:[%s2711_s1 + $0x28] sm:$0xff] }
 0x221   :  { %2908 = vst [vmem:[#allocation14_spill] sm:$0xff] %v2380_v21 }
 0x222   :  { %503 = vmatmul.f32.vlgmr.msra.gmra.mxu3 %v2098_v26  ;;  %527 = vmatmul.f32.vlgmr.msrb.gmra.mxu0 %v2098_v26  ;;  %2909 = vst [vmem:[#allocation15_spill] sm:$0xff] %v2386_v23 }
 0x223   :  { %547 = vmatmul.f32.vlgmr.msrb.gmra.mxu1 %v2098_v26  ;;  %567 = vmatmul.f32.vlgmr.msrb.gmra.mxu2 %v2098_v26 }
 0x224   :  { %761 = vmatpush.msra.mxu3 %v1811_v50  ;;  %785 = vmatpush.msrb.mxu0 %v2108_v29 }
 0x225   :  { %805 = vmatpush.msrb.mxu1 %v2114_v36  ;;  %825 = vmatpush.msrb.mxu2 %v2120_v32 }
 0x226   :  { %762 = vmatpush.msra.mxu3 %v1817_v51  ;;  %786 = vmatpush.msrb.mxu0 %v2127_v35 }
 0x227   :  { %806 = vmatpush.msrb.mxu1 %v2133_v48  ;;  %826 = vmatpush.msrb.mxu2 %v2139_v63 }
 0x228   :  { %763 = vmatpush.msra.mxu3 %v1823_v52  ;;  %787 = vmatpush.msrb.mxu0 %v2146_v37 }
 0x229   :  { %807 = vmatpush.msrb.mxu1 %v2152_v24  ;;  %827 = vmatpush.msrb.mxu2 %v2158_v39 }
 0x22a   :  { %764 = vmatpush.msra.mxu3 %v1829_v53  ;;  %788 = vmatpush.msrb.mxu0 %v2165_v41 }
 0x22b   :  { %808 = vmatpush.msrb.mxu1 %v2171_v44  ;;  %828 = vmatpush.msrb.mxu2 %v2177_v56 }
 0x22c   :  { %765 = vmatpush.msra.mxu3 %v1835_v54  ;;  %789 = vmatpush.msrb.mxu0 %v2184_v45 }
 0x22d   :  { %809 = vmatpush.msrb.mxu1 %v2190_v25  ;;  %829 = vmatpush.msrb.mxu2 %v2196_v38 }
 0x22e   :  { %766 = vmatpush.msra.mxu3 %v1841_v55  ;;  %790 = vmatpush.msrb.mxu0 %v2203_v33 }
 0x22f   :  { %810 = vmatpush.msrb.mxu1 %v2209_v62  ;;  %830 = vmatpush.msrb.mxu2 %v2215_v30 }
 0x230   :  { %767 = vmatpush.msra.mxu3 %v1852_v57  ;;  %791 = vmatpush.msrb.mxu0 %v2222_v42 }
 0x231   :  { %811 = vmatpush.msrb.mxu1 %v2228_v61  ;;  %831 = vmatpush.msrb.mxu2 %v2234_v3 }
 0x232   :  { %768 = vmatpush.msra.mxu3 %v1859_v59  ;;  %792 = vmatpush.msrb.mxu0 %v2241_v31 }
 0x233   :  { %812 = vmatpush.msrb.mxu1 %v2247_v27  ;;  %832 = vmatpush.msrb.mxu2 %v2253_v46 }
 0x234   :  { %769 = vmatpush.msra.mxu3 %v1865_v60  ;;  %793 = vmatpush.msrb.mxu0 %v2260_v34 }
 0x235   :  { %813 = vmatpush.msrb.mxu1 %v2266_v28  ;;  %833 = vmatpush.msrb.mxu2 %v2272_v58 }
 0x236   :  { %770 = vmatpush.msra.mxu3 %v1872_v49  ;;  %794 = vmatpush.msrb.mxu0 %v2279_v40 }
 0x237   :  { %814 = vmatpush.msrb.mxu1 %v2285_v0  ;;  %834 = vmatpush.msrb.mxu2 %v2291_v2 }
 0x238   :  { %771 = vmatpush.msra.mxu3 %v2869_v1  ;;  %795 = vmatpush.msrb.mxu0 %v2298_v4 }
 0x239   :  { %815 = vmatpush.msrb.mxu1 %v2304_v5  ;;  %835 = vmatpush.msrb.mxu2 %v2310_v7 }
 0x23a   :  { %772 = vmatpush.msra.mxu3 %v2873_v6  ;;  %796 = vmatpush.msrb.mxu0 %v2317_v8 }
 0x23b   :  { %816 = vmatpush.msrb.mxu1 %v2323_v9  ;;  %836 = vmatpush.msrb.mxu2 %v2329_v11 }
 0x23c   :  { %773 = vmatpush.msra.mxu3 %v2877_v10  ;;  %797 = vmatpush.msrb.mxu0 %v2336_v12 }
 0x23d   :  { %817 = vmatpush.msrb.mxu1 %v2342_v13  ;;  %837 = vmatpush.msrb.mxu2 %v2348_v15 }
 0x23e   :  { %774 = vmatpush.msra.mxu3 %v2881_v14  ;;  %798 = vmatpush.msrb.mxu0 %v2355_v16 }
 0x23f   :  { %818 = vmatpush.msrb.mxu1 %v2361_v17  ;;  %838 = vmatpush.msrb.mxu2 %v2367_v19 }
 0x240   :  { %775 = vmatpush.msra.mxu3 %v2885_v18  ;;  %799 = vmatpush.msrb.mxu0 %v2374_v20  ;;  %v2393_v20 = vld [vmem:[%s2711_s1] sm:$0xff] }
 0x241   :  { %819 = vmatpush.msrb.mxu1 %v2380_v21  ;;  %839 = vmatpush.msrb.mxu2 %v2386_v23  ;;  %2910 = vst [vmem:[#allocation22_spill] sm:$0xff] %v2393_v20  ;;  %v2399_v21 = vld [vmem:[%s2711_s1 + $0x8] sm:$0xff]  ;;  %v2405_v23 = vld [vmem:[%s2711_s1 + $0x10] sm:$0xff] }
 0x242   :  { %776 = vmatpush.msra.mxu3 %v2889_v22  ;;  %800 = vmatpush.msrb.mxu0 %v2393_v20  ;;  %2911 = vst [vmem:[#allocation17_spill] sm:$0xff] %v2399_v21  ;;  %v1214_v22 = vld [vmem:[%s2714_s0 + $0x12] sm:$0x3f] }
 0x243   :  { %820 = vmatpush.msrb.mxu1 %v2399_v21  ;;  %2912 = vst [vmem:[#allocation18_spill] sm:$0xff] %v2405_v23  ;;  %840 = vmatpush.msrb.mxu2 %v2405_v23  ;;  %v592_v18 = vrot.slane %v1214_v22, 2 }
 0x29f   :  { %v528_v20 = vpop.f32.mrf.mxu0 }
 0x2a0   :  { %v571_v19 = vadd.f32 %v1214_v22, %v528_v20  ;;  %v548_v17 = vpop.f32.mrf.mxu1 }
 0x2a1   :  { %v594_v16 = vadd.f32 %v592_v18, %v548_v17 }
 0x2a2   :  { %v1215_v14 = vmul.f32 -1.442695, %v571_v19 }
 0x2a3   :  { %v1216_v15 = vmul.f32 -1.442695, %v594_v16 }
 0x2a4   :  { %1267 = vpow2.f32 %v1215_v14 }
 0x2a5   :  { %1269 = vpow2.f32 %v1216_v15  ;;  %v504_v21 = vpop.f32.mrf.mxu3 }
 0x2a6   :  { %v505_v13 = vadd.f32 %v2893_v47, %v504_v21  ;;  %v568_v8 = vpop.f32.mrf.mxu2 }
 0x2a7   :  { %v614_v7 = vadd.f32 %v1918_v43, %v568_v8  ;;  %v2930_v8 = vld [vmem:[#allocation28_spill] sm:$0xff] }
 0x2a8   :  { %1213 = vst [vmem:[%s2716_s5 + $0x4] sm:$0x3] %v505_v13 }
 0x2aa   :  { %v1268_v23 = vpop.eup %1267 }
 0x2ab   :  { %v1270_v12 = vpop.eup %1269  ;;  %v575_v10 = vadd.f32 1.0, %v1268_v23  ;;  %v616_v23 = vrot.slane %v1214_v22, 4 }
 0x2ac   :  { %v598_v11 = vadd.f32 1.0, %v1270_v12 }
 0x2ad   :  { %1271 = vrcp.f32 %v575_v10  ;;  %v587_v15 = vand.u32 2147483648, %v575_v10  ;;  %v585_v21 = vand.u32 2147483647, %v575_v10  ;;  %vm581_vm9 = vweird.f32 %v575_v10 }
 0x2ae   :  { %1273 = vrcp.f32 %v598_v11  ;;  %vm604_vm13 = vweird.f32 %v598_v11 }
 0x2af   :  { %v588_v13 = vor.u32 1.1754944e-38, %v587_v15  ;;  %vm586_vm11 = vcmp.eq.f32.partialorder %v585_v21, 8.507059e+37  ;;  %v2934_v21 = vld [vmem:[#allocation29_spill] sm:$0xff] }
 0x2b3   :  { %v1272_v20 = vpop.eup %1271 }
 0x2b4   :  { %v1274_v9 = vpop.eup %1273  ;;  %v577_v18 = vmul.f32 %v1272_v20, %v575_v10  ;;  %vm582_vm8 = vweird.f32 %v1272_v20 }
 0x2b5   :  { %v600_v17 = vmul.f32 %v1274_v9, %v598_v11  ;;  %vm583_vm10 = vmor %vm581_vm9, %vm582_vm8  ;;  %vm605_vm12 = vweird.f32 %v1274_v9 }
 0x2b6   :  { %v578_v16 = vsub.f32 1.0, %v577_v18  ;;  %v610_v18 = vand.u32 2147483648, %v598_v11  ;;  %vm606_vm14 = vmor %vm604_vm13, %vm605_vm12 }
 0x2b7   :  { %v601_v14 = vsub.f32 1.0, %v600_v17 }
 0x2b8   :  { %v579_v19 = vmul.f32 %v1272_v20, %v578_v16  ;;  %v608_v16 = vand.u32 2147483647, %v598_v11  ;;  %v611_v2 = vor.u32 1.1754944e-38, %v610_v18  ;;  %v2932_v11 = vld [vmem:[#allocation14_spill] sm:$0xff] }
 0x2b9   :  { %v602_v47 = vmul.f32 %v1274_v9, %v601_v14  ;;  %v1218_v18 = vld [vmem:[%s2714_s0 + $0x18] sm:$0x3f] }
 0x2ba   :  { %v580_v6 = vadd.f32 %v1272_v20, %v579_v19  ;;  %vm609_vm15 = vcmp.eq.f32.partialorder %v608_v16, 8.507059e+37  ;;  %v2933_v19 = vld [vmem:[#allocation15_spill] sm:$0xff] }
 0x2bb   :  { %v603_v5 = vadd.f32 %v1274_v9, %v602_v47  ;;  %v2924_v47 = vld [vmem:[#allocation9_spill] sm:$0xff] }
 0x2bc   :  { %v584_v12 = vsel %vm583_vm10, %v1272_v20, %v580_v6 }
 0x2bd   :  { %v589_v4 = vsel %vm586_vm11, %v588_v13, %v584_v12  ;;  %v607_v14 = vsel %vm606_vm14, %v1274_v9, %v603_v5  ;;  %v2928_v5 = vld [vmem:[#allocation11_spill] sm:$0xff]  ;;  %v2931_v9 = vld [vmem:[#allocation21_spill] sm:$0xff]  ;;  %v2935_v13 = vld [vmem:[#allocation22_spill] sm:$0xff] }
 0x2be   :  { %v615_v17 = vmul.f32 %v614_v7, %v589_v4  ;;  %v612_v10 = vsel %vm609_vm15, %v611_v2, %v607_v14  ;;  %v2926_v2 = vld [vmem:[#allocation27_spill] sm:$0xff]  ;;  %v2927_v4 = vld [vmem:[#allocation20_spill] sm:$0xff]  ;;  %v2937_v12 = vld [vmem:[#allocation18_spill] sm:$0xff] }
 0x2bf   :  { %v620_v15 = vsub.f32 1.0, %v612_v10  ;;  %v622_v20 = vmul.f32 %v612_v10, %v2098_v26  ;;  %v2925_v26 = vld [vmem:[#allocation10_spill] sm:$0xff]  ;;  %v2929_v7 = vld [vmem:[#allocation12_spill] sm:$0xff] }
 0x2c0   :  { %v618_v1 = vadd.f32 %v616_v23, %v615_v17  ;;  %v2936_v23 = vld [vmem:[#allocation17_spill] sm:$0xff]  ;;  %v729_v17 = vrot.slane %v1218_v18, 2 }
 0x2c2   :  { %1275 = vtanh.f32 %v618_v1  ;;  %v2923_v1 = vld [vmem:[#allocation19_spill] sm:$0xff] }
 0x2c8   :  { %v1276_v22 = vpop.eup %1275 }
 0x2c9   :  { %v621_v6 = vmul.f32 %v1276_v22, %v620_v15 }
 0x2cb   :  { %v2417_v43 = vadd.f32 %v622_v20, %v621_v6 }
 0x2cd   :  { %640 = vmatmul.f32.vlgmr.msrb.gmra.mxu3 %v2417_v43  ;;  %664 = vmatmul.f32.vlgmr.msra.gmra.mxu0 %v2417_v43 }
 0x2ce   :  { %684 = vmatmul.f32.vlgmr.msra.gmra.mxu1 %v2417_v43  ;;  %704 = vmatmul.f32.vlgmr.msra.gmra.mxu2 %v2417_v43 }
 0x2cf   :  { %898 = vmatpush.msrb.mxu3 %v1811_v50  ;;  %922 = vmatpush.msra.mxu0 %v2108_v29  ;;  %v2913_v50 = vld [vmem:[#allocation4_spill] sm:$0xff] }
 0x2d0   :  { %942 = vmatpush.msra.mxu1 %v2114_v36  ;;  %962 = vmatpush.msra.mxu2 %v2120_v32 }
 0x2d1   :  { %899 = vmatpush.msrb.mxu3 %v1817_v51  ;;  %923 = vmatpush.msra.mxu0 %v2127_v35  ;;  %v2914_v51 = vld [vmem:[#allocation24_spill] sm:$0xff] }
 0x2d2   :  { %943 = vmatpush.msra.mxu1 %v2133_v48  ;;  %963 = vmatpush.msra.mxu2 %v2139_v63 }
 0x2d3   :  { %900 = vmatpush.msrb.mxu3 %v1823_v52  ;;  %924 = vmatpush.msra.mxu0 %v2146_v37  ;;  %v2915_v52 = vld [vmem:[#allocation13_spill] sm:$0xff] }
 0x2d4   :  { %944 = vmatpush.msra.mxu1 %v2152_v24  ;;  %964 = vmatpush.msra.mxu2 %v2158_v39 }
 0x2d5   :  { %901 = vmatpush.msrb.mxu3 %v1829_v53  ;;  %925 = vmatpush.msra.mxu0 %v2165_v41  ;;  %v2916_v53 = vld [vmem:[#allocation5_spill] sm:$0xff] }
 0x2d6   :  { %945 = vmatpush.msra.mxu1 %v2171_v44  ;;  %965 = vmatpush.msra.mxu2 %v2177_v56 }
 0x2d7   :  { %902 = vmatpush.msrb.mxu3 %v1835_v54  ;;  %926 = vmatpush.msra.mxu0 %v2184_v45  ;;  %v2917_v54 = vld [vmem:[#allocation6_spill] sm:$0xff] }
 0x2d8   :  { %946 = vmatpush.msra.mxu1 %v2190_v25  ;;  %966 = vmatpush.msra.mxu2 %v2196_v38 }
 0x2d9   :  { %903 = vmatpush.msrb.mxu3 %v1841_v55  ;;  %927 = vmatpush.msra.mxu0 %v2203_v33  ;;  %v2918_v55 = vld [vmem:[#allocation25_spill] sm:$0xff] }
 0x2da   :  { %947 = vmatpush.msra.mxu1 %v2209_v62  ;;  %967 = vmatpush.msra.mxu2 %v2215_v30 }
 0x2db   :  { %904 = vmatpush.msrb.mxu3 %v1852_v57  ;;  %928 = vmatpush.msra.mxu0 %v2222_v42  ;;  %v2919_v57 = vld [vmem:[#allocation16_spill] sm:$0xff] }
 0x2dc   :  { %948 = vmatpush.msra.mxu1 %v2228_v61  ;;  %968 = vmatpush.msra.mxu2 %v2234_v3 }
 0x2dd   :  { %905 = vmatpush.msrb.mxu3 %v1859_v59  ;;  %929 = vmatpush.msra.mxu0 %v2241_v31  ;;  %v2920_v59 = vld [vmem:[#allocation7_spill] sm:$0xff] }
 0x2de   :  { %949 = vmatpush.msra.mxu1 %v2247_v27  ;;  %969 = vmatpush.msra.mxu2 %v2253_v46 }
 0x2df   :  { %906 = vmatpush.msrb.mxu3 %v1865_v60  ;;  %930 = vmatpush.msra.mxu0 %v2260_v34  ;;  %v2922_v60 = vld [vmem:[#allocation26_spill] sm:$0xff] }
 0x2e0   :  { %950 = vmatpush.msra.mxu1 %v2266_v28  ;;  %970 = vmatpush.msra.mxu2 %v2272_v58 }
 0x2e1   :  { %907 = vmatpush.msrb.mxu3 %v1872_v49  ;;  %931 = vmatpush.msra.mxu0 %v2279_v40  ;;  %v2921_v49 = vld [vmem:[#allocation8_spill] sm:$0xff] }
 0x2e2   :  { %951 = vmatpush.msra.mxu1 %v2285_v0  ;;  %971 = vmatpush.msra.mxu2 %v2913_v50 }
 0x2e3   :  { %908 = vmatpush.msrb.mxu3 %v2914_v51  ;;  %932 = vmatpush.msra.mxu0 %v2915_v52  ;;  %v2938_v51 = vld [vmem:[#allocation3_spill] sm:$0xff] }
 0x2e4   :  { %952 = vmatpush.msra.mxu1 %v2916_v53  ;;  %972 = vmatpush.msra.mxu2 %v2917_v54 }
 0x2e5   :  { %909 = vmatpush.msrb.mxu3 %v2918_v55  ;;  %933 = vmatpush.msra.mxu0 %v2919_v57 }
 0x2e6   :  { %953 = vmatpush.msra.mxu1 %v2920_v59  ;;  %973 = vmatpush.msra.mxu2 %v2921_v49 }
 0x2e7   :  { %910 = vmatpush.msrb.mxu3 %v2922_v60  ;;  %934 = vmatpush.msra.mxu0 %v2923_v1 }
 0x2e8   :  { %954 = vmatpush.msra.mxu1 %v2924_v47  ;;  %974 = vmatpush.msra.mxu2 %v2925_v26 }
 0x2e9   :  { %911 = vmatpush.msrb.mxu3 %v2926_v2  ;;  %935 = vmatpush.msra.mxu0 %v2927_v4 }
 0x2ea   :  { %955 = vmatpush.msra.mxu1 %v2928_v5  ;;  %975 = vmatpush.msra.mxu2 %v2929_v7 }
 0x2eb   :  { %912 = vmatpush.msrb.mxu3 %v2930_v8  ;;  %936 = vmatpush.msra.mxu0 %v2931_v9 }
 0x2ec   :  { %956 = vmatpush.msra.mxu1 %v2932_v11  ;;  %976 = vmatpush.msra.mxu2 %v2933_v19  ;;  %v2497_v19 = vld [vmem:[%s2712_s2] ss:$0 sm:$0xff] }
 0x2ed   :  { %913 = vmatpush.msrb.mxu3 %v2934_v21  ;;  %937 = vmatpush.msra.mxu0 %v2935_v13 }
 0x2ee   :  { %957 = vmatpush.msra.mxu1 %v2936_v23  ;;  %977 = vmatpush.msra.mxu2 %v2937_v12 }
 0x34a   :  { %v665_v16 = vpop.f32.mrf.mxu0 }
 0x34b   :  { %v708_v14 = vadd.f32 %v1218_v18, %v665_v16  ;;  %v685_v10 = vpop.f32.mrf.mxu1 }
 0x34c   :  { %v731_v15 = vadd.f32 %v729_v17, %v685_v10 }
 0x34d   :  { %v1219_v22 = vmul.f32 -1.442695, %v708_v14 }
 0x34e   :  { %v1220_v6 = vmul.f32 -1.442695, %v731_v15 }
 0x34f   :  { %1277 = vpow2.f32 %v1219_v22 }
 0x350   :  { %1279 = vpow2.f32 %v1220_v6  ;;  %v641_v20 = vpop.f32.mrf.mxu3 }
 0x351   :  { %v642_v55 = vadd.f32 %v2938_v51, %v641_v20  ;;  %v705_v23 = vpop.f32.mrf.mxu2 }
 0x353   :  { %1217 = vst [vmem:[%s2716_s5 + $0x6] sm:$0x3] %v642_v55 }
 0x355   :  { %v1278_v60 = vpop.eup %1277 }
 0x356   :  { %v1280_v2 = vpop.eup %1279  ;;  %v712_v8 = vadd.f32 1.0, %v1278_v60  ;;  %v753_v60 = vrot.slane %v1218_v18, 4 }
 0x357   :  { %v735_v21 = vadd.f32 1.0, %v1280_v2 }
 0x358   :  { %1281 = vrcp.f32 %v712_v8  ;;  %v724_v22 = vand.u32 2147483648, %v712_v8  ;;  %v722_v20 = vand.u32 2147483647, %v712_v8  ;;  %vm718_vm1 = vweird.f32 %v712_v8 }
 0x359   :  { %1283 = vrcp.f32 %v735_v21  ;;  %v747_v11 = vand.u32 2147483648, %v735_v21  ;;  %vm741_vm5 = vweird.f32 %v735_v21 }
 0x35a   :  { %v725_v55 = vor.u32 1.1754944e-38, %v724_v22  ;;  %vm723_vm3 = vcmp.eq.f32.partialorder %v722_v20, 8.507059e+37 }
 0x35b   :  { %v748_v18 = vor.u32 1.1754944e-38, %v747_v11  ;;  %v2510_v11 = vld [vmem:[%s2713_s3 + $0x78] sm:$0xff] }
 0x35e   :  { %v1282_v16 = vpop.eup %1281 }
 0x35f   :  { %v1284_v12 = vpop.eup %1283  ;;  %v714_v17 = vmul.f32 %v1282_v16, %v712_v8  ;;  %vm719_vm0 = vweird.f32 %v1282_v16 }
 0x360   :  { %v737_v14 = vmul.f32 %v1284_v12, %v735_v21  ;;  %vm720_vm2 = vmor %vm718_vm1, %vm719_vm0  ;;  %vm742_vm4 = vweird.f32 %v1284_v12 }
 0x361   :  { %v715_v10 = vsub.f32 1.0, %v714_v17  ;;  %v751_v17 = vadd.f32 %v2497_v19, %v705_v23  ;;  %vm743_vm6 = vmor %vm741_vm5, %vm742_vm4 }
 0x362   :  { %v738_v15 = vsub.f32 1.0, %v737_v14 }
 0x363   :  { %v716_v6 = vmul.f32 %v1282_v16, %v715_v10 }
 0x364   :  { %v739_v51 = vmul.f32 %v1284_v12, %v738_v15 }
 0x365   :  { %v717_v13 = vadd.f32 %v1282_v16, %v716_v6  ;;  %v745_v6 = vand.u32 2147483647, %v735_v21 }
 0x366   :  { %v740_v14 = vadd.f32 %v1284_v12, %v739_v51 }
 0x367   :  { %v721_v2 = vsel %vm720_vm2, %v1282_v16, %v717_v13  ;;  %vm746_vm7 = vcmp.eq.f32.partialorder %v745_v6, 8.507059e+37 }
 0x368   :  { %v726_v10 = vsel %vm723_vm3, %v725_v55, %v721_v2  ;;  %v744_v22 = vsel %vm743_vm6, %v1284_v12, %v740_v14 }
 0x369   :  { %v752_v15 = vmul.f32 %v751_v17, %v726_v10  ;;  %v749_v13 = vsel %vm746_vm7, %v748_v18, %v744_v22 }
 0x36a   :  { %v757_v16 = vsub.f32 1.0, %v749_v13  ;;  %v759_v7 = vmul.f32 %v749_v13, %v2417_v43  ;;  %v2519_v43 = vld [vmem:[%s2713_s3 + $0x70] sm:$0xff] }
 0x36b   :  { %v755_v8 = vadd.f32 %v753_v60, %v752_v15 }
 0x36d   :  { %1285 = vtanh.f32 %v755_v8 }
 0x373   :  { %v1286_v20 = vpop.eup %1285 }
 0x374   :  { %v758_v9 = vmul.f32 %v1286_v20, %v757_v16 }
 0x376   :  { %v2501_v23 = vadd.f32 %v759_v7, %v758_v9 }
 0x378   :  { %777 = vmatmul.f32.vlgmr.msra.gmra.mxu3 %v2501_v23  ;;  %801 = vmatmul.f32.vlgmr.msrb.gmra.mxu0 %v2501_v23 }
 0x379   :  { %821 = vmatmul.f32.vlgmr.msrb.gmra.mxu1 %v2501_v23  ;;  %841 = vmatmul.f32.vlgmr.msrb.gmra.mxu2 %v2501_v23 }
 0x37a   :  { %1035 = vmatpush.msra.mxu3 %v2510_v11  ;;  %1059 = vmatpush.msrb.mxu0 %v2108_v29  ;;  %v2528_v29 = vld [vmem:[%s2713_s3 + $0x68] sm:$0xff] }
 0x37b   :  { %1079 = vmatpush.msrb.mxu1 %v2114_v36  ;;  %1099 = vmatpush.msrb.mxu2 %v2120_v32  ;;  %v2537_v36 = vld [vmem:[%s2713_s3 + $0x60] sm:$0xff]  ;;  %v2546_v32 = vld [vmem:[%s2713_s3 + $0x58] sm:$0xff] }
 0x37c   :  { %1036 = vmatpush.msra.mxu3 %v2519_v43  ;;  %1060 = vmatpush.msrb.mxu0 %v2127_v35  ;;  %v2555_v35 = vld [vmem:[%s2713_s3 + $0x50] sm:$0xff] }
 0x37d   :  { %1080 = vmatpush.msrb.mxu1 %v2133_v48  ;;  %1100 = vmatpush.msrb.mxu2 %v2139_v63  ;;  %v2564_v48 = vld [vmem:[%s2713_s3 + $0x48] sm:$0xff]  ;;  %v2573_v63 = vld [vmem:[%s2713_s3 + $0x40] sm:$0xff] }
 0x37e   :  { %1037 = vmatpush.msra.mxu3 %v2528_v29  ;;  %1061 = vmatpush.msrb.mxu0 %v2146_v37  ;;  %v2582_v37 = vld [vmem:[%s2713_s3 + $0x38] sm:$0xff] }
 0x37f   :  { %1081 = vmatpush.msrb.mxu1 %v2152_v24  ;;  %1101 = vmatpush.msrb.mxu2 %v2158_v39  ;;  %v2591_v24 = vld [vmem:[%s2713_s3 + $0x30] sm:$0xff]  ;;  %v2600_v39 = vld [vmem:[%s2713_s3 + $0x28] sm:$0xff] }
 0x380   :  { %1038 = vmatpush.msra.mxu3 %v2537_v36  ;;  %1062 = vmatpush.msrb.mxu0 %v2165_v41  ;;  %v2609_v41 = vld [vmem:[%s2713_s3 + $0x20] sm:$0xff] }
 0x381   :  { %1082 = vmatpush.msrb.mxu1 %v2171_v44  ;;  %1102 = vmatpush.msrb.mxu2 %v2177_v56  ;;  %v2618_v44 = vld [vmem:[%s2713_s3 + $0x18] sm:$0xff]  ;;  %v2627_v56 = vld [vmem:[%s2713_s3 + $0x10] sm:$0xff] }
 0x382   :  { %1039 = vmatpush.msra.mxu3 %v2546_v32  ;;  %1063 = vmatpush.msrb.mxu0 %v2184_v45  ;;  %v2939_v45 = vld [vmem:[#allocation12_spill] sm:$0xff] }
 0x383   :  { %1083 = vmatpush.msrb.mxu1 %v2190_v25  ;;  %1103 = vmatpush.msrb.mxu2 %v2196_v38  ;;  %v2636_v25 = vld [vmem:[%s2713_s3 + $0x8] sm:$0xff]  ;;  %v2940_v38 = vld [vmem:[#allocation21_spill] sm:$0xff] }
 0x384   :  { %1040 = vmatpush.msra.mxu3 %v2555_v35  ;;  %1064 = vmatpush.msrb.mxu0 %v2203_v33  ;;  %v2941_v33 = vld [vmem:[#allocation14_spill] sm:$0xff] }
 0x385   :  { %1084 = vmatpush.msrb.mxu1 %v2209_v62  ;;  %1104 = vmatpush.msrb.mxu2 %v2215_v30  ;;  %v2942_v62 = vld [vmem:[#allocation15_spill] sm:$0xff] }
 0x386   :  { %1041 = vmatpush.msra.mxu3 %v2564_v48  ;;  %1065 = vmatpush.msrb.mxu0 %v2222_v42  ;;  %v2645_v30 = vld [vmem:[%s2713_s3] sm:$0xff] }
 0x387   :  { %1085 = vmatpush.msrb.mxu1 %v2228_v61  ;;  %1105 = vmatpush.msrb.mxu2 %v2234_v3  ;;  %v2943_v42 = vld [vmem:[#allocation22_spill] sm:$0xff]  ;;  %v2944_v61 = vld [vmem:[#allocation17_spill] sm:$0xff] }
 0x388   :  { %1042 = vmatpush.msra.mxu3 %v2573_v63  ;;  %1066 = vmatpush.msrb.mxu0 %v2241_v31  ;;  %v2945_v3 = vld [vmem:[#allocation18_spill] sm:$0xff] }
 0x389   :  { %1086 = vmatpush.msrb.mxu1 %v2247_v27  ;;  %1106 = vmatpush.msrb.mxu2 %v2253_v46  ;;  %v1222_v31 = vld [vmem:[%s2714_s0 + $0x1e] sm:$0x3f] }
 0x38a   :  { %1043 = vmatpush.msra.mxu3 %v2582_v37  ;;  %1067 = vmatpush.msrb.mxu0 %v2260_v34  ;;  %v866_v27 = vrot.slane %v1222_v31, 2  ;;  %v890_v17 = vrot.slane %v1222_v31, 4 }
 0x38b   :  { %1087 = vmatpush.msrb.mxu1 %v2266_v28  ;;  %1107 = vmatpush.msrb.mxu2 %v2272_v58 }
 0x38c   :  { %1044 = vmatpush.msra.mxu3 %v2591_v24  ;;  %1068 = vmatpush.msrb.mxu0 %v2279_v40 }
 0x38d   :  { %1088 = vmatpush.msrb.mxu1 %v2285_v0  ;;  %1108 = vmatpush.msrb.mxu2 %v2913_v50 }
 0x38e   :  { %1045 = vmatpush.msra.mxu3 %v2600_v39  ;;  %1069 = vmatpush.msrb.mxu0 %v2915_v52  ;;  %v2946_v52 = vld [vmem:[#allocation3_spill] sm:$0xff] }
 0x38f   :  { %1089 = vmatpush.msrb.mxu1 %v2916_v53  ;;  %1109 = vmatpush.msrb.mxu2 %v2917_v54 }
 0x390   :  { %1046 = vmatpush.msra.mxu3 %v2609_v41  ;;  %1070 = vmatpush.msrb.mxu0 %v2919_v57 }
 0x391   :  { %1090 = vmatpush.msrb.mxu1 %v2920_v59  ;;  %1110 = vmatpush.msrb.mxu2 %v2921_v49 }
 0x392   :  { %1047 = vmatpush.msra.mxu3 %v2618_v44  ;;  %1071 = vmatpush.msrb.mxu0 %v2923_v1 }
 0x393   :  { %1091 = vmatpush.msrb.mxu1 %v2924_v47  ;;  %1111 = vmatpush.msrb.mxu2 %v2925_v26 }
 0x394   :  { %1048 = vmatpush.msra.mxu3 %v2627_v56  ;;  %1072 = vmatpush.msrb.mxu0 %v2927_v4 }
 0x395   :  { %1092 = vmatpush.msrb.mxu1 %v2928_v5  ;;  %1112 = vmatpush.msrb.mxu2 %v2939_v45 }
 0x396   :  { %1049 = vmatpush.msra.mxu3 %v2636_v25  ;;  %1073 = vmatpush.msrb.mxu0 %v2940_v38 }
 0x397   :  { %1093 = vmatpush.msrb.mxu1 %v2941_v33  ;;  %1113 = vmatpush.msrb.mxu2 %v2942_v62 }
 0x398   :  { %1050 = vmatpush.msra.mxu3 %v2645_v30  ;;  %1074 = vmatpush.msrb.mxu0 %v2943_v42 }
 0x399   :  { %1094 = vmatpush.msrb.mxu1 %v2944_v61  ;;  %1114 = vmatpush.msrb.mxu2 %v2945_v3 }
 0x3f5   :  { %v802_v46 = vpop.f32.mrf.mxu0 }
 0x3f6   :  { %v845_v34 = vadd.f32 %v1222_v31, %v802_v46  ;;  %v822_v28 = vpop.f32.mrf.mxu1 }
 0x3f7   :  { %v868_v58 = vadd.f32 %v866_v27, %v822_v28 }
 0x3f8   :  { %v1223_v40 = vmul.f32 -1.442695, %v845_v34 }
 0x3f9   :  { %v1224_v0 = vmul.f32 -1.442695, %v868_v58 }
 0x3fa   :  { %1287 = vpow2.f32 %v1223_v40 }
 0x3fb   :  { %1289 = vpow2.f32 %v1224_v0  ;;  %v778_v50 = vpop.f32.mrf.mxu3 }
 0x3fc   :  { %v779_v53 = vadd.f32 %v2946_v52, %v778_v50  ;;  %v842_v55 = vpop.f32.mrf.mxu2 }
 0x3fd   :  { %v888_v10 = vadd.f32 %v2497_v19, %v842_v55 }
 0x3fe   :  { %1221 = vst [vmem:[%s2716_s5 + $0x8] sm:$0x3] %v779_v53 }
 0x400   :  { %v1288_v54 = vpop.eup %1287 }
 0x401   :  { %v1290_v57 = vpop.eup %1289  ;;  %v849_v59 = vadd.f32 1.0, %v1288_v54 }
 0x402   :  { %v872_v49 = vadd.f32 1.0, %v1290_v57 }
 0x403   :  { %1291 = vrcp.f32 %v849_v59  ;;  %v861_v9 = vand.u32 2147483648, %v849_v59  ;;  %v859_v51 = vand.u32 2147483647, %v849_v59  ;;  %vm855_vm9 = vweird.f32 %v849_v59 }
 0x404   :  { %1293 = vrcp.f32 %v872_v49  ;;  %v884_v8 = vand.u32 2147483648, %v872_v49  ;;  %vm878_vm13 = vweird.f32 %v872_v49  ;;  %v882_v18 = vand.u32 2147483647, %v872_v49 }
 0x405   :  { %v862_v2 = vor.u32 1.1754944e-38, %v861_v9  ;;  %vm860_vm11 = vcmp.eq.f32.partialorder %v859_v51, 8.507059e+37 }
 0x406   :  { %v885_v20 = vor.u32 1.1754944e-38, %v884_v8  ;;  %vm883_vm15 = vcmp.eq.f32.partialorder %v882_v18, 8.507059e+37 }
 0x409   :  { %v1292_v1 = vpop.eup %1291 }
 0x40a   :  { %v1294_v47 = vpop.eup %1293  ;;  %v851_v26 = vmul.f32 %v1292_v1, %v849_v59  ;;  %vm856_vm8 = vweird.f32 %v1292_v1 }
 0x40b   :  { %v874_v4 = vmul.f32 %v1294_v47, %v872_v49  ;;  %vm857_vm10 = vmor %vm855_vm9, %vm856_vm8  ;;  %vm879_vm12 = vweird.f32 %v1294_v47 }
 0x40c   :  { %v852_v5 = vsub.f32 1.0, %v851_v26  ;;  %vm880_vm14 = vmor %vm878_vm13, %vm879_vm12 }
 0x40d   :  { %v875_v7 = vsub.f32 1.0, %v874_v4 }
 0x40e   :  { %v853_v12 = vmul.f32 %v1292_v1, %v852_v5 }
 0x40f   :  { %v876_v21 = vmul.f32 %v1294_v47, %v875_v7 }
 0x410   :  { %v854_v60 = vadd.f32 %v1292_v1, %v853_v12 }
 0x411   :  { %v877_v15 = vadd.f32 %v1294_v47, %v876_v21 }
 0x412   :  { %v858_v14 = vsel %vm857_vm10, %v1292_v1, %v854_v60 }
 0x413   :  { %v863_v6 = vsel %vm860_vm11, %v862_v2, %v858_v14  ;;  %v881_v16 = vsel %vm880_vm14, %v1294_v47, %v877_v15  ;;  %v1230_v2 = vld [vmem:[%s2714_s0 + $0x2a] sm:$0x3f] }
 0x414   :  { %v889_v22 = vmul.f32 %v888_v10, %v863_v6  ;;  %v886_v45 = vsel %vm883_vm15, %v885_v20, %v881_v16 }
 0x415   :  { %v894_v38 = vsub.f32 1.0, %v886_v45  ;;  %v896_v42 = vmul.f32 %v886_v45, %v2501_v23  ;;  %v1226_v23 = vld [vmem:[%s2714_s0 + $0x24] sm:$0x3f] }
 0x416   :  { %v892_v13 = vadd.f32 %v890_v17, %v889_v22  ;;  %v1027_v53 = vrot.slane %v1226_v23, 4  ;;  %v1140_v17 = vrot.slane %v1230_v2, 2 }
 0x418   :  { %1295 = vtanh.f32 %v892_v13 }
 0x41e   :  { %v1296_v33 = vpop.eup %1295 }
 0x41f   :  { %v895_v62 = vmul.f32 %v1296_v33, %v894_v38 }
 0x421   :  { %v2660_v61 = vadd.f32 %v896_v42, %v895_v62 }
 0x423   :  { %914 = vmatmul.f32.vlgmr.msrb.gmra.mxu3 %v2660_v61  ;;  %938 = vmatmul.f32.vlgmr.msra.gmra.mxu0 %v2660_v61 }
 0x424   :  { %958 = vmatmul.f32.vlgmr.msra.gmra.mxu1 %v2660_v61  ;;  %978 = vmatmul.f32.vlgmr.msra.gmra.mxu2 %v2660_v61 }
 0x425   :  { %1172 = vmatpush.msrb.mxu3 %v2510_v11  ;;  %v1003_v11 = vrot.slane %v1226_v23, 2 }
 0x427   :  { %1173 = vmatpush.msrb.mxu3 %v2519_v43 }
 0x429   :  { %1174 = vmatpush.msrb.mxu3 %v2528_v29 }
 0x42b   :  { %1175 = vmatpush.msrb.mxu3 %v2537_v36 }
 0x42d   :  { %1176 = vmatpush.msrb.mxu3 %v2546_v32 }
 0x42f   :  { %1177 = vmatpush.msrb.mxu3 %v2555_v35 }
 0x431   :  { %1178 = vmatpush.msrb.mxu3 %v2564_v48 }
 0x433   :  { %1179 = vmatpush.msrb.mxu3 %v2573_v63 }
 0x435   :  { %1180 = vmatpush.msrb.mxu3 %v2582_v37  ;;  %v2688_v37 = vld [vmem:[%s2715_s4] ss:$0 sm:$0xff] }
 0x437   :  { %1181 = vmatpush.msrb.mxu3 %v2591_v24 }
 0x439   :  { %1182 = vmatpush.msrb.mxu3 %v2600_v39 }
 0x43b   :  { %1183 = vmatpush.msrb.mxu3 %v2609_v41 }
 0x43d   :  { %1184 = vmatpush.msrb.mxu3 %v2618_v44 }
 0x43f   :  { %1185 = vmatpush.msrb.mxu3 %v2627_v56 }
 0x441   :  { %1186 = vmatpush.msrb.mxu3 %v2636_v25 }
 0x443   :  { %1187 = vmatpush.msrb.mxu3 %v2645_v30 }
 0x4a0   :  { %v939_v43 = vpop.f32.mrf.mxu0 }
 0x4a1   :  { %v982_v29 = vadd.f32 %v1226_v23, %v939_v43  ;;  %v959_v36 = vpop.f32.mrf.mxu1 }
 0x4a2   :  { %v1005_v32 = vadd.f32 %v1003_v11, %v959_v36 }
 0x4a3   :  { %v1227_v35 = vmul.f32 -1.442695, %v982_v29 }
 0x4a4   :  { %v1228_v48 = vmul.f32 -1.442695, %v1005_v32 }
 0x4a5   :  { %1297 = vpow2.f32 %v1227_v35 }
 0x4a6   :  { %1299 = vpow2.f32 %v1228_v48  ;;  %v915_v63 = vpop.f32.mrf.mxu3 }
 0x4a7   :  { %v916_v24 = vadd.f32 %v2688_v37, %v915_v63  ;;  %v979_v0 = vpop.f32.mrf.mxu2 }
 0x4a8   :  { %v1025_v57 = vadd.f32 %v2497_v19, %v979_v0 }
 0x4a9   :  { %1225 = vst [vmem:[%s2716_s5 + $0xa] sm:$0x3] %v916_v24  ;;  %v1164_v24 = vrot.slane %v1230_v2, 4 }
 0x4ab   :  { %v1298_v39 = vpop.eup %1297 }
 0x4ac   :  { %v1300_v41 = vpop.eup %1299  ;;  %v986_v44 = vadd.f32 1.0, %v1298_v39 }
 0x4ad   :  { %v1009_v56 = vadd.f32 1.0, %v1300_v41 }
 0x4ae   :  { %1301 = vrcp.f32 %v986_v44  ;;  %v998_v34 = vand.u32 2147483648, %v986_v44  ;;  %v996_v58 = vand.u32 2147483647, %v986_v44  ;;  %vm992_vm1 = vweird.f32 %v986_v44 }
 0x4af   :  { %1303 = vrcp.f32 %v1009_v56  ;;  %v1021_v1 = vand.u32 2147483648, %v1009_v56  ;;  %vm1015_vm5 = vweird.f32 %v1009_v56  ;;  %v1019_v26 = vand.u32 2147483647, %v1009_v56 }
 0x4b0   :  { %v999_v52 = vor.u32 1.1754944e-38, %v998_v34  ;;  %vm997_vm3 = vcmp.eq.f32.partialorder %v996_v58, 8.507059e+37 }
 0x4b1   :  { %v1022_v7 = vor.u32 1.1754944e-38, %v1021_v1  ;;  %vm1020_vm7 = vcmp.eq.f32.partialorder %v1019_v26, 8.507059e+37 }
 0x4b4   :  { %v1302_v25 = vpop.eup %1301 }
 0x4b5   :  { %v1304_v30 = vpop.eup %1303  ;;  %v988_v3 = vmul.f32 %v1302_v25, %v986_v44  ;;  %vm993_vm0 = vweird.f32 %v1302_v25 }
 0x4b6   :  { %v1011_v31 = vmul.f32 %v1304_v30, %v1009_v56  ;;  %vm994_vm2 = vmor %vm992_vm1, %vm993_vm0  ;;  %vm1016_vm4 = vweird.f32 %v1304_v30 }
 0x4b7   :  { %v989_v27 = vsub.f32 1.0, %v988_v3  ;;  %vm1017_vm6 = vmor %vm1015_vm5, %vm1016_vm4 }
 0x4b8   :  { %v1012_v46 = vsub.f32 1.0, %v1011_v31 }
 0x4b9   :  { %v990_v28 = vmul.f32 %v1302_v25, %v989_v27 }
 0x4ba   :  { %v1013_v40 = vmul.f32 %v1304_v30, %v1012_v46 }
 0x4bb   :  { %v991_v50 = vadd.f32 %v1302_v25, %v990_v28 }
 0x4bc   :  { %v1014_v59 = vadd.f32 %v1304_v30, %v1013_v40 }
 0x4bd   :  { %v995_v54 = vsel %vm994_vm2, %v1302_v25, %v991_v50 }
 0x4be   :  { %v1000_v49 = vsel %vm997_vm3, %v999_v52, %v995_v54  ;;  %v1018_v5 = vsel %vm1017_vm6, %v1304_v30, %v1014_v59 }
 0x4bf   :  { %v1026_v47 = vmul.f32 %v1025_v57, %v1000_v49  ;;  %v1023_v9 = vsel %vm1020_vm7, %v1022_v7, %v1018_v5 }
 0x4c0   :  { %v1031_v12 = vsub.f32 1.0, %v1023_v9  ;;  %v1033_v55 = vmul.f32 %v1023_v9, %v2660_v61 }
 0x4c1   :  { %v1029_v4 = vadd.f32 %v1027_v53, %v1026_v47 }
 0x4c3   :  { %1305 = vtanh.f32 %v1029_v4 }
 0x4c9   :  { %v1306_v51 = vpop.eup %1305 }
 0x4ca   :  { %v1032_v21 = vmul.f32 %v1306_v51, %v1031_v12 }
 0x4cc   :  { %v1034_v60 = vadd.f32 %v1033_v55, %v1032_v21 }
 0x4ce   :  { %1051 = vmatmul.f32.vlgmr.msra.gmra.mxu3 %v1034_v60  ;;  %1075 = vmatmul.f32.vlgmr.msrb.gmra.mxu0 %v1034_v60 }
 0x4cf   :  { %1095 = vmatmul.f32.vlgmr.msrb.gmra.mxu1 %v1034_v60  ;;  %1115 = vmatmul.f32.vlgmr.msrb.gmra.mxu2 %v1034_v60 }
 0x54b   :  { %v1076_v14 = vpop.f32.mrf.mxu0 }
 0x54c   :  { %v1119_v10 = vadd.f32 %v1230_v2, %v1076_v14  ;;  %v1096_v15 = vpop.f32.mrf.mxu1 }
 0x54d   :  { %v1142_v6 = vadd.f32 %v1140_v17, %v1096_v15 }
 0x54e   :  { %v1231_v8 = vmul.f32 -1.442695, %v1119_v10 }
 0x54f   :  { %v1232_v22 = vmul.f32 -1.442695, %v1142_v6 }
 0x550   :  { %1307 = vpow2.f32 %v1231_v8 }
 0x551   :  { %1309 = vpow2.f32 %v1232_v22  ;;  %v1052_v18 = vpop.f32.mrf.mxu3 }
 0x552   :  { %v1053_v13 = vadd.f32 %v2688_v37, %v1052_v18  ;;  %v1116_v35 = vpop.f32.mrf.mxu2 }
 0x553   :  { %v1162_v41 = vadd.f32 %v2497_v19, %v1116_v35 }
 0x554   :  { %1229 = vst [vmem:[%s2716_s5 + $0xc] sm:$0x3] %v1053_v13 }
 0x556   :  { %v1308_v16 = vpop.eup %1307 }
 0x557   :  { %v1310_v20 = vpop.eup %1309  ;;  %v1123_v45 = vadd.f32 1.0, %v1308_v16 }
 0x558   :  { %v1146_v38 = vadd.f32 1.0, %v1310_v20 }
 0x559   :  { %1311 = vrcp.f32 %v1123_v45  ;;  %v1135_v43 = vand.u32 2147483648, %v1123_v45  ;;  %v1133_v36 = vand.u32 2147483647, %v1123_v45  ;;  %vm1129_vm9 = vweird.f32 %v1123_v45 }
 0x55a   :  { %1313 = vrcp.f32 %v1146_v38  ;;  %v1158_v30 = vand.u32 2147483648, %v1146_v38  ;;  %vm1152_vm13 = vweird.f32 %v1146_v38  ;;  %v1156_v3 = vand.u32 2147483647, %v1146_v38 }
 0x55b   :  { %v1136_v63 = vor.u32 1.1754944e-38, %v1135_v43  ;;  %vm1134_vm11 = vcmp.eq.f32.partialorder %v1133_v36, 8.507059e+37 }
 0x55c   :  { %v1159_v46 = vor.u32 1.1754944e-38, %v1158_v30  ;;  %vm1157_vm15 = vcmp.eq.f32.partialorder %v1156_v3, 8.507059e+37 }
 0x55f   :  { %v1312_v33 = vpop.eup %1311 }
 0x560   :  { %v1314_v62 = vpop.eup %1313  ;;  %v1125_v42 = vmul.f32 %v1312_v33, %v1123_v45  ;;  %vm1130_vm8 = vweird.f32 %v1312_v33 }
 0x561   :  { %v1148_v61 = vmul.f32 %v1314_v62, %v1146_v38  ;;  %vm1131_vm10 = vmor %vm1129_vm9, %vm1130_vm8  ;;  %vm1153_vm12 = vweird.f32 %v1314_v62 }
 0x562   :  { %v1126_v23 = vsub.f32 1.0, %v1125_v42  ;;  %vm1154_vm14 = vmor %vm1152_vm13, %vm1153_vm12 }
 0x563   :  { %v1149_v11 = vsub.f32 1.0, %v1148_v61 }
 0x564   :  { %v1127_v29 = vmul.f32 %v1312_v33, %v1126_v23 }
 0x565   :  { %v1150_v32 = vmul.f32 %v1314_v62, %v1149_v11 }
 0x566   :  { %v1128_v48 = vadd.f32 %v1312_v33, %v1127_v29 }
 0x567   :  { %v1151_v56 = vadd.f32 %v1314_v62, %v1150_v32 }
 0x568   :  { %v1132_v39 = vsel %vm1131_vm10, %v1312_v33, %v1128_v48 }
 0x569   :  { %v1137_v44 = vsel %vm1134_vm11, %v1136_v63, %v1132_v39  ;;  %v1155_v27 = vsel %vm1154_vm14, %v1314_v62, %v1151_v56 }
 0x56a   :  { %v1163_v25 = vmul.f32 %v1162_v41, %v1137_v44  ;;  %v1160_v34 = vsel %vm1157_vm15, %v1159_v46, %v1155_v27 }
 0x56b   :  { %v1168_v28 = vsub.f32 1.0, %v1160_v34  ;;  %v1170_v0 = vmul.f32 %v1160_v34, %v1034_v60 }
 0x56c   :  { %v1166_v31 = vadd.f32 %v1164_v24, %v1163_v25 }
 0x56e   :  { %1315 = vtanh.f32 %v1166_v31 }
 0x574   :  { %v1316_v58 = vpop.eup %1315 }
 0x575   :  { %v1169_v40 = vmul.f32 %v1316_v58, %v1168_v28 }
 0x577   :  { %v1171_v50 = vadd.f32 %v1170_v0, %v1169_v40 }
 0x579   :  { %1188 = vmatmul.f32.vlgmr.msrb.gmra.mxu3 %v1171_v50  ;;  %1194 = vst [vmem:[#allocation2] sm:$0x3] %v1171_v50 }
 0x57a   :  { %1195 = vst [vmem:[%s2717_s6] sm:$0x3] %v1171_v50 }
 0x5fc   :  { %v1189_v19 = vpop.f32.mrf.mxu3 }
 0x5fd   :  { %v1190_v52 = vadd.f32 %v2688_v37, %v1189_v19 }
 0x5ff   :  { %1233 = vst [vmem:[%s2716_s5 + $0xe] sm:$0x3] %v1190_v52 }

// kernel: gru_prepare_forward.1
= control target key start
LH: loop header
LB: loop body
LE: loop exit
PB: predicated region body
PF: predicated region fallthrough
CT: control target
= control target key end

     0   :  { %v1383_v3 = vmov 0.0   ;;  %s2711_s1 = inlined_call_operand.vmem [shape: f32[128,384], index: 1, kind: input, shape index: {}]   ;;  %s2712_s2 = inlined_call_operand.vmem [shape: f32[1,128], index: 2, kind: input, shape index: {}]   ;;  %s2713_s3 = inlined_call_operand.vmem [shape: f32[128,128], index: 3, kind: input, shape index: {}]   ;;  %s2714_s0 = inlined_call_operand.vmem [shape: f32[8,2,384], index: 0, kind: input, shape index: {}]   ;;  %s2715_s4 = inlined_call_operand.vmem [shape: f32[1,128], index: 4, kind: input, shape index: {}]   ;;  %s2716_s5 = inlined_call_operand.vmem [shape: f32[8,2,128], index: 5, kind: output, shape index: {0}]   ;;  %s2717_s6 = inlined_call_operand.vmem [shape: f32[2,128], index: 6, kind: output, shape index: {1}]  }
   0x1   :  { %v1422_v0 = vld [vmem:[%s2711_s1 + $0x168] sm:$0xff]  ;;  %v1427_v1 = vld [vmem:[%s2711_s1 + $0x170] sm:$0xff]  ;;  %26 = vst [vmem:[#allocation2] sm:$0x3] %v1383_v3  ;;  %v1439_v4 = vld [vmem:[%s2711_s1 + $0x158] sm:$0xff] }
   0x2   :  { %v1432_v2 = vld [vmem:[%s2711_s1 + $0x150] sm:$0xff]  ;;  %101 = vmatpush.msra.mxu0 %v1422_v0  ;;  %121 = vmatpush.msra.mxu1 %v1427_v1  ;;  %v1444_v5 = vld [vmem:[%s2711_s1 + $0x138] sm:$0xff]  ;;  %v1449_v6 = vld [vmem:[%s2711_s1 + $0x140] sm:$0xff] }
   0x3   :  { %v1456_v7 = vld [vmem:[%s2711_s1 + $0x120] sm:$0xff]  ;;  %v1461_v8 = vld [vmem:[%s2711_s1 + $0x128] sm:$0xff]  ;;  %v1473_v10 = vld [vmem:[%s2711_s1 + $0x110] sm:$0xff] }
   0x4   :  { %102 = vmatpush.msra.mxu0 %v1432_v2  ;;  %122 = vmatpush.msra.mxu1 %v1439_v4  ;;  %v1468_v9 = vld [vmem:[%s2711_s1 + $0x108] sm:$0xff]  ;;  %v1480_v11 = vld [vmem:[%s2711_s1 + $0xf0] sm:$0xff]  ;;  %v1485_v12 = vld [vmem:[%s2711_s1 + $0xf8] sm:$0xff] }
   0x5   :  { %v1490_v13 = vld [vmem:[%s2711_s1 + $0x178] sm:$0xff]  ;;  %v1497_v14 = vld [vmem:[%s2711_s1 + $0x160] sm:$0xff]  ;;  %v1515_v17 = vld [vmem:[%s2711_s1 + $0x148] sm:$0xff] }
   0x6   :  { %103 = vmatpush.msra.mxu0 %v1444_v5  ;;  %123 = vmatpush.msra.mxu1 %v1449_v6  ;;  %v1502_v15 = vld [vmem:[%s2711_s1 + $0xd8] sm:$0xff]  ;;  %v1507_v16 = vld [vmem:[%s2711_s1 + $0xe0] sm:$0xff]  ;;  %v1525_v19 = vld [vmem:[%s2711_s1 + $0xc8] sm:$0xff] }
   0x7   :  { %141 = vmatpush.msra.mxu2 %v1490_v13  ;;  %v1520_v18 = vld [vmem:[%s2711_s1 + $0xc0] sm:$0xff]  ;;  %v1533_v20 = vld [vmem:[%s2711_s1 + $0x130] sm:$0xff]  ;;  %v1538_v21 = vld [vmem:[%s2711_s1 + $0xa8] sm:$0xff] }
   0x8   :  { %104 = vmatpush.msra.mxu0 %v1456_v7  ;;  %124 = vmatpush.msra.mxu1 %v1461_v8  ;;  %v1543_v22 = vld [vmem:[%s2711_s1 + $0xb0] sm:$0xff]  ;;  %v1551_v23 = vld [vmem:[%s2711_s1 + $0x118] sm:$0xff]  ;;  %v1569_v26 = vld [vmem:[%s2711_s1 + $0x100] sm:$0xff] }
   0x9   :  { %142 = vmatpush.msra.mxu2 %v1497_v14  ;;  %v1556_v24 = vld [vmem:[%s2711_s1 + $0x90] sm:$0xff]  ;;  %v1561_v25 = vld [vmem:[%s2711_s1 + $0x98] sm:$0xff]  ;;  %v1579_v28 = vld [vmem:[%s2711_s1 + $0x80] sm:$0xff] }
   0xa   :  { %105 = vmatpush.msra.mxu0 %v1468_v9  ;;  %125 = vmatpush.msra.mxu1 %v1473_v10  ;;  %2819 = vst [vmem:[#allocation3_spill] sm:$0xff] %v1556_v24  ;;  %v1574_v27 = vld [vmem:[%s2711_s1 + $0x78] sm:$0xff]  ;;  %v1587_v29 = vld [vmem:[%s2711_s1 + $0xe8] sm:$0xff]  ;;  %v1592_v30 = vld [vmem:[%s2711_s1 + $0x60] sm:$0xff] }
   0xb   :  { %143 = vmatpush.msra.mxu2 %v1515_v17  ;;  %2820 = vst [vmem:[#allocation4_spill] sm:$0xff] %v1561_v25  ;;  %v1597_v31 = vld [vmem:[%s2711_s1 + $0x68] sm:$0xff]  ;;  %v1605_v32 = vld [vmem:[%s2711_s1 + $0xd0] sm:$0xff]  ;;  %v1623_v35 = vld [vmem:[%s2711_s1 + $0xb8] sm:$0xff] }
   0xc   :  { %106 = vmatpush.msra.mxu0 %v1480_v11  ;;  %126 = vmatpush.msra.mxu1 %v1485_v12  ;;  %2821 = vst [vmem:[#allocation5_spill] sm:$0xff] %v1574_v27  ;;  %v1610_v33 = vld [vmem:[%s2711_s1 + $0x48] sm:$0xff]  ;;  %v1615_v34 = vld [vmem:[%s2711_s1 + $0x50] sm:$0xff]  ;;  %v1633_v37 = vld [vmem:[%s2711_s1 + $0x38] sm:$0xff] }
   0xd   :  { %144 = vmatpush.msra.mxu2 %v1533_v20  ;;  %2822 = vst [vmem:[#allocation6_spill] sm:$0xff] %v1579_v28  ;;  %v1628_v36 = vld [vmem:[%s2711_s1 + $0x30] sm:$0xff]  ;;  %v1641_v38 = vld [vmem:[%s2711_s1 + $0xa0] sm:$0xff]  ;;  %v1646_v39 = vld [vmem:[%s2711_s1 + $0x18] sm:$0xff] }
   0xe   :  { %107 = vmatpush.msra.mxu0 %v1502_v15  ;;  %127 = vmatpush.msra.mxu1 %v1507_v16  ;;  %2823 = vst [vmem:[#allocation7_spill] sm:$0xff] %v1592_v30  ;;  %v1651_v40 = vld [vmem:[%s2711_s1 + $0x20] sm:$0xff]  ;;  %v1659_v41 = vld [vmem:[%s2711_s1 + $0x88] sm:$0xff]  ;;  %v1680_v45 = vld [vmem:[%s2711_s1 + $0x70] sm:$0xff] }
   0xf   :  { %145 = vmatpush.msra.mxu2 %v1551_v23  ;;  %2824 = vst [vmem:[#allocation8_spill] sm:$0xff] %v1597_v31  ;;  %v1664_v42 = vld [vmem:[%s2711_s1] sm:$0xff]  ;;  %v1669_v43 = vld [vmem:[%s2711_s1 + $0x8] sm:$0xff]  ;;  %v1689_v46 = vld [vmem:[%s2711_s1 + $0x58] sm:$0xff] }
  0x10   :  { %108 = vmatpush.msra.mxu0 %v1520_v18  ;;  %128 = vmatpush.msra.mxu1 %v1525_v19  ;;  %2825 = vst [vmem:[#allocation9_spill] sm:$0xff] %v1610_v33  ;;  %v1674_v44 = vld [vmem:[#allocation2] sm:$0x3]  ;;  %v1704_v48 = vld [vmem:[%s2711_s1 + $0x28] sm:$0xff]  ;;  %v1712_v49 = vld [vmem:[%s2711_s1 + $0x10] sm:$0xff] }
  0x11   :  { %146 = vmatpush.msra.mxu2 %v1569_v26  ;;  %2826 = vst [vmem:[#allocation10_spill] sm:$0xff] %v1615_v34  ;;  %v1696_v47 = vld [vmem:[%s2711_s1 + $0x40] sm:$0xff]  ;;  %v1811_v50 = vld [vmem:[%s2713_s3 + $0x78] sm:$0xff]  ;;  %v1817_v51 = vld [vmem:[%s2713_s3 + $0x70] sm:$0xff] }
  0x12   :  { %109 = vmatpush.msra.mxu0 %v1538_v21  ;;  %129 = vmatpush.msra.mxu1 %v1543_v22  ;;  %2827 = vst [vmem:[#allocation11_spill] sm:$0xff] %v1628_v36  ;;  %v1823_v52 = vld [vmem:[%s2713_s3 + $0x68] sm:$0xff]  ;;  %v1829_v53 = vld [vmem:[%s2713_s3 + $0x60] sm:$0xff]  ;;  %v1835_v54 = vld [vmem:[%s2713_s3 + $0x58] sm:$0xff] }
  0x13   :  { %147 = vmatpush.msra.mxu2 %v1587_v29  ;;  %2828 = vst [vmem:[#allocation12_spill] sm:$0xff] %v1633_v37  ;;  %214 = vmatpush.msra.mxu3 %v1811_v50  ;;  %v1841_v55 = vld [vmem:[%s2713_s3 + $0x50] sm:$0xff]  ;;  %v1846_v56 = vld [vmem:[%s2714_s0] sm:$0x3f]  ;;  %v1852_v57 = vld [vmem:[%s2713_s3 + $0x48] sm:$0xff] }
  0x14   :  { %110 = vmatpush.msra.mxu0 %v1556_v24  ;;  %130 = vmatpush.msra.mxu1 %v1561_v25  ;;  %2829 = vst [vmem:[#allocation13_spill] sm:$0xff] %v1641_v38  ;;  %v182_v58 = vrot.slane %v1846_v56, 2  ;;  %v1859_v59 = vld [vmem:[%s2713_s3 + $0x40] sm:$0xff]  ;;  %v1865_v60 = vld [vmem:[%s2713_s3 + $0x38] sm:$0xff] }
  0x15   :  { %148 = vmatpush.msra.mxu2 %v1605_v32  ;;  %2830 = vst [vmem:[#allocation14_spill] sm:$0xff] %v1646_v39  ;;  %215 = vmatpush.msra.mxu3 %v1817_v51 }
  0x16   :  { %111 = vmatpush.msra.mxu0 %v1574_v27  ;;  %131 = vmatpush.msra.mxu1 %v1579_v28  ;;  %2831 = vst [vmem:[#allocation15_spill] sm:$0xff] %v1651_v40 }
  0x17   :  { %149 = vmatpush.msra.mxu2 %v1623_v35  ;;  %2832 = vst [vmem:[#allocation16_spill] sm:$0xff] %v1659_v41  ;;  %216 = vmatpush.msra.mxu3 %v1823_v52 }
  0x18   :  { %112 = vmatpush.msra.mxu0 %v1592_v30  ;;  %132 = vmatpush.msra.mxu1 %v1597_v31  ;;  %2833 = vst [vmem:[#allocation17_spill] sm:$0xff] %v1664_v42 }
  0x19   :  { %2834 = vst [vmem:[#allocation18_spill] sm:$0xff] %v1669_v43  ;;  %150 = vmatpush.msra.mxu2 %v1641_v38  ;;  %217 = vmatpush.msra.mxu3 %v1829_v53 }
  0x1a   :  { %113 = vmatpush.msra.mxu0 %v1610_v33  ;;  %133 = vmatpush.msra.mxu1 %v1615_v34  ;;  %2835 = vst [vmem:[#allocation19_spill] sm:$0xff] %v1680_v45 }
  0x1b   :  { %151 = vmatpush.msra.mxu2 %v1659_v41  ;;  %2836 = vst [vmem:[#allocation20_spill] sm:$0xff] %v1689_v46  ;;  %218 = vmatpush.msra.mxu3 %v1835_v54 }
  0x1c   :  { %114 = vmatpush.msra.mxu0 %v1628_v36  ;;  %134 = vmatpush.msra.mxu1 %v1633_v37  ;;  %2837 = vst [vmem:[#allocation21_spill] sm:$0xff] %v1696_v47 }
  0x1d   :  { %152 = vmatpush.msra.mxu2 %v1680_v45  ;;  %2838 = vst [vmem:[#allocation22_spill] sm:$0xff] %v1704_v48  ;;  %219 = vmatpush.msra.mxu3 %v1841_v55 }
  0x1e   :  { %115 = vmatpush.msra.mxu0 %v1646_v39  ;;  %135 = vmatpush.msra.mxu1 %v1651_v40  ;;  %2839 = vst [vmem:[#allocation23_spill] sm:$0xff] %v1712_v49 }
  0x1f   :  { %153 = vmatpush.msra.mxu2 %v1689_v46  ;;  %220 = vmatpush.msra.mxu3 %v1852_v57 }
  0x20   :  { %116 = vmatpush.msra.mxu0 %v1664_v42  ;;  %136 = vmatpush.msra.mxu1 %v1669_v43 }
  0x21   :  { %117 = vmatmul.f32.vlgmr.msra.gmra.mxu0 %v1674_v44  ;;  %137 = vmatmul.f32.vlgmr.msra.gmra.mxu1 %v1674_v44 }
  0x22   :  { %237 = vmatpush.msrb.mxu0 %v1422_v0  ;;  %257 = vmatpush.msrb.mxu1 %v1427_v1 }
  0x23   :  { %154 = vmatpush.msra.mxu2 %v1696_v47  ;;  %221 = vmatpush.msra.mxu3 %v1859_v59 }
  0x24   :  { %238 = vmatpush.msrb.mxu0 %v1432_v2  ;;  %258 = vmatpush.msrb.mxu1 %v1439_v4 }
  0x25   :  { %155 = vmatpush.msra.mxu2 %v1704_v48  ;;  %222 = vmatpush.msra.mxu3 %v1865_v60 }
  0x26   :  { %239 = vmatpush.msrb.mxu0 %v1444_v5  ;;  %259 = vmatpush.msrb.mxu1 %v1449_v6 }
  0x27   :  { %156 = vmatpush.msra.mxu2 %v1712_v49 }
  0x28   :  { %240 = vmatpush.msrb.mxu0 %v1456_v7  ;;  %260 = vmatpush.msrb.mxu1 %v1461_v8 }
  0x29   :  { %157 = vmatmul.f32.vlgmr.msra.gmra.mxu2 %v1674_v44 }
  0x2a   :  { %241 = vmatpush.msrb.mxu0 %v1468_v9  ;;  %261 = vmatpush.msrb.mxu1 %v1473_v10 }
  0x2b   :  { %277 = vmatpush.msrb.mxu2 %v1490_v13 }
  0x2c   :  { %242 = vmatpush.msrb.mxu0 %v1480_v11  ;;  %262 = vmatpush.msrb.mxu1 %v1485_v12 }
  0x2d   :  { %278 = vmatpush.msrb.mxu2 %v1497_v14 }
  0x2e   :  { %243 = vmatpush.msrb.mxu0 %v1502_v15  ;;  %263 = vmatpush.msrb.mxu1 %v1507_v16 }
  0x2f   :  { %279 = vmatpush.msrb.mxu2 %v1515_v17 }
  0x30   :  { %244 = vmatpush.msrb.mxu0 %v1520_v18  ;;  %264 = vmatpush.msrb.mxu1 %v1525_v19 }
  0x31   :  { %280 = vmatpush.msrb.mxu2 %v1533_v20 }
  0x32   :  { %245 = vmatpush.msrb.mxu0 %v1538_v21  ;;  %265 = vmatpush.msrb.mxu1 %v1543_v22 }
  0x33   :  { %281 = vmatpush.msrb.mxu2 %v1551_v23 }
  0x34   :  { %246 = vmatpush.msrb.mxu0 %v1556_v24  ;;  %266 = vmatpush.msrb.mxu1 %v1561_v25 }
  0x35   :  { %282 = vmatpush.msrb.mxu2 %v1569_v26 }
  0x36   :  { %247 = vmatpush.msrb.mxu0 %v1574_v27  ;;  %267 = vmatpush.msrb.mxu1 %v1579_v28 }
  0x37   :  { %283 = vmatpush.msrb.mxu2 %v1587_v29 }
  0x38   :  { %248 = vmatpush.msrb.mxu0 %v1592_v30  ;;  %268 = vmatpush.msrb.mxu1 %v1597_v31 }
  0x39   :  { %284 = vmatpush.msrb.mxu2 %v1605_v32 }
  0x3a   :  { %249 = vmatpush.msrb.mxu0 %v1610_v33  ;;  %269 = vmatpush.msrb.mxu1 %v1615_v34 }
  0x3b   :  { %285 = vmatpush.msrb.mxu2 %v1623_v35 }
  0x3c   :  { %250 = vmatpush.msrb.mxu0 %v1628_v36  ;;  %270 = vmatpush.msrb.mxu1 %v1633_v37 }
  0x3d   :  { %286 = vmatpush.msrb.mxu2 %v1641_v38 }
  0x3e   :  { %251 = vmatpush.msrb.mxu0 %v1646_v39  ;;  %271 = vmatpush.msrb.mxu1 %v1651_v40 }
  0x3f   :  { %287 = vmatpush.msrb.mxu2 %v1659_v41 }
  0x40   :  { %252 = vmatpush.msrb.mxu0 %v1664_v42  ;;  %272 = vmatpush.msrb.mxu1 %v1669_v43 }
  0x41   :  { %288 = vmatpush.msrb.mxu2 %v1680_v45 }
  0x42   :  { %374 = vmatpush.msra.mxu0 %v1422_v0  ;;  %394 = vmatpush.msra.mxu1 %v1427_v1 }
  0x43   :  { %289 = vmatpush.msrb.mxu2 %v1689_v46 }
  0x44   :  { %375 = vmatpush.msra.mxu0 %v1432_v2  ;;  %395 = vmatpush.msra.mxu1 %v1439_v4 }
  0x45   :  { %290 = vmatpush.msrb.mxu2 %v1696_v47 }
  0x46   :  { %376 = vmatpush.msra.mxu0 %v1444_v5  ;;  %396 = vmatpush.msra.mxu1 %v1449_v6 }
  0x47   :  { %291 = vmatpush.msrb.mxu2 %v1704_v48 }
  0x48   :  { %377 = vmatpush.msra.mxu0 %v1456_v7  ;;  %397 = vmatpush.msra.mxu1 %v1461_v8 }
  0x49   :  { %292 = vmatpush.msrb.mxu2 %v1712_v49 }
  0x4a   :  { %378 = vmatpush.msra.mxu0 %v1468_v9  ;;  %398 = vmatpush.msra.mxu1 %v1473_v10 }
  0x4b   :  { %414 = vmatpush.msra.mxu2 %v1490_v13 }
  0x4c   :  { %379 = vmatpush.msra.mxu0 %v1480_v11  ;;  %399 = vmatpush.msra.mxu1 %v1485_v12 }
  0x4d   :  { %415 = vmatpush.msra.mxu2 %v1497_v14 }
  0x4e   :  { %380 = vmatpush.msra.mxu0 %v1502_v15  ;;  %400 = vmatpush.msra.mxu1 %v1507_v16 }
  0x4f   :  { %416 = vmatpush.msra.mxu2 %v1515_v17 }
  0x50   :  { %381 = vmatpush.msra.mxu0 %v1520_v18  ;;  %401 = vmatpush.msra.mxu1 %v1525_v19 }
  0x51   :  { %417 = vmatpush.msra.mxu2 %v1533_v20 }
  0x52   :  { %382 = vmatpush.msra.mxu0 %v1538_v21  ;;  %402 = vmatpush.msra.mxu1 %v1543_v22 }
  0x53   :  { %418 = vmatpush.msra.mxu2 %v1551_v23 }
  0x54   :  { %383 = vmatpush.msra.mxu0 %v1556_v24  ;;  %403 = vmatpush.msra.mxu1 %v1561_v25 }
  0x55   :  { %419 = vmatpush.msra.mxu2 %v1569_v26 }
  0x56   :  { %384 = vmatpush.msra.mxu0 %v1574_v27  ;;  %404 = vmatpush.msra.mxu1 %v1579_v28 }
  0x57   :  { %420 = vmatpush.msra.mxu2 %v1587_v29 }
  0x58   :  { %385 = vmatpush.msra.mxu0 %v1592_v30  ;;  %405 = vmatpush.msra.mxu1 %v1597_v31 }
  0x59   :  { %421 = vmatpush.msra.mxu2 %v1605_v32 }
  0x5a   :  { %386 = vmatpush.msra.mxu0 %v1610_v33  ;;  %406 = vmatpush.msra.mxu1 %v1615_v34 }
  0x5b   :  { %422 = vmatpush.msra.mxu2 %v1623_v35 }
  0x5c   :  { %387 = vmatpush.msra.mxu0 %v1628_v36  ;;  %407 = vmatpush.msra.mxu1 %v1633_v37 }
  0x5d   :  { %423 = vmatpush.msra.mxu2 %v1641_v38 }
  0x5e   :  { %388 = vmatpush.msra.mxu0 %v1646_v39  ;;  %408 = vmatpush.msra.mxu1 %v1651_v40 }
  0x5f   :  { %424 = vmatpush.msra.mxu2 %v1659_v41 }
  0x60   :  { %389 = vmatpush.msra.mxu0 %v1664_v42  ;;  %409 = vmatpush.msra.mxu1 %v1669_v43 }
  0x61   :  { %425 = vmatpush.msra.mxu2 %v1680_v45 }
  0x63   :  { %426 = vmatpush.msra.mxu2 %v1689_v46 }
  0x65   :  { %427 = vmatpush.msra.mxu2 %v1696_v47 }
  0x67   :  { %428 = vmatpush.msra.mxu2 %v1704_v48  ;;  %v1878_v48 = vld [vmem:[%s2713_s3 + $0x28] sm:$0xff] }
  0x68   :  { %2840 = vst [vmem:[#allocation24_spill] sm:$0xff] %v1878_v48 }
  0x69   :  { %429 = vmatpush.msra.mxu2 %v1712_v49  ;;  %v1872_v49 = vld [vmem:[%s2713_s3 + $0x30] sm:$0xff] }
  0x6a   :  { %223 = vmatpush.msra.mxu3 %v1872_v49 }
  0x6c   :  { %224 = vmatpush.msra.mxu3 %v1878_v48 }
  0x9e   :  { %v118_v61 = vpop.f32.mrf.mxu0  ;;  %v138_v62 = vpop.f32.mrf.mxu1 }
  0x9f   :  { %v161_v63 = vadd.f32 %v118_v61, %v1846_v56  ;;  %v184_v3 = vadd.f32 %v182_v58, %v138_v62  ;;  %v1884_v58 = vld [vmem:[%s2713_s3 + $0x20] sm:$0xff]  ;;  %v1890_v61 = vld [vmem:[%s2713_s3 + $0x18] sm:$0xff]  ;;  %v1896_v62 = vld [vmem:[%s2713_s3 + $0x10] sm:$0xff] }
  0xa0   :  { %2841 = vst [vmem:[#allocation25_spill] sm:$0xff] %v1884_v58  ;;  %225 = vmatpush.msra.mxu3 %v1884_v58 }
  0xa1   :  { %v1204_v43 = vmul.f32 -1.442695, %v161_v63  ;;  %v1205_v42 = vmul.f32 -1.442695, %v184_v3  ;;  %2842 = vst [vmem:[#allocation26_spill] sm:$0xff] %v1890_v61  ;;  %v1907_v63 = vld [vmem:[%s2713_s3] sm:$0xff] }
  0xa2   :  { %226 = vmatpush.msra.mxu3 %v1890_v61  ;;  %2843 = vst [vmem:[#allocation27_spill] sm:$0xff] %v1896_v62 }
  0xa3   :  { %1237 = vpow2.f32 %v1204_v43  ;;  %2845 = vst [vmem:[#allocation29_spill] sm:$0xff] %v1907_v63 }
  0xa4   :  { %1239 = vpow2.f32 %v1205_v42  ;;  %227 = vmatpush.msra.mxu3 %v1896_v62  ;;  %v1902_v42 = vld [vmem:[%s2713_s3 + $0x8] sm:$0xff] }
  0xa5   :  { %2844 = vst [vmem:[#allocation28_spill] sm:$0xff] %v1902_v42 }
  0xa6   :  { %228 = vmatpush.msra.mxu3 %v1902_v42 }
  0xa8   :  { %229 = vmatpush.msra.mxu3 %v1907_v63 }
  0xa9   :  { %v1238_v43 = vpop.eup %1237 }
  0xaa   :  { %v1240_v3 = vpop.eup %1239  ;;  %v165_v40 = vadd.f32 1.0, %v1238_v43  ;;  %350 = vmatpush.msrb.mxu3 %v1811_v50  ;;  %v1918_v43 = vld [vmem:[%s2712_s2] ss:$0 sm:$0xff] }
  0xab   :  { %v188_v39 = vadd.f32 1.0, %v1240_v3 }
  0xac   :  { %1241 = vrcp.f32 %v165_v40  ;;  %351 = vmatpush.msrb.mxu3 %v1817_v51  ;;  %v158_v33 = vpop.f32.mrf.mxu2  ;;  %v177_v45 = vand.u32 2147483648, %v165_v40  ;;  %v175_v30 = vand.u32 2147483647, %v165_v40  ;;  %vm171_vm1 = vweird.f32 %v165_v40 }
  0xad   :  { %1243 = vrcp.f32 %v188_v39  ;;  %v204_v27 = vadd.f32 %v1918_v43, %v158_v33  ;;  %vm194_vm4 = vweird.f32 %v188_v39  ;;  %v200_v24 = vand.u32 2147483648, %v188_v39 }
  0xae   :  { %352 = vmatpush.msrb.mxu3 %v1823_v52  ;;  %v178_v38 = vor.u32 1.1754944e-38, %v177_v45  ;;  %vm176_vm3 = vcmp.eq.f32.partialorder %v175_v30, 8.507059e+37 }
  0xaf   :  { %v201_v45 = vor.u32 1.1754944e-38, %v200_v24  ;;  %v2846_v24 = vld [vmem:[#allocation3_spill] sm:$0xff] }
  0xb0   :  { %353 = vmatpush.msrb.mxu3 %v1829_v53 }
  0xb2   :  { %v1242_v47 = vpop.eup %1241  ;;  %354 = vmatpush.msrb.mxu3 %v1835_v54 }
  0xb3   :  { %v1244_v37 = vpop.eup %1243  ;;  %v167_v36 = vmul.f32 %v1242_v47, %v165_v40  ;;  %vm172_vm0 = vweird.f32 %v1242_v47 }
  0xb4   :  { %v190_v46 = vmul.f32 %v1244_v37, %v188_v39  ;;  %355 = vmatpush.msrb.mxu3 %v1841_v55  ;;  %vm173_vm2 = vmor %vm171_vm1, %vm172_vm0  ;;  %vm195_vm5 = vweird.f32 %v1244_v37 }
  0xb5   :  { %v168_v3 = vsub.f32 1.0, %v167_v36  ;;  %v206_v36 = vrot.slane %v1846_v56, 4  ;;  %vm196_vm6 = vmor %vm194_vm4, %vm195_vm5  ;;  %v2851_v56 = vld [vmem:[#allocation16_spill] sm:$0xff] }
  0xb6   :  { %v191_v34 = vsub.f32 1.0, %v190_v46  ;;  %356 = vmatpush.msrb.mxu3 %v1852_v57 }
  0xb7   :  { %v169_v31 = vmul.f32 %v1242_v47, %v168_v3 }
  0xb8   :  { %v192_v41 = vmul.f32 %v1244_v37, %v191_v34  ;;  %357 = vmatpush.msrb.mxu3 %v1859_v59 }
  0xb9   :  { %v170_v28 = vadd.f32 %v1242_v47, %v169_v31  ;;  %v198_v31 = vand.u32 2147483647, %v188_v39  ;;  %v2847_v39 = vld [vmem:[#allocation4_spill] sm:$0xff] }
  0xba   :  { %v193_v46 = vadd.f32 %v1244_v37, %v192_v41  ;;  %358 = vmatpush.msrb.mxu3 %v1865_v60  ;;  %v2848_v41 = vld [vmem:[#allocation13_spill] sm:$0xff] }
  0xbb   :  { %v174_v25 = vsel %vm173_vm2, %v1242_v47, %v170_v28  ;;  %vm199_vm7 = vcmp.eq.f32.partialorder %v198_v31, 8.507059e+37  ;;  %v2850_v47 = vld [vmem:[#allocation6_spill] sm:$0xff] }
  0xbc   :  { %v179_v3 = vsel %vm176_vm3, %v178_v38, %v174_v25  ;;  %359 = vmatpush.msrb.mxu3 %v1872_v49  ;;  %v197_v40 = vsel %vm196_vm6, %v1244_v37, %v193_v46  ;;  %v2853_v46 = vld [vmem:[#allocation8_spill] sm:$0xff]  ;;  %v2856_v31 = vld [vmem:[#allocation10_spill] sm:$0xff] }
  0xbd   :  { %v205_v34 = vmul.f32 %v204_v27, %v179_v3  ;;  %v202_v28 = vsel %vm199_vm7, %v201_v45, %v197_v40  ;;  %v2854_v3 = vld [vmem:[#allocation19_spill] sm:$0xff]  ;;  %v2859_v45 = vld [vmem:[#allocation12_spill] sm:$0xff] }
  0xbe   :  { %360 = vmatpush.msrb.mxu3 %v1878_v48  ;;  %v210_v25 = vsub.f32 1.0, %v202_v28  ;;  %v212_v38 = vmul.f32 %v202_v28, %v1674_v44  ;;  %v2849_v44 = vld [vmem:[#allocation5_spill] sm:$0xff]  ;;  %v2858_v40 = vld [vmem:[#allocation11_spill] sm:$0xff] }
  0xbf   :  { %v208_v33 = vadd.f32 %v206_v36, %v205_v34  ;;  %v2852_v36 = vld [vmem:[#allocation7_spill] sm:$0xff]  ;;  %v2855_v34 = vld [vmem:[#allocation9_spill] sm:$0xff] }
  0xc0   :  { %361 = vmatpush.msrb.mxu3 %v1884_v58  ;;  %v2860_v28 = vld [vmem:[#allocation21_spill] sm:$0xff] }
  0xc1   :  { %1245 = vtanh.f32 %v208_v33  ;;  %v2857_v33 = vld [vmem:[#allocation20_spill] sm:$0xff] }
  0xc2   :  { %362 = vmatpush.msrb.mxu3 %v1890_v61 }
  0xc4   :  { %363 = vmatpush.msrb.mxu3 %v1896_v62 }
  0xc6   :  { %364 = vmatpush.msrb.mxu3 %v1902_v42 }
  0xc7   :  { %v1246_v27 = vpop.eup %1245 }
  0xc8   :  { %v211_v30 = vmul.f32 %v1246_v27, %v210_v25  ;;  %365 = vmatpush.msrb.mxu3 %v1907_v63  ;;  %v2861_v25 = vld [vmem:[#allocation14_spill] sm:$0xff]  ;;  %v2862_v27 = vld [vmem:[#allocation15_spill] sm:$0xff] }
  0xca   :  { %v1934_v37 = vadd.f32 %v212_v38, %v211_v30  ;;  %v2863_v30 = vld [vmem:[#allocation22_spill] sm:$0xff]  ;;  %v2864_v38 = vld [vmem:[#allocation17_spill] sm:$0xff] }
  0xcc   :  { %230 = vmatmul.f32.vlgmr.msra.gmra.mxu3 %v1934_v37  ;;  %253 = vmatmul.f32.vlgmr.msrb.gmra.mxu0 %v1934_v37 }
  0xcd   :  { %273 = vmatmul.f32.vlgmr.msrb.gmra.mxu1 %v1934_v37  ;;  %293 = vmatmul.f32.vlgmr.msrb.gmra.mxu2 %v1934_v37 }
  0xce   :  { %487 = vmatpush.msra.mxu3 %v1811_v50  ;;  %511 = vmatpush.msrb.mxu0 %v1422_v0 }
  0xcf   :  { %531 = vmatpush.msrb.mxu1 %v1427_v1  ;;  %551 = vmatpush.msrb.mxu2 %v1490_v13 }
  0xd0   :  { %488 = vmatpush.msra.mxu3 %v1817_v51  ;;  %512 = vmatpush.msrb.mxu0 %v1432_v2 }
  0xd1   :  { %532 = vmatpush.msrb.mxu1 %v1439_v4  ;;  %552 = vmatpush.msrb.mxu2 %v1497_v14 }
  0xd2   :  { %489 = vmatpush.msra.mxu3 %v1823_v52  ;;  %513 = vmatpush.msrb.mxu0 %v1444_v5 }
  0xd3   :  { %533 = vmatpush.msrb.mxu1 %v1449_v6  ;;  %553 = vmatpush.msrb.mxu2 %v1515_v17 }
  0xd4   :  { %490 = vmatpush.msra.mxu3 %v1829_v53  ;;  %514 = vmatpush.msrb.mxu0 %v1456_v7 }
  0xd5   :  { %534 = vmatpush.msrb.mxu1 %v1461_v8  ;;  %554 = vmatpush.msrb.mxu2 %v1533_v20 }
  0xd6   :  { %491 = vmatpush.msra.mxu3 %v1835_v54  ;;  %515 = vmatpush.msrb.mxu0 %v1468_v9 }
  0xd7   :  { %535 = vmatpush.msrb.mxu1 %v1473_v10  ;;  %555 = vmatpush.msrb.mxu2 %v1551_v23 }
  0xd8   :  { %492 = vmatpush.msra.mxu3 %v1841_v55  ;;  %516 = vmatpush.msrb.mxu0 %v1480_v11 }
  0xd9   :  { %536 = vmatpush.msrb.mxu1 %v1485_v12  ;;  %556 = vmatpush.msrb.mxu2 %v1569_v26 }
  0xda   :  { %493 = vmatpush.msra.mxu3 %v1852_v57  ;;  %517 = vmatpush.msrb.mxu0 %v1502_v15 }
  0xdb   :  { %537 = vmatpush.msrb.mxu1 %v1507_v16  ;;  %557 = vmatpush.msrb.mxu2 %v1587_v29 }
  0xdc   :  { %494 = vmatpush.msra.mxu3 %v1859_v59  ;;  %518 = vmatpush.msrb.mxu0 %v1520_v18 }
  0xdd   :  { %538 = vmatpush.msrb.mxu1 %v1525_v19  ;;  %558 = vmatpush.msrb.mxu2 %v1605_v32 }
  0xde   :  { %495 = vmatpush.msra.mxu3 %v1865_v60  ;;  %519 = vmatpush.msrb.mxu0 %v1538_v21 }
  0xdf   :  { %539 = vmatpush.msrb.mxu1 %v1543_v22  ;;  %559 = vmatpush.msrb.mxu2 %v1623_v35 }
  0xe0   :  { %496 = vmatpush.msra.mxu3 %v1872_v49  ;;  %520 = vmatpush.msrb.mxu0 %v2846_v24 }
  0xe1   :  { %540 = vmatpush.msrb.mxu1 %v2847_v39  ;;  %560 = vmatpush.msrb.mxu2 %v2848_v41 }
  0xe2   :  { %497 = vmatpush.msra.mxu3 %v1878_v48  ;;  %521 = vmatpush.msrb.mxu0 %v2849_v44 }
  0xe3   :  { %541 = vmatpush.msrb.mxu1 %v2850_v47  ;;  %561 = vmatpush.msrb.mxu2 %v2851_v56 }
  0xe4   :  { %498 = vmatpush.msra.mxu3 %v1884_v58  ;;  %522 = vmatpush.msrb.mxu0 %v2852_v36 }
  0xe5   :  { %542 = vmatpush.msrb.mxu1 %v2853_v46  ;;  %562 = vmatpush.msrb.mxu2 %v2854_v3 }
  0xe6   :  { %499 = vmatpush.msra.mxu3 %v1890_v61  ;;  %523 = vmatpush.msrb.mxu0 %v2855_v34 }
  0xe7   :  { %543 = vmatpush.msrb.mxu1 %v2856_v31  ;;  %563 = vmatpush.msrb.mxu2 %v2857_v33  ;;  %v2865_v33 = vld [vmem:[#allocation18_spill] sm:$0xff] }
  0xe8   :  { %500 = vmatpush.msra.mxu3 %v1896_v62  ;;  %524 = vmatpush.msrb.mxu0 %v2858_v40  ;;  %v2866_v62 = vld [vmem:[#allocation23_spill] sm:$0xff] }
  0xe9   :  { %544 = vmatpush.msrb.mxu1 %v2859_v45  ;;  %564 = vmatpush.msrb.mxu2 %v2860_v28  ;;  %v1206_v28 = vld [vmem:[%s2714_s0 + $0x6] sm:$0x3f] }
  0xea   :  { %501 = vmatpush.msra.mxu3 %v1902_v42  ;;  %525 = vmatpush.msrb.mxu0 %v2861_v25  ;;  %v318_v45 = vrot.slane %v1206_v28, 2 }
  0xeb   :  { %545 = vmatpush.msrb.mxu1 %v2862_v27  ;;  %565 = vmatpush.msrb.mxu2 %v2863_v30 }
  0xec   :  { %502 = vmatpush.msra.mxu3 %v1907_v63  ;;  %526 = vmatpush.msrb.mxu0 %v2864_v38  ;;  %v2011_v63 = vld [vmem:[%s2715_s4] ss:$0 sm:$0xff] }
  0xed   :  { %546 = vmatpush.msrb.mxu1 %v2865_v33  ;;  %566 = vmatpush.msrb.mxu2 %v2866_v62  ;;  %2867 = vst [vmem:[#allocation3_spill] sm:$0xff] %v2011_v63 }
 0x149   :  { %v254_v42 = vpop.f32.mrf.mxu0 }
 0x14a   :  { %v297_v40 = vadd.f32 %v1206_v28, %v254_v42  ;;  %v274_v25 = vpop.f32.mrf.mxu1 }
 0x14b   :  { %v320_v31 = vadd.f32 %v318_v45, %v274_v25 }
 0x14c   :  { %v1207_v27 = vmul.f32 -1.442695, %v297_v40 }
 0x14d   :  { %v1208_v38 = vmul.f32 -1.442695, %v320_v31 }
 0x14e   :  { %1247 = vpow2.f32 %v1207_v27 }
 0x14f   :  { %1249 = vpow2.f32 %v1208_v38  ;;  %v231_v33 = vpop.f32.mrf.mxu3 }
 0x150   :  { %v232_v62 = vadd.f32 %v2011_v63, %v231_v33  ;;  %v294_v36 = vpop.f32.mrf.mxu2 }
 0x151   :  { %v340_v56 = vadd.f32 %v1918_v43, %v294_v36 }
 0x152   :  { %234 = vst [vmem:[%s2716_s5] sm:$0x3] %v232_v62 }
 0x154   :  { %v1248_v30 = vpop.eup %1247 }
 0x155   :  { %v1250_v42 = vpop.eup %1249  ;;  %v301_v34 = vadd.f32 1.0, %v1248_v30  ;;  %v342_v30 = vrot.slane %v1206_v28, 4 }
 0x156   :  { %v324_v45 = vadd.f32 1.0, %v1250_v42 }
 0x157   :  { %1251 = vrcp.f32 %v301_v34  ;;  %v313_v38 = vand.u32 2147483648, %v301_v34  ;;  %v311_v33 = vand.u32 2147483647, %v301_v34  ;;  %vm307_vm9 = vweird.f32 %v301_v34 }
 0x158   :  { %1253 = vrcp.f32 %v324_v45  ;;  %vm330_vm13 = vweird.f32 %v324_v45 }
 0x159   :  { %v314_v62 = vor.u32 1.1754944e-38, %v313_v38  ;;  %vm312_vm11 = vcmp.eq.f32.partialorder %v311_v33, 8.507059e+37 }
 0x15d   :  { %v1252_v40 = vpop.eup %1251 }
 0x15e   :  { %v1254_v25 = vpop.eup %1253  ;;  %v303_v61 = vmul.f32 %v1252_v40, %v301_v34  ;;  %vm308_vm8 = vweird.f32 %v1252_v40 }
 0x15f   :  { %v326_v3 = vmul.f32 %v1254_v25, %v324_v45  ;;  %vm309_vm10 = vmor %vm307_vm9, %vm308_vm8  ;;  %vm331_vm12 = vweird.f32 %v1254_v25 }
 0x160   :  { %v304_v31 = vsub.f32 1.0, %v303_v61  ;;  %v336_v61 = vand.u32 2147483648, %v324_v45  ;;  %vm332_vm14 = vmor %vm330_vm13, %vm331_vm12 }
 0x161   :  { %v327_v27 = vsub.f32 1.0, %v326_v3 }
 0x162   :  { %v305_v46 = vmul.f32 %v1252_v40, %v304_v31  ;;  %v334_v31 = vand.u32 2147483647, %v324_v45  ;;  %v337_v41 = vor.u32 1.1754944e-38, %v336_v61 }
 0x163   :  { %v328_v63 = vmul.f32 %v1254_v25, %v327_v27 }
 0x164   :  { %v306_v58 = vadd.f32 %v1252_v40, %v305_v46  ;;  %vm335_vm15 = vcmp.eq.f32.partialorder %v334_v31, 8.507059e+37 }
 0x165   :  { %v329_v47 = vadd.f32 %v1254_v25, %v328_v63 }
 0x166   :  { %v310_v42 = vsel %vm309_vm10, %v1252_v40, %v306_v58 }
 0x167   :  { %v315_v44 = vsel %vm312_vm11, %v314_v62, %v310_v42  ;;  %v333_v27 = vsel %vm332_vm14, %v1254_v25, %v329_v47  ;;  %v2893_v47 = vld [vmem:[#allocation3_spill] sm:$0xff] }
 0x168   :  { %v341_v3 = vmul.f32 %v340_v56, %v315_v44  ;;  %v338_v46 = vsel %vm335_vm15, %v337_v41, %v333_v27 }
 0x169   :  { %v346_v34 = vsub.f32 1.0, %v338_v46  ;;  %v348_v40 = vmul.f32 %v338_v46, %v1934_v37 }
 0x16a   :  { %v344_v48 = vadd.f32 %v342_v30, %v341_v3 }
 0x16c   :  { %1255 = vtanh.f32 %v344_v48 }
 0x172   :  { %v1256_v28 = vpop.eup %1255 }
 0x173   :  { %v347_v58 = vmul.f32 %v1256_v28, %v346_v34 }
 0x175   :  { %v2019_v36 = vadd.f32 %v348_v40, %v347_v58 }
 0x177   :  { %366 = vmatmul.f32.vlgmr.msrb.gmra.mxu3 %v2019_v36  ;;  %390 = vmatmul.f32.vlgmr.msra.gmra.mxu0 %v2019_v36 }
 0x178   :  { %410 = vmatmul.f32.vlgmr.msra.gmra.mxu1 %v2019_v36  ;;  %430 = vmatmul.f32.vlgmr.msra.gmra.mxu2 %v2019_v36 }
 0x179   :  { %624 = vmatpush.msrb.mxu3 %v1811_v50  ;;  %648 = vmatpush.msra.mxu0 %v1422_v0  ;;  %v2868_v0 = vld [vmem:[#allocation13_spill] sm:$0xff] }
 0x17a   :  { %668 = vmatpush.msra.mxu1 %v1427_v1  ;;  %688 = vmatpush.msra.mxu2 %v1490_v13  ;;  %v2869_v1 = vld [vmem:[#allocation24_spill] sm:$0xff] }
 0x17b   :  { %625 = vmatpush.msrb.mxu3 %v1817_v51  ;;  %649 = vmatpush.msra.mxu0 %v1432_v2  ;;  %v2870_v2 = vld [vmem:[#allocation5_spill] sm:$0xff]  ;;  %v2880_v13 = vld [vmem:[#allocation20_spill] sm:$0xff] }
 0x17c   :  { %669 = vmatpush.msra.mxu1 %v1439_v4  ;;  %689 = vmatpush.msra.mxu2 %v1497_v14  ;;  %v2871_v4 = vld [vmem:[#allocation6_spill] sm:$0xff]  ;;  %v2881_v14 = vld [vmem:[#allocation27_spill] sm:$0xff] }
 0x17d   :  { %626 = vmatpush.msrb.mxu3 %v1823_v52  ;;  %650 = vmatpush.msra.mxu0 %v1444_v5  ;;  %v2872_v5 = vld [vmem:[#allocation16_spill] sm:$0xff] }
 0x17e   :  { %670 = vmatpush.msra.mxu1 %v1449_v6  ;;  %690 = vmatpush.msra.mxu2 %v1515_v17  ;;  %v2873_v6 = vld [vmem:[#allocation25_spill] sm:$0xff] }
 0x17f   :  { %627 = vmatpush.msrb.mxu3 %v1829_v53  ;;  %651 = vmatpush.msra.mxu0 %v1456_v7  ;;  %v2874_v7 = vld [vmem:[#allocation7_spill] sm:$0xff]  ;;  %v2884_v17 = vld [vmem:[#allocation21_spill] sm:$0xff] }
 0x180   :  { %671 = vmatpush.msra.mxu1 %v1461_v8  ;;  %691 = vmatpush.msra.mxu2 %v1533_v20  ;;  %v2875_v8 = vld [vmem:[#allocation8_spill] sm:$0xff]  ;;  %v2887_v20 = vld [vmem:[#allocation15_spill] sm:$0xff] }
 0x181   :  { %628 = vmatpush.msrb.mxu3 %v1835_v54  ;;  %652 = vmatpush.msra.mxu0 %v1468_v9  ;;  %v2876_v9 = vld [vmem:[#allocation19_spill] sm:$0xff] }
 0x182   :  { %672 = vmatpush.msra.mxu1 %v1473_v10  ;;  %692 = vmatpush.msra.mxu2 %v1551_v23  ;;  %v2877_v10 = vld [vmem:[#allocation26_spill] sm:$0xff]  ;;  %v2890_v23 = vld [vmem:[#allocation17_spill] sm:$0xff] }
 0x183   :  { %629 = vmatpush.msrb.mxu3 %v1841_v55  ;;  %653 = vmatpush.msra.mxu0 %v1480_v11  ;;  %v2878_v11 = vld [vmem:[#allocation9_spill] sm:$0xff] }
 0x184   :  { %673 = vmatpush.msra.mxu1 %v1485_v12  ;;  %693 = vmatpush.msra.mxu2 %v1569_v26  ;;  %v2879_v12 = vld [vmem:[#allocation10_spill] sm:$0xff] }
 0x185   :  { %630 = vmatpush.msrb.mxu3 %v1852_v57  ;;  %654 = vmatpush.msra.mxu0 %v1502_v15  ;;  %v2882_v15 = vld [vmem:[#allocation11_spill] sm:$0xff]  ;;  %v2891_v26 = vld [vmem:[#allocation18_spill] sm:$0xff] }
 0x186   :  { %674 = vmatpush.msra.mxu1 %v1507_v16  ;;  %694 = vmatpush.msra.mxu2 %v1587_v29  ;;  %v2883_v16 = vld [vmem:[#allocation12_spill] sm:$0xff]  ;;  %v2892_v29 = vld [vmem:[#allocation23_spill] sm:$0xff] }
 0x187   :  { %631 = vmatpush.msrb.mxu3 %v1859_v59  ;;  %655 = vmatpush.msra.mxu0 %v1520_v18  ;;  %v2885_v18 = vld [vmem:[#allocation28_spill] sm:$0xff] }
 0x188   :  { %675 = vmatpush.msra.mxu1 %v1525_v19  ;;  %695 = vmatpush.msra.mxu2 %v1605_v32  ;;  %v2886_v19 = vld [vmem:[#allocation14_spill] sm:$0xff]  ;;  %v1210_v32 = vld [vmem:[%s2714_s0 + $0xc] sm:$0x3f] }
 0x189   :  { %632 = vmatpush.msrb.mxu3 %v1865_v60  ;;  %656 = vmatpush.msra.mxu0 %v1538_v21  ;;  %v2888_v21 = vld [vmem:[#allocation22_spill] sm:$0xff] }
 0x18a   :  { %676 = vmatpush.msra.mxu1 %v1543_v22  ;;  %696 = vmatpush.msra.mxu2 %v1623_v35  ;;  %v2889_v22 = vld [vmem:[#allocation29_spill] sm:$0xff]  ;;  %v455_v35 = vrot.slane %v1210_v32, 2 }
 0x18b   :  { %633 = vmatpush.msrb.mxu3 %v1872_v49  ;;  %657 = vmatpush.msra.mxu0 %v2846_v24 }
 0x18c   :  { %677 = vmatpush.msra.mxu1 %v2847_v39  ;;  %697 = vmatpush.msra.mxu2 %v2868_v0 }
 0x18d   :  { %634 = vmatpush.msrb.mxu3 %v2869_v1  ;;  %658 = vmatpush.msra.mxu0 %v2870_v2  ;;  %v479_v2 = vrot.slane %v1210_v32, 4 }
 0x18e   :  { %678 = vmatpush.msra.mxu1 %v2871_v4  ;;  %698 = vmatpush.msra.mxu2 %v2872_v5 }
 0x18f   :  { %635 = vmatpush.msrb.mxu3 %v2873_v6  ;;  %659 = vmatpush.msra.mxu0 %v2874_v7 }
 0x190   :  { %679 = vmatpush.msra.mxu1 %v2875_v8  ;;  %699 = vmatpush.msra.mxu2 %v2876_v9 }
 0x191   :  { %636 = vmatpush.msrb.mxu3 %v2877_v10  ;;  %660 = vmatpush.msra.mxu0 %v2878_v11 }
 0x192   :  { %680 = vmatpush.msra.mxu1 %v2879_v12  ;;  %700 = vmatpush.msra.mxu2 %v2880_v13 }
 0x193   :  { %637 = vmatpush.msrb.mxu3 %v2881_v14  ;;  %661 = vmatpush.msra.mxu0 %v2882_v15 }
 0x194   :  { %681 = vmatpush.msra.mxu1 %v2883_v16  ;;  %701 = vmatpush.msra.mxu2 %v2884_v17 }
 0x195   :  { %638 = vmatpush.msrb.mxu3 %v2885_v18  ;;  %662 = vmatpush.msra.mxu0 %v2886_v19 }
 0x196   :  { %682 = vmatpush.msra.mxu1 %v2887_v20  ;;  %702 = vmatpush.msra.mxu2 %v2888_v21 }
 0x197   :  { %639 = vmatpush.msrb.mxu3 %v2889_v22  ;;  %663 = vmatpush.msra.mxu0 %v2890_v23 }
 0x198   :  { %683 = vmatpush.msra.mxu1 %v2891_v26  ;;  %703 = vmatpush.msra.mxu2 %v2892_v29  ;;  %v2108_v29 = vld [vmem:[%s2711_s1 + $0x168] sm:$0xff] }
 0x1f4   :  { %v391_v48 = vpop.f32.mrf.mxu0 }
 0x1f5   :  { %v434_v63 = vadd.f32 %v1210_v32, %v391_v48  ;;  %v411_v37 = vpop.f32.mrf.mxu1  ;;  %v2120_v32 = vld [vmem:[%s2711_s1 + $0x178] sm:$0xff] }
 0x1f6   :  { %v457_v24 = vadd.f32 %v455_v35, %v411_v37  ;;  %v2127_v35 = vld [vmem:[%s2711_s1 + $0x150] sm:$0xff]  ;;  %v2133_v48 = vld [vmem:[%s2711_s1 + $0x158] sm:$0xff] }
 0x1f7   :  { %v1211_v39 = vmul.f32 -1.442695, %v434_v63  ;;  %v2139_v63 = vld [vmem:[%s2711_s1 + $0x160] sm:$0xff]  ;;  %v2146_v37 = vld [vmem:[%s2711_s1 + $0x138] sm:$0xff] }
 0x1f8   :  { %v1212_v41 = vmul.f32 -1.442695, %v457_v24  ;;  %v2152_v24 = vld [vmem:[%s2711_s1 + $0x140] sm:$0xff] }
 0x1f9   :  { %1257 = vpow2.f32 %v1211_v39  ;;  %v2158_v39 = vld [vmem:[%s2711_s1 + $0x148] sm:$0xff] }
 0x1fa   :  { %1259 = vpow2.f32 %v1212_v41  ;;  %v367_v44 = vpop.f32.mrf.mxu3  ;;  %v2165_v41 = vld [vmem:[%s2711_s1 + $0x120] sm:$0xff] }
 0x1fb   :  { %v368_v56 = vadd.f32 %v2893_v47, %v367_v44  ;;  %v431_v58 = vpop.f32.mrf.mxu2  ;;  %v2171_v44 = vld [vmem:[%s2711_s1 + $0x128] sm:$0xff] }
 0x1fc   :  { %v477_v5 = vadd.f32 %v1918_v43, %v431_v58  ;;  %v2272_v58 = vld [vmem:[%s2711_s1 + $0xb8] sm:$0xff] }
 0x1fd   :  { %1209 = vst [vmem:[%s2716_s5 + $0x2] sm:$0x3] %v368_v56  ;;  %v2177_v56 = vld [vmem:[%s2711_s1 + $0x130] sm:$0xff] }
 0x1ff   :  { %v1258_v45 = vpop.eup %1257 }
 0x200   :  { %v1260_v25 = vpop.eup %1259  ;;  %v438_v38 = vadd.f32 1.0, %v1258_v45  ;;  %v2184_v45 = vld [vmem:[%s2711_s1 + $0x108] sm:$0xff] }
 0x201   :  { %v461_v33 = vadd.f32 1.0, %v1260_v25  ;;  %v2190_v25 = vld [vmem:[%s2711_s1 + $0x110] sm:$0xff] }
 0x202   :  { %1261 = vrcp.f32 %v438_v38  ;;  %v450_v27 = vand.u32 2147483648, %v438_v38  ;;  %v448_v34 = vand.u32 2147483647, %v438_v38  ;;  %vm444_vm1 = vweird.f32 %v438_v38 }
 0x203   :  { %1263 = vrcp.f32 %v461_v33  ;;  %v473_v9 = vand.u32 2147483648, %v461_v33  ;;  %vm467_vm5 = vweird.f32 %v461_v33  ;;  %v471_v12 = vand.u32 2147483647, %v461_v33 }
 0x204   :  { %v451_v0 = vor.u32 1.1754944e-38, %v450_v27  ;;  %vm449_vm3 = vcmp.eq.f32.partialorder %v448_v34, 8.507059e+37  ;;  %v2247_v27 = vld [vmem:[%s2711_s1 + $0xc8] sm:$0xff] }
 0x205   :  { %v474_v16 = vor.u32 1.1754944e-38, %v473_v9  ;;  %vm472_vm7 = vcmp.eq.f32.partialorder %v471_v12, 8.507059e+37  ;;  %v2260_v34 = vld [vmem:[%s2711_s1 + $0xa8] sm:$0xff] }
 0x206   :  { %v2323_v9 = vld [vmem:[%s2711_s1 + $0x68] sm:$0xff] }
 0x207   :  { %2899 = vst [vmem:[#allocation7_spill] sm:$0xff] %v2323_v9  ;;  %v2336_v12 = vld [vmem:[%s2711_s1 + $0x48] sm:$0xff] }
 0x208   :  { %v1262_v62 = vpop.eup %1261  ;;  %2901 = vst [vmem:[#allocation19_spill] sm:$0xff] %v2336_v12 }
 0x209   :  { %v1264_v30 = vpop.eup %1263  ;;  %v440_v42 = vmul.f32 %v1262_v62, %v438_v38  ;;  %vm445_vm0 = vweird.f32 %v1262_v62  ;;  %v2196_v38 = vld [vmem:[%s2711_s1 + $0x118] sm:$0xff] }
 0x20a   :  { %v463_v61 = vmul.f32 %v1264_v30, %v461_v33  ;;  %vm446_vm2 = vmor %vm444_vm1, %vm445_vm0  ;;  %vm468_vm4 = vweird.f32 %v1264_v30  ;;  %v2203_v33 = vld [vmem:[%s2711_s1 + $0xf0] sm:$0xff] }
 0x20b   :  { %v441_v3 = vsub.f32 1.0, %v440_v42  ;;  %vm469_vm6 = vmor %vm467_vm5, %vm468_vm4  ;;  %v2222_v42 = vld [vmem:[%s2711_s1 + $0xd8] sm:$0xff] }
 0x20c   :  { %v464_v31 = vsub.f32 1.0, %v463_v61  ;;  %v2228_v61 = vld [vmem:[%s2711_s1 + $0xe0] sm:$0xff] }
 0x20d   :  { %v442_v46 = vmul.f32 %v1262_v62, %v441_v3  ;;  %v2234_v3 = vld [vmem:[%s2711_s1 + $0xe8] sm:$0xff] }
 0x20e   :  { %v465_v28 = vmul.f32 %v1264_v30, %v464_v31  ;;  %v2241_v31 = vld [vmem:[%s2711_s1 + $0xc0] sm:$0xff] }
 0x20f   :  { %v443_v40 = vadd.f32 %v1262_v62, %v442_v46  ;;  %v2253_v46 = vld [vmem:[%s2711_s1 + $0xd0] sm:$0xff] }
 0x210   :  { %v466_v7 = vadd.f32 %v1264_v30, %v465_v28  ;;  %v2266_v28 = vld [vmem:[%s2711_s1 + $0xb0] sm:$0xff] }
 0x211   :  { %v447_v4 = vsel %vm446_vm2, %v1262_v62, %v443_v40  ;;  %v2209_v62 = vld [vmem:[%s2711_s1 + $0xf8] sm:$0xff]  ;;  %v2279_v40 = vld [vmem:[%s2711_s1 + $0x90] sm:$0xff] }
 0x212   :  { %v452_v8 = vsel %vm449_vm3, %v451_v0, %v447_v4  ;;  %v470_v15 = vsel %vm469_vm6, %v1264_v30, %v466_v7  ;;  %v2215_v30 = vld [vmem:[%s2711_s1 + $0x100] sm:$0xff]  ;;  %v2285_v0 = vld [vmem:[%s2711_s1 + $0x98] sm:$0xff]  ;;  %v2310_v7 = vld [vmem:[%s2711_s1 + $0x88] sm:$0xff] }
 0x213   :  { %v478_v11 = vmul.f32 %v477_v5, %v452_v8  ;;  %v475_v17 = vsel %vm472_vm7, %v474_v16, %v470_v15  ;;  %v2298_v4 = vld [vmem:[%s2711_s1 + $0x78] sm:$0xff]  ;;  %v2304_v5 = vld [vmem:[%s2711_s1 + $0x80] sm:$0xff]  ;;  %2897 = vst [vmem:[#allocation6_spill] sm:$0xff] %v2310_v7  ;;  %v2355_v16 = vld [vmem:[%s2711_s1 + $0x30] sm:$0xff] }
 0x214   :  { %v483_v19 = vsub.f32 1.0, %v475_v17  ;;  %v485_v23 = vmul.f32 %v475_v17, %v2019_v36  ;;  %v2114_v36 = vld [vmem:[%s2711_s1 + $0x170] sm:$0xff]  ;;  %2895 = vst [vmem:[#allocation13_spill] sm:$0xff] %v2298_v4  ;;  %v2317_v8 = vld [vmem:[%s2711_s1 + $0x60] sm:$0xff]  ;;  %v2348_v15 = vld [vmem:[%s2711_s1 + $0x58] sm:$0xff] }
 0x215   :  { %v481_v13 = vadd.f32 %v479_v2, %v478_v11  ;;  %v2291_v2 = vld [vmem:[%s2711_s1 + $0xa0] sm:$0xff]  ;;  %2896 = vst [vmem:[#allocation5_spill] sm:$0xff] %v2304_v5  ;;  %v2329_v11 = vld [vmem:[%s2711_s1 + $0x70] sm:$0xff]  ;;  %v2361_v17 = vld [vmem:[%s2711_s1 + $0x38] sm:$0xff] }
 0x216   :  { %2894 = vst [vmem:[#allocation4_spill] sm:$0xff] %v2291_v2 }
 0x217   :  { %1265 = vtanh.f32 %v481_v13  ;;  %2898 = vst [vmem:[#allocation16_spill] sm:$0xff] %v2317_v8  ;;  %v2342_v13 = vld [vmem:[%s2711_s1 + $0x50] sm:$0xff] }
 0x218   :  { %2900 = vst [vmem:[#allocation8_spill] sm:$0xff] %v2329_v11 }
 0x219   :  { %2902 = vst [vmem:[#allocation9_spill] sm:$0xff] %v2342_v13 }
 0x21a   :  { %2903 = vst [vmem:[#allocation10_spill] sm:$0xff] %v2348_v15 }
 0x21b   :  { %2904 = vst [vmem:[#allocation20_spill] sm:$0xff] %v2355_v16 }
 0x21c   :  { %2905 = vst [vmem:[#allocation11_spill] sm:$0xff] %v2361_v17 }
 0x21d   :  { %v1266_v20 = vpop.eup %1265 }
 0x21e   :  { %v484_v21 = vmul.f32 %v1266_v20, %v483_v19  ;;  %v2367_v19 = vld [vmem:[%s2711_s1 + $0x40] sm:$0xff]  ;;  %v2374_v20 = vld [vmem:[%s2711_s1 + $0x18] sm:$0xff] }
 0x21f   :  { %2906 = vst [vmem:[#allocation12_spill] sm:$0xff] %v2367_v19 }
 0x220   :  { %v2098_v26 = vadd.f32 %v485_v23, %v484_v21  ;;  %2907 = vst [vmem:[#allocation21_spill] sm:$0xff] %v2374_v20  ;;  %v2380_v21 = vld [vmem:[%s2711_s1 + $0x20] sm:$0xff]  ;;  %v2386_v23 = vld [vmem:[%s2711_s1 + $0x28] sm:$0xff] }
 0x221   :  { %2908 = vst [vmem:[#allocation14_spill] sm:$0xff] %v2380_v21 }
 0x222   :  { %503 = vmatmul.f32.vlgmr.msra.gmra.mxu3 %v2098_v26  ;;  %527 = vmatmul.f32.vlgmr.msrb.gmra.mxu0 %v2098_v26  ;;  %2909 = vst [vmem:[#allocation15_spill] sm:$0xff] %v2386_v23 }
 0x223   :  { %547 = vmatmul.f32.vlgmr.msrb.gmra.mxu1 %v2098_v26  ;;  %567 = vmatmul.f32.vlgmr.msrb.gmra.mxu2 %v2098_v26 }
 0x224   :  { %761 = vmatpush.msra.mxu3 %v1811_v50  ;;  %785 = vmatpush.msrb.mxu0 %v2108_v29 }
 0x225   :  { %805 = vmatpush.msrb.mxu1 %v2114_v36  ;;  %825 = vmatpush.msrb.mxu2 %v2120_v32 }
 0x226   :  { %762 = vmatpush.msra.mxu3 %v1817_v51  ;;  %786 = vmatpush.msrb.mxu0 %v2127_v35 }
 0x227   :  { %806 = vmatpush.msrb.mxu1 %v2133_v48  ;;  %826 = vmatpush.msrb.mxu2 %v2139_v63 }
 0x228   :  { %763 = vmatpush.msra.mxu3 %v1823_v52  ;;  %787 = vmatpush.msrb.mxu0 %v2146_v37 }
 0x229   :  { %807 = vmatpush.msrb.mxu1 %v2152_v24  ;;  %827 = vmatpush.msrb.mxu2 %v2158_v39 }
 0x22a   :  { %764 = vmatpush.msra.mxu3 %v1829_v53  ;;  %788 = vmatpush.msrb.mxu0 %v2165_v41 }
 0x22b   :  { %808 = vmatpush.msrb.mxu1 %v2171_v44  ;;  %828 = vmatpush.msrb.mxu2 %v2177_v56 }
 0x22c   :  { %765 = vmatpush.msra.mxu3 %v1835_v54  ;;  %789 = vmatpush.msrb.mxu0 %v2184_v45 }
 0x22d   :  { %809 = vmatpush.msrb.mxu1 %v2190_v25  ;;  %829 = vmatpush.msrb.mxu2 %v2196_v38 }
 0x22e   :  { %766 = vmatpush.msra.mxu3 %v1841_v55  ;;  %790 = vmatpush.msrb.mxu0 %v2203_v33 }
 0x22f   :  { %810 = vmatpush.msrb.mxu1 %v2209_v62  ;;  %830 = vmatpush.msrb.mxu2 %v2215_v30 }
 0x230   :  { %767 = vmatpush.msra.mxu3 %v1852_v57  ;;  %791 = vmatpush.msrb.mxu0 %v2222_v42 }
 0x231   :  { %811 = vmatpush.msrb.mxu1 %v2228_v61  ;;  %831 = vmatpush.msrb.mxu2 %v2234_v3 }
 0x232   :  { %768 = vmatpush.msra.mxu3 %v1859_v59  ;;  %792 = vmatpush.msrb.mxu0 %v2241_v31 }
 0x233   :  { %812 = vmatpush.msrb.mxu1 %v2247_v27  ;;  %832 = vmatpush.msrb.mxu2 %v2253_v46 }
 0x234   :  { %769 = vmatpush.msra.mxu3 %v1865_v60  ;;  %793 = vmatpush.msrb.mxu0 %v2260_v34 }
 0x235   :  { %813 = vmatpush.msrb.mxu1 %v2266_v28  ;;  %833 = vmatpush.msrb.mxu2 %v2272_v58 }
 0x236   :  { %770 = vmatpush.msra.mxu3 %v1872_v49  ;;  %794 = vmatpush.msrb.mxu0 %v2279_v40 }
 0x237   :  { %814 = vmatpush.msrb.mxu1 %v2285_v0  ;;  %834 = vmatpush.msrb.mxu2 %v2291_v2 }
 0x238   :  { %771 = vmatpush.msra.mxu3 %v2869_v1  ;;  %795 = vmatpush.msrb.mxu0 %v2298_v4 }
 0x239   :  { %815 = vmatpush.msrb.mxu1 %v2304_v5  ;;  %835 = vmatpush.msrb.mxu2 %v2310_v7 }
 0x23a   :  { %772 = vmatpush.msra.mxu3 %v2873_v6  ;;  %796 = vmatpush.msrb.mxu0 %v2317_v8 }
 0x23b   :  { %816 = vmatpush.msrb.mxu1 %v2323_v9  ;;  %836 = vmatpush.msrb.mxu2 %v2329_v11 }
 0x23c   :  { %773 = vmatpush.msra.mxu3 %v2877_v10  ;;  %797 = vmatpush.msrb.mxu0 %v2336_v12 }
 0x23d   :  { %817 = vmatpush.msrb.mxu1 %v2342_v13  ;;  %837 = vmatpush.msrb.mxu2 %v2348_v15 }
 0x23e   :  { %774 = vmatpush.msra.mxu3 %v2881_v14  ;;  %798 = vmatpush.msrb.mxu0 %v2355_v16 }
 0x23f   :  { %818 = vmatpush.msrb.mxu1 %v2361_v17  ;;  %838 = vmatpush.msrb.mxu2 %v2367_v19 }
 0x240   :  { %775 = vmatpush.msra.mxu3 %v2885_v18  ;;  %799 = vmatpush.msrb.mxu0 %v2374_v20  ;;  %v2393_v20 = vld [vmem:[%s2711_s1] sm:$0xff] }
 0x241   :  { %819 = vmatpush.msrb.mxu1 %v2380_v21  ;;  %839 = vmatpush.msrb.mxu2 %v2386_v23  ;;  %2910 = vst [vmem:[#allocation22_spill] sm:$0xff] %v2393_v20  ;;  %v2399_v21 = vld [vmem:[%s2711_s1 + $0x8] sm:$0xff]  ;;  %v2405_v23 = vld [vmem:[%s2711_s1 + $0x10] sm:$0xff] }
 0x242   :  { %776 = vmatpush.msra.mxu3 %v2889_v22  ;;  %800 = vmatpush.msrb.mxu0 %v2393_v20  ;;  %2911 = vst [vmem:[#allocation17_spill] sm:$0xff] %v2399_v21  ;;  %v1214_v22 = vld [vmem:[%s2714_s0 + $0x12] sm:$0x3f] }
 0x243   :  { %820 = vmatpush.msrb.mxu1 %v2399_v21  ;;  %2912 = vst [vmem:[#allocation18_spill] sm:$0xff] %v2405_v23  ;;  %840 = vmatpush.msrb.mxu2 %v2405_v23  ;;  %v592_v18 = vrot.slane %v1214_v22, 2 }
 0x29f   :  { %v528_v20 = vpop.f32.mrf.mxu0 }
 0x2a0   :  { %v571_v19 = vadd.f32 %v1214_v22, %v528_v20  ;;  %v548_v17 = vpop.f32.mrf.mxu1 }
 0x2a1   :  { %v594_v16 = vadd.f32 %v592_v18, %v548_v17 }
 0x2a2   :  { %v1215_v14 = vmul.f32 -1.442695, %v571_v19 }
 0x2a3   :  { %v1216_v15 = vmul.f32 -1.442695, %v594_v16 }
 0x2a4   :  { %1267 = vpow2.f32 %v1215_v14 }
 0x2a5   :  { %1269 = vpow2.f32 %v1216_v15  ;;  %v504_v21 = vpop.f32.mrf.mxu3 }
 0x2a6   :  { %v505_v13 = vadd.f32 %v2893_v47, %v504_v21  ;;  %v568_v8 = vpop.f32.mrf.mxu2 }
 0x2a7   :  { %v614_v7 = vadd.f32 %v1918_v43, %v568_v8  ;;  %v2930_v8 = vld [vmem:[#allocation28_spill] sm:$0xff] }
 0x2a8   :  { %1213 = vst [vmem:[%s2716_s5 + $0x4] sm:$0x3] %v505_v13 }
 0x2aa   :  { %v1268_v23 = vpop.eup %1267 }
 0x2ab   :  { %v1270_v12 = vpop.eup %1269  ;;  %v575_v10 = vadd.f32 1.0, %v1268_v23  ;;  %v616_v23 = vrot.slane %v1214_v22, 4 }
 0x2ac   :  { %v598_v11 = vadd.f32 1.0, %v1270_v12 }
 0x2ad   :  { %1271 = vrcp.f32 %v575_v10  ;;  %v587_v15 = vand.u32 2147483648, %v575_v10  ;;  %v585_v21 = vand.u32 2147483647, %v575_v10  ;;  %vm581_vm9 = vweird.f32 %v575_v10 }
 0x2ae   :  { %1273 = vrcp.f32 %v598_v11  ;;  %vm604_vm13 = vweird.f32 %v598_v11 }
 0x2af   :  { %v588_v13 = vor.u32 1.1754944e-38, %v587_v15  ;;  %vm586_vm11 = vcmp.eq.f32.partialorder %v585_v21, 8.507059e+37  ;;  %v2934_v21 = vld [vmem:[#allocation29_spill] sm:$0xff] }
 0x2b3   :  { %v1272_v20 = vpop.eup %1271 }
 0x2b4   :  { %v1274_v9 = vpop.eup %1273  ;;  %v577_v18 = vmul.f32 %v1272_v20, %v575_v10  ;;  %vm582_vm8 = vweird.f32 %v1272_v20 }
 0x2b5   :  { %v600_v17 = vmul.f32 %v1274_v9, %v598_v11  ;;  %vm583_vm10 = vmor %vm581_vm9, %vm582_vm8  ;;  %vm605_vm12 = vweird.f32 %v1274_v9 }
 0x2b6   :  { %v578_v16 = vsub.f32 1.0, %v577_v18  ;;  %v610_v18 = vand.u32 2147483648, %v598_v11  ;;  %vm606_vm14 = vmor %vm604_vm13, %vm605_vm12 }
 0x2b7   :  { %v601_v14 = vsub.f32 1.0, %v600_v17 }
 0x2b8   :  { %v579_v19 = vmul.f32 %v1272_v20, %v578_v16  ;;  %v608_v16 = vand.u32 2147483647, %v598_v11  ;;  %v611_v2 = vor.u32 1.1754944e-38, %v610_v18  ;;  %v2932_v11 = vld [vmem:[#allocation14_spill] sm:$0xff] }
 0x2b9   :  { %v602_v47 = vmul.f32 %v1274_v9, %v601_v14  ;;  %v1218_v18 = vld [vmem:[%s2714_s0 + $0x18] sm:$0x3f] }
 0x2ba   :  { %v580_v6 = vadd.f32 %v1272_v20, %v579_v19  ;;  %vm609_vm15 = vcmp.eq.f32.partialorder %v608_v16, 8.507059e+37  ;;  %v2933_v19 = vld [vmem:[#allocation15_spill] sm:$0xff] }
 0x2bb   :  { %v603_v5 = vadd.f32 %v1274_v9, %v602_v47  ;;  %v2924_v47 = vld [vmem:[#allocation9_spill] sm:$0xff] }
 0x2bc   :  { %v584_v12 = vsel %vm583_vm10, %v1272_v20, %v580_v6 }
 0x2bd   :  { %v589_v4 = vsel %vm586_vm11, %v588_v13, %v584_v12  ;;  %v607_v14 = vsel %vm606_vm14, %v1274_v9, %v603_v5  ;;  %v2928_v5 = vld [vmem:[#allocation11_spill] sm:$0xff]  ;;  %v2931_v9 = vld [vmem:[#allocation21_spill] sm:$0xff]  ;;  %v2935_v13 = vld [vmem:[#allocation22_spill] sm:$0xff] }
 0x2be   :  { %v615_v17 = vmul.f32 %v614_v7, %v589_v4  ;;  %v612_v10 = vsel %vm609_vm15, %v611_v2, %v607_v14  ;;  %v2926_v2 = vld [vmem:[#allocation27_spill] sm:$0xff]  ;;  %v2927_v4 = vld [vmem:[#allocation20_spill] sm:$0xff]  ;;  %v2937_v12 = vld [vmem:[#allocation18_spill] sm:$0xff] }
 0x2bf   :  { %v620_v15 = vsub.f32 1.0, %v612_v10  ;;  %v622_v20 = vmul.f32 %v612_v10, %v2098_v26  ;;  %v2925_v26 = vld [vmem:[#allocation10_spill] sm:$0xff]  ;;  %v2929_v7 = vld [vmem:[#allocation12_spill] sm:$0xff] }
 0x2c0   :  { %v618_v1 = vadd.f32 %v616_v23, %v615_v17  ;;  %v2936_v23 = vld [vmem:[#allocation17_spill] sm:$0xff]  ;;  %v729_v17 = vrot.slane %v1218_v18, 2 }
 0x2c2   :  { %1275 = vtanh.f32 %v618_v1  ;;  %v2923_v1 = vld [vmem:[#allocation19_spill] sm:$0xff] }
 0x2c8   :  { %v1276_v22 = vpop.eup %1275 }
 0x2c9   :  { %v621_v6 = vmul.f32 %v1276_v22, %v620_v15 }
 0x2cb   :  { %v2417_v43 = vadd.f32 %v622_v20, %v621_v6 }
 0x2cd   :  { %640 = vmatmul.f32.vlgmr.msrb.gmra.mxu3 %v2417_v43  ;;  %664 = vmatmul.f32.vlgmr.msra.gmra.mxu0 %v2417_v43 }
 0x2ce   :  { %684 = vmatmul.f32.vlgmr.msra.gmra.mxu1 %v2417_v43  ;;  %704 = vmatmul.f32.vlgmr.msra.gmra.mxu2 %v2417_v43 }
 0x2cf   :  { %898 = vmatpush.msrb.mxu3 %v1811_v50  ;;  %922 = vmatpush.msra.mxu0 %v2108_v29  ;;  %v2913_v50 = vld [vmem:[#allocation4_spill] sm:$0xff] }
 0x2d0   :  { %942 = vmatpush.msra.mxu1 %v2114_v36  ;;  %962 = vmatpush.msra.mxu2 %v2120_v32 }
 0x2d1   :  { %899 = vmatpush.msrb.mxu3 %v1817_v51  ;;  %923 = vmatpush.msra.mxu0 %v2127_v35  ;;  %v2914_v51 = vld [vmem:[#allocation24_spill] sm:$0xff] }
 0x2d2   :  { %943 = vmatpush.msra.mxu1 %v2133_v48  ;;  %963 = vmatpush.msra.mxu2 %v2139_v63 }
 0x2d3   :  { %900 = vmatpush.msrb.mxu3 %v1823_v52  ;;  %924 = vmatpush.msra.mxu0 %v2146_v37  ;;  %v2915_v52 = vld [vmem:[#allocation13_spill] sm:$0xff] }
 0x2d4   :  { %944 = vmatpush.msra.mxu1 %v2152_v24  ;;  %964 = vmatpush.msra.mxu2 %v2158_v39 }
 0x2d5   :  { %901 = vmatpush.msrb.mxu3 %v1829_v53  ;;  %925 = vmatpush.msra.mxu0 %v2165_v41  ;;  %v2916_v53 = vld [vmem:[#allocation5_spill] sm:$0xff] }
 0x2d6   :  { %945 = vmatpush.msra.mxu1 %v2171_v44  ;;  %965 = vmatpush.msra.mxu2 %v2177_v56 }
 0x2d7   :  { %902 = vmatpush.msrb.mxu3 %v1835_v54  ;;  %926 = vmatpush.msra.mxu0 %v2184_v45  ;;  %v2917_v54 = vld [vmem:[#allocation6_spill] sm:$0xff] }
 0x2d8   :  { %946 = vmatpush.msra.mxu1 %v2190_v25  ;;  %966 = vmatpush.msra.mxu2 %v2196_v38 }
 0x2d9   :  { %903 = vmatpush.msrb.mxu3 %v1841_v55  ;;  %927 = vmatpush.msra.mxu0 %v2203_v33  ;;  %v2918_v55 = vld [vmem:[#allocation25_spill] sm:$0xff] }
 0x2da   :  { %947 = vmatpush.msra.mxu1 %v2209_v62  ;;  %967 = vmatpush.msra.mxu2 %v2215_v30 }
 0x2db   :  { %904 = vmatpush.msrb.mxu3 %v1852_v57  ;;  %928 = vmatpush.msra.mxu0 %v2222_v42  ;;  %v2919_v57 = vld [vmem:[#allocation16_spill] sm:$0xff] }
 0x2dc   :  { %948 = vmatpush.msra.mxu1 %v2228_v61  ;;  %968 = vmatpush.msra.mxu2 %v2234_v3 }
 0x2dd   :  { %905 = vmatpush.msrb.mxu3 %v1859_v59  ;;  %929 = vmatpush.msra.mxu0 %v2241_v31  ;;  %v2920_v59 = vld [vmem:[#allocation7_spill] sm:$0xff] }
 0x2de   :  { %949 = vmatpush.msra.mxu1 %v2247_v27  ;;  %969 = vmatpush.msra.mxu2 %v2253_v46 }
 0x2df   :  { %906 = vmatpush.msrb.mxu3 %v1865_v60  ;;  %930 = vmatpush.msra.mxu0 %v2260_v34  ;;  %v2922_v60 = vld [vmem:[#allocation26_spill] sm:$0xff] }
 0x2e0   :  { %950 = vmatpush.msra.mxu1 %v2266_v28  ;;  %970 = vmatpush.msra.mxu2 %v2272_v58 }
 0x2e1   :  { %907 = vmatpush.msrb.mxu3 %v1872_v49  ;;  %931 = vmatpush.msra.mxu0 %v2279_v40  ;;  %v2921_v49 = vld [vmem:[#allocation8_spill] sm:$0xff] }
 0x2e2   :  { %951 = vmatpush.msra.mxu1 %v2285_v0  ;;  %971 = vmatpush.msra.mxu2 %v2913_v50 }
 0x2e3   :  { %908 = vmatpush.msrb.mxu3 %v2914_v51  ;;  %932 = vmatpush.msra.mxu0 %v2915_v52  ;;  %v2938_v51 = vld [vmem:[#allocation3_spill] sm:$0xff] }
 0x2e4   :  { %952 = vmatpush.msra.mxu1 %v2916_v53  ;;  %972 = vmatpush.msra.mxu2 %v2917_v54 }
 0x2e5   :  { %909 = vmatpush.msrb.mxu3 %v2918_v55  ;;  %933 = vmatpush.msra.mxu0 %v2919_v57 }
 0x2e6   :  { %953 = vmatpush.msra.mxu1 %v2920_v59  ;;  %973 = vmatpush.msra.mxu2 %v2921_v49 }
 0x2e7   :  { %910 = vmatpush.msrb.mxu3 %v2922_v60  ;;  %934 = vmatpush.msra.mxu0 %v2923_v1 }
 0x2e8   :  { %954 = vmatpush.msra.mxu1 %v2924_v47  ;;  %974 = vmatpush.msra.mxu2 %v2925_v26 }
 0x2e9   :  { %911 = vmatpush.msrb.mxu3 %v2926_v2  ;;  %935 = vmatpush.msra.mxu0 %v2927_v4 }
 0x2ea   :  { %955 = vmatpush.msra.mxu1 %v2928_v5  ;;  %975 = vmatpush.msra.mxu2 %v2929_v7 }
 0x2eb   :  { %912 = vmatpush.msrb.mxu3 %v2930_v8  ;;  %936 = vmatpush.msra.mxu0 %v2931_v9 }
 0x2ec   :  { %956 = vmatpush.msra.mxu1 %v2932_v11  ;;  %976 = vmatpush.msra.mxu2 %v2933_v19  ;;  %v2497_v19 = vld [vmem:[%s2712_s2] ss:$0 sm:$0xff] }
 0x2ed   :  { %913 = vmatpush.msrb.mxu3 %v2934_v21  ;;  %937 = vmatpush.msra.mxu0 %v2935_v13 }
 0x2ee   :  { %957 = vmatpush.msra.mxu1 %v2936_v23  ;;  %977 = vmatpush.msra.mxu2 %v2937_v12 }
 0x34a   :  { %v665_v16 = vpop.f32.mrf.mxu0 }
 0x34b   :  { %v708_v14 = vadd.f32 %v1218_v18, %v665_v16  ;;  %v685_v10 = vpop.f32.mrf.mxu1 }
 0x34c   :  { %v731_v15 = vadd.f32 %v729_v17, %v685_v10 }
 0x34d   :  { %v1219_v22 = vmul.f32 -1.442695, %v708_v14 }
 0x34e   :  { %v1220_v6 = vmul.f32 -1.442695, %v731_v15 }
 0x34f   :  { %1277 = vpow2.f32 %v1219_v22 }
 0x350   :  { %1279 = vpow2.f32 %v1220_v6  ;;  %v641_v20 = vpop.f32.mrf.mxu3 }
 0x351   :  { %v642_v55 = vadd.f32 %v2938_v51, %v641_v20  ;;  %v705_v23 = vpop.f32.mrf.mxu2 }
 0x353   :  { %1217 = vst [vmem:[%s2716_s5 + $0x6] sm:$0x3] %v642_v55 }
 0x355   :  { %v1278_v60 = vpop.eup %1277 }
 0x356   :  { %v1280_v2 = vpop.eup %1279  ;;  %v712_v8 = vadd.f32 1.0, %v1278_v60  ;;  %v753_v60 = vrot.slane %v1218_v18, 4 }
 0x357   :  { %v735_v21 = vadd.f32 1.0, %v1280_v2 }
 0x358   :  { %1281 = vrcp.f32 %v712_v8  ;;  %v724_v22 = vand.u32 2147483648, %v712_v8  ;;  %v722_v20 = vand.u32 2147483647, %v712_v8  ;;  %vm718_vm1 = vweird.f32 %v712_v8 }
 0x359   :  { %1283 = vrcp.f32 %v735_v21  ;;  %v747_v11 = vand.u32 2147483648, %v735_v21  ;;  %vm741_vm5 = vweird.f32 %v735_v21 }
 0x35a   :  { %v725_v55 = vor.u32 1.1754944e-38, %v724_v22  ;;  %vm723_vm3 = vcmp.eq.f32.partialorder %v722_v20, 8.507059e+37 }
 0x35b   :  { %v748_v18 = vor.u32 1.1754944e-38, %v747_v11  ;;  %v2510_v11 = vld [vmem:[%s2713_s3 + $0x78] sm:$0xff] }
 0x35e   :  { %v1282_v16 = vpop.eup %1281 }
 0x35f   :  { %v1284_v12 = vpop.eup %1283  ;;  %v714_v17 = vmul.f32 %v1282_v16, %v712_v8  ;;  %vm719_vm0 = vweird.f32 %v1282_v16 }
 0x360   :  { %v737_v14 = vmul.f32 %v1284_v12, %v735_v21  ;;  %vm720_vm2 = vmor %vm718_vm1, %vm719_vm0  ;;  %vm742_vm4 = vweird.f32 %v1284_v12 }
 0x361   :  { %v715_v10 = vsub.f32 1.0, %v714_v17  ;;  %v751_v17 = vadd.f32 %v2497_v19, %v705_v23  ;;  %vm743_vm6 = vmor %vm741_vm5, %vm742_vm4 }
 0x362   :  { %v738_v15 = vsub.f32 1.0, %v737_v14 }
 0x363   :  { %v716_v6 = vmul.f32 %v1282_v16, %v715_v10 }
 0x364   :  { %v739_v51 = vmul.f32 %v1284_v12, %v738_v15 }
 0x365   :  { %v717_v13 = vadd.f32 %v1282_v16, %v716_v6  ;;  %v745_v6 = vand.u32 2147483647, %v735_v21 }
 0x366   :  { %v740_v14 = vadd.f32 %v1284_v12, %v739_v51 }
 0x367   :  { %v721_v2 = vsel %vm720_vm2, %v1282_v16, %v717_v13  ;;  %vm746_vm7 = vcmp.eq.f32.partialorder %v745_v6, 8.507059e+37 }
 0x368   :  { %v726_v10 = vsel %vm723_vm3, %v725_v55, %v721_v2  ;;  %v744_v22 = vsel %vm743_vm6, %v1284_v12, %v740_v14 }
 0x369   :  { %v752_v15 = vmul.f32 %v751_v17, %v726_v10  ;;  %v749_v13 = vsel %vm746_vm7, %v748_v18, %v744_v22 }
 0x36a   :  { %v757_v16 = vsub.f32 1.0, %v749_v13  ;;  %v759_v7 = vmul.f32 %v749_v13, %v2417_v43  ;;  %v2519_v43 = vld [vmem:[%s2713_s3 + $0x70] sm:$0xff] }
 0x36b   :  { %v755_v8 = vadd.f32 %v753_v60, %v752_v15 }
 0x36d   :  { %1285 = vtanh.f32 %v755_v8 }
 0x373   :  { %v1286_v20 = vpop.eup %1285 }
 0x374   :  { %v758_v9 = vmul.f32 %v1286_v20, %v757_v16 }
 0x376   :  { %v2501_v23 = vadd.f32 %v759_v7, %v758_v9 }
 0x378   :  { %777 = vmatmul.f32.vlgmr.msra.gmra.mxu3 %v2501_v23  ;;  %801 = vmatmul.f32.vlgmr.msrb.gmra.mxu0 %v2501_v23 }
 0x379   :  { %821 = vmatmul.f32.vlgmr.msrb.gmra.mxu1 %v2501_v23  ;;  %841 = vmatmul.f32.vlgmr.msrb.gmra.mxu2 %v2501_v23 }
 0x37a   :  { %1035 = vmatpush.msra.mxu3 %v2510_v11  ;;  %1059 = vmatpush.msrb.mxu0 %v2108_v29  ;;  %v2528_v29 = vld [vmem:[%s2713_s3 + $0x68] sm:$0xff] }
 0x37b   :  { %1079 = vmatpush.msrb.mxu1 %v2114_v36  ;;  %1099 = vmatpush.msrb.mxu2 %v2120_v32  ;;  %v2537_v36 = vld [vmem:[%s2713_s3 + $0x60] sm:$0xff]  ;;  %v2546_v32 = vld [vmem:[%s2713_s3 + $0x58] sm:$0xff] }
 0x37c   :  { %1036 = vmatpush.msra.mxu3 %v2519_v43  ;;  %1060 = vmatpush.msrb.mxu0 %v2127_v35  ;;  %v2555_v35 = vld [vmem:[%s2713_s3 + $0x50] sm:$0xff] }
 0x37d   :  { %1080 = vmatpush.msrb.mxu1 %v2133_v48  ;;  %1100 = vmatpush.msrb.mxu2 %v2139_v63  ;;  %v2564_v48 = vld [vmem:[%s2713_s3 + $0x48] sm:$0xff]  ;;  %v2573_v63 = vld [vmem:[%s2713_s3 + $0x40] sm:$0xff] }
 0x37e   :  { %1037 = vmatpush.msra.mxu3 %v2528_v29  ;;  %1061 = vmatpush.msrb.mxu0 %v2146_v37  ;;  %v2582_v37 = vld [vmem:[%s2713_s3 + $0x38] sm:$0xff] }
 0x37f   :  { %1081 = vmatpush.msrb.mxu1 %v2152_v24  ;;  %1101 = vmatpush.msrb.mxu2 %v2158_v39  ;;  %v2591_v24 = vld [vmem:[%s2713_s3 + $0x30] sm:$0xff]  ;;  %v2600_v39 = vld [vmem:[%s2713_s3 + $0x28] sm:$0xff] }
 0x380   :  { %1038 = vmatpush.msra.mxu3 %v2537_v36  ;;  %1062 = vmatpush.msrb.mxu0 %v2165_v41  ;;  %v2609_v41 = vld [vmem:[%s2713_s3 + $0x20] sm:$0xff] }
 0x381   :  { %1082 = vmatpush.msrb.mxu1 %v2171_v44  ;;  %1102 = vmatpush.msrb.mxu2 %v2177_v56  ;;  %v2618_v44 = vld [vmem:[%s2713_s3 + $0x18] sm:$0xff]  ;;  %v2627_v56 = vld [vmem:[%s2713_s3 + $0x10] sm:$0xff] }
 0x382   :  { %1039 = vmatpush.msra.mxu3 %v2546_v32  ;;  %1063 = vmatpush.msrb.mxu0 %v2184_v45  ;;  %v2939_v45 = vld [vmem:[#allocation12_spill] sm:$0xff] }
 0x383   :  { %1083 = vmatpush.msrb.mxu1 %v2190_v25  ;;  %1103 = vmatpush.msrb.mxu2 %v2196_v38  ;;  %v2636_v25 = vld [vmem:[%s2713_s3 + $0x8] sm:$0xff]  ;;  %v2940_v38 = vld [vmem:[#allocation21_spill] sm:$0xff] }
 0x384   :  { %1040 = vmatpush.msra.mxu3 %v2555_v35  ;;  %1064 = vmatpush.msrb.mxu0 %v2203_v33  ;;  %v2941_v33 = vld [vmem:[#allocation14_spill] sm:$0xff] }
 0x385   :  { %1084 = vmatpush.msrb.mxu1 %v2209_v62  ;;  %1104 = vmatpush.msrb.mxu2 %v2215_v30  ;;  %v2942_v62 = vld [vmem:[#allocation15_spill] sm:$0xff] }
 0x386   :  { %1041 = vmatpush.msra.mxu3 %v2564_v48  ;;  %1065 = vmatpush.msrb.mxu0 %v2222_v42  ;;  %v2645_v30 = vld [vmem:[%s2713_s3] sm:$0xff] }
 0x387   :  { %1085 = vmatpush.msrb.mxu1 %v2228_v61  ;;  %1105 = vmatpush.msrb.mxu2 %v2234_v3  ;;  %v2943_v42 = vld [vmem:[#allocation22_spill] sm:$0xff]  ;;  %v2944_v61 = vld [vmem:[#allocation17_spill] sm:$0xff] }
 0x388   :  { %1042 = vmatpush.msra.mxu3 %v2573_v63  ;;  %1066 = vmatpush.msrb.mxu0 %v2241_v31  ;;  %v2945_v3 = vld [vmem:[#allocation18_spill] sm:$0xff] }
 0x389   :  { %1086 = vmatpush.msrb.mxu1 %v2247_v27  ;;  %1106 = vmatpush.msrb.mxu2 %v2253_v46  ;;  %v1222_v31 = vld [vmem:[%s2714_s0 + $0x1e] sm:$0x3f] }
 0x38a   :  { %1043 = vmatpush.msra.mxu3 %v2582_v37  ;;  %1067 = vmatpush.msrb.mxu0 %v2260_v34  ;;  %v866_v27 = vrot.slane %v1222_v31, 2  ;;  %v890_v17 = vrot.slane %v1222_v31, 4 }
 0x38b   :  { %1087 = vmatpush.msrb.mxu1 %v2266_v28  ;;  %1107 = vmatpush.msrb.mxu2 %v2272_v58 }
 0x38c   :  { %1044 = vmatpush.msra.mxu3 %v2591_v24  ;;  %1068 = vmatpush.msrb.mxu0 %v2279_v40 }
 0x38d   :  { %1088 = vmatpush.msrb.mxu1 %v2285_v0  ;;  %1108 = vmatpush.msrb.mxu2 %v2913_v50 }
 0x38e   :  { %1045 = vmatpush.msra.mxu3 %v2600_v39  ;;  %1069 = vmatpush.msrb.mxu0 %v2915_v52  ;;  %v2946_v52 = vld [vmem:[#allocation3_spill] sm:$0xff] }
 0x38f   :  { %1089 = vmatpush.msrb.mxu1 %v2916_v53  ;;  %1109 = vmatpush.msrb.mxu2 %v2917_v54 }
 0x390   :  { %1046 = vmatpush.msra.mxu3 %v2609_v41  ;;  %1070 = vmatpush.msrb.mxu0 %v2919_v57 }
 0x391   :  { %1090 = vmatpush.msrb.mxu1 %v2920_v59  ;;  %1110 = vmatpush.msrb.mxu2 %v2921_v49 }
 0x392   :  { %1047 = vmatpush.msra.mxu3 %v2618_v44  ;;  %1071 = vmatpush.msrb.mxu0 %v2923_v1 }
 0x393   :  { %1091 = vmatpush.msrb.mxu1 %v2924_v47  ;;  %1111 = vmatpush.msrb.mxu2 %v2925_v26 }
 0x394   :  { %1048 = vmatpush.msra.mxu3 %v2627_v56  ;;  %1072 = vmatpush.msrb.mxu0 %v2927_v4 }
 0x395   :  { %1092 = vmatpush.msrb.mxu1 %v2928_v5  ;;  %1112 = vmatpush.msrb.mxu2 %v2939_v45 }
 0x396   :  { %1049 = vmatpush.msra.mxu3 %v2636_v25  ;;  %1073 = vmatpush.msrb.mxu0 %v2940_v38 }
 0x397   :  { %1093 = vmatpush.msrb.mxu1 %v2941_v33  ;;  %1113 = vmatpush.msrb.mxu2 %v2942_v62 }
 0x398   :  { %1050 = vmatpush.msra.mxu3 %v2645_v30  ;;  %1074 = vmatpush.msrb.mxu0 %v2943_v42 }
 0x399   :  { %1094 = vmatpush.msrb.mxu1 %v2944_v61  ;;  %1114 = vmatpush.msrb.mxu2 %v2945_v3 }
 0x3f5   :  { %v802_v46 = vpop.f32.mrf.mxu0 }
 0x3f6   :  { %v845_v34 = vadd.f32 %v1222_v31, %v802_v46  ;;  %v822_v28 = vpop.f32.mrf.mxu1 }
 0x3f7   :  { %v868_v58 = vadd.f32 %v866_v27, %v822_v28 }
 0x3f8   :  { %v1223_v40 = vmul.f32 -1.442695, %v845_v34 }
 0x3f9   :  { %v1224_v0 = vmul.f32 -1.442695, %v868_v58 }
 0x3fa   :  { %1287 = vpow2.f32 %v1223_v40 }
 0x3fb   :  { %1289 = vpow2.f32 %v1224_v0  ;;  %v778_v50 = vpop.f32.mrf.mxu3 }
 0x3fc   :  { %v779_v53 = vadd.f32 %v2946_v52, %v778_v50  ;;  %v842_v55 = vpop.f32.mrf.mxu2 }
 0x3fd   :  { %v888_v10 = vadd.f32 %v2497_v19, %v842_v55 }
 0x3fe   :  { %1221 = vst [vmem:[%s2716_s5 + $0x8] sm:$0x3] %v779_v53 }
 0x400   :  { %v1288_v54 = vpop.eup %1287 }
 0x401   :  { %v1290_v57 = vpop.eup %1289  ;;  %v849_v59 = vadd.f32 1.0, %v1288_v54 }
 0x402   :  { %v872_v49 = vadd.f32 1.0, %v1290_v57 }
 0x403   :  { %1291 = vrcp.f32 %v849_v59  ;;  %v861_v9 = vand.u32 2147483648, %v849_v59  ;;  %v859_v51 = vand.u32 2147483647, %v849_v59  ;;  %vm855_vm9 = vweird.f32 %v849_v59 }
 0x404   :  { %1293 = vrcp.f32 %v872_v49  ;;  %v884_v8 = vand.u32 2147483648, %v872_v49  ;;  %vm878_vm13 = vweird.f32 %v872_v49  ;;  %v882_v18 = vand.u32 2147483647, %v872_v49 }
 0x405   :  { %v862_v2 = vor.u32 1.1754944e-38, %v861_v9  ;;  %vm860_vm11 = vcmp.eq.f32.partialorder %v859_v51, 8.507059e+37 }
 0x406   :  { %v885_v20 = vor.u32 1.1754944e-38, %v884_v8  ;;  %vm883_vm15 = vcmp.eq.f32.partialorder %v882_v18, 8.507059e+37 }
 0x409   :  { %v1292_v1 = vpop.eup %1291 }
 0x40a   :  { %v1294_v47 = vpop.eup %1293  ;;  %v851_v26 = vmul.f32 %v1292_v1, %v849_v59  ;;  %vm856_vm8 = vweird.f32 %v1292_v1 }
 0x40b   :  { %v874_v4 = vmul.f32 %v1294_v47, %v872_v49  ;;  %vm857_vm10 = vmor %vm855_vm9, %vm856_vm8  ;;  %vm879_vm12 = vweird.f32 %v1294_v47 }
 0x40c   :  { %v852_v5 = vsub.f32 1.0, %v851_v26  ;;  %vm880_vm14 = vmor %vm878_vm13, %vm879_vm12 }
 0x40d   :  { %v875_v7 = vsub.f32 1.0, %v874_v4 }
 0x40e   :  { %v853_v12 = vmul.f32 %v1292_v1, %v852_v5 }
 0x40f   :  { %v876_v21 = vmul.f32 %v1294_v47, %v875_v7 }
 0x410   :  { %v854_v60 = vadd.f32 %v1292_v1, %v853_v12 }
 0x411   :  { %v877_v15 = vadd.f32 %v1294_v47, %v876_v21 }
 0x412   :  { %v858_v14 = vsel %vm857_vm10, %v1292_v1, %v854_v60 }
 0x413   :  { %v863_v6 = vsel %vm860_vm11, %v862_v2, %v858_v14  ;;  %v881_v16 = vsel %vm880_vm14, %v1294_v47, %v877_v15  ;;  %v1230_v2 = vld [vmem:[%s2714_s0 + $0x2a] sm:$0x3f] }
 0x414   :  { %v889_v22 = vmul.f32 %v888_v10, %v863_v6  ;;  %v886_v45 = vsel %vm883_vm15, %v885_v20, %v881_v16 }
 0x415   :  { %v894_v38 = vsub.f32 1.0, %v886_v45  ;;  %v896_v42 = vmul.f32 %v886_v45, %v2501_v23  ;;  %v1226_v23 = vld [vmem:[%s2714_s0 + $0x24] sm:$0x3f] }
 0x416   :  { %v892_v13 = vadd.f32 %v890_v17, %v889_v22  ;;  %v1027_v53 = vrot.slane %v1226_v23, 4  ;;  %v1140_v17 = vrot.slane %v1230_v2, 2 }
 0x418   :  { %1295 = vtanh.f32 %v892_v13 }
 0x41e   :  { %v1296_v33 = vpop.eup %1295 }
 0x41f   :  { %v895_v62 = vmul.f32 %v1296_v33, %v894_v38 }
 0x421   :  { %v2660_v61 = vadd.f32 %v896_v42, %v895_v62 }
 0x423   :  { %914 = vmatmul.f32.vlgmr.msrb.gmra.mxu3 %v2660_v61  ;;  %938 = vmatmul.f32.vlgmr.msra.gmra.mxu0 %v2660_v61 }
 0x424   :  { %958 = vmatmul.f32.vlgmr.msra.gmra.mxu1 %v2660_v61  ;;  %978 = vmatmul.f32.vlgmr.msra.gmra.mxu2 %v2660_v61 }
 0x425   :  { %1172 = vmatpush.msrb.mxu3 %v2510_v11  ;;  %v1003_v11 = vrot.slane %v1226_v23, 2 }
 0x427   :  { %1173 = vmatpush.msrb.mxu3 %v2519_v43 }
 0x429   :  { %1174 = vmatpush.msrb.mxu3 %v2528_v29 }
 0x42b   :  { %1175 = vmatpush.msrb.mxu3 %v2537_v36 }
 0x42d   :  { %1176 = vmatpush.msrb.mxu3 %v2546_v32 }
 0x42f   :  { %1177 = vmatpush.msrb.mxu3 %v2555_v35 }
 0x431   :  { %1178 = vmatpush.msrb.mxu3 %v2564_v48 }
 0x433   :  { %1179 = vmatpush.msrb.mxu3 %v2573_v63 }
 0x435   :  { %1180 = vmatpush.msrb.mxu3 %v2582_v37  ;;  %v2688_v37 = vld [vmem:[%s2715_s4] ss:$0 sm:$0xff] }
 0x437   :  { %1181 = vmatpush.msrb.mxu3 %v2591_v24 }
 0x439   :  { %1182 = vmatpush.msrb.mxu3 %v2600_v39 }
 0x43b   :  { %1183 = vmatpush.msrb.mxu3 %v2609_v41 }
 0x43d   :  { %1184 = vmatpush.msrb.mxu3 %v2618_v44 }
 0x43f   :  { %1185 = vmatpush.msrb.mxu3 %v2627_v56 }
 0x441   :  { %1186 = vmatpush.msrb.mxu3 %v2636_v25 }
 0x443   :  { %1187 = vmatpush.msrb.mxu3 %v2645_v30 }
 0x4a0   :  { %v939_v43 = vpop.f32.mrf.mxu0 }
 0x4a1   :  { %v982_v29 = vadd.f32 %v1226_v23, %v939_v43  ;;  %v959_v36 = vpop.f32.mrf.mxu1 }
 0x4a2   :  { %v1005_v32 = vadd.f32 %v1003_v11, %v959_v36 }
 0x4a3   :  { %v1227_v35 = vmul.f32 -1.442695, %v982_v29 }
 0x4a4   :  { %v1228_v48 = vmul.f32 -1.442695, %v1005_v32 }
 0x4a5   :  { %1297 = vpow2.f32 %v1227_v35 }
 0x4a6   :  { %1299 = vpow2.f32 %v1228_v48  ;;  %v915_v63 = vpop.f32.mrf.mxu3 }
 0x4a7   :  { %v916_v24 = vadd.f32 %v2688_v37, %v915_v63  ;;  %v979_v0 = vpop.f32.mrf.mxu2 }
 0x4a8   :  { %v1025_v57 = vadd.f32 %v2497_v19, %v979_v0 }
 0x4a9   :  { %1225 = vst [vmem:[%s2716_s5 + $0xa] sm:$0x3] %v916_v24  ;;  %v1164_v24 = vrot.slane %v1230_v2, 4 }
 0x4ab   :  { %v1298_v39 = vpop.eup %1297 }
 0x4ac   :  { %v1300_v41 = vpop.eup %1299  ;;  %v986_v44 = vadd.f32 1.0, %v1298_v39 }
 0x4ad   :  { %v1009_v56 = vadd.f32 1.0, %v1300_v41 }
 0x4ae   :  { %1301 = vrcp.f32 %v986_v44  ;;  %v998_v34 = vand.u32 2147483648, %v986_v44  ;;  %v996_v58 = vand.u32 2147483647, %v986_v44  ;;  %vm992_vm1 = vweird.f32 %v986_v44 }
 0x4af   :  { %1303 = vrcp.f32 %v1009_v56  ;;  %v1021_v1 = vand.u32 2147483648, %v1009_v56  ;;  %vm1015_vm5 = vweird.f32 %v1009_v56  ;;  %v1019_v26 = vand.u32 2147483647, %v1009_v56 }
 0x4b0   :  { %v999_v52 = vor.u32 1.1754944e-38, %v998_v34  ;;  %vm997_vm3 = vcmp.eq.f32.partialorder %v996_v58, 8.507059e+37 }
 0x4b1   :  { %v1022_v7 = vor.u32 1.1754944e-38, %v1021_v1  ;;  %vm1020_vm7 = vcmp.eq.f32.partialorder %v1019_v26, 8.507059e+37 }
 0x4b4   :  { %v1302_v25 = vpop.eup %1301 }
 0x4b5   :  { %v1304_v30 = vpop.eup %1303  ;;  %v988_v3 = vmul.f32 %v1302_v25, %v986_v44  ;;  %vm993_vm0 = vweird.f32 %v1302_v25 }
 0x4b6   :  { %v1011_v31 = vmul.f32 %v1304_v30, %v1009_v56  ;;  %vm994_vm2 = vmor %vm992_vm1, %vm993_vm0  ;;  %vm1016_vm4 = vweird.f32 %v1304_v30 }
 0x4b7   :  { %v989_v27 = vsub.f32 1.0, %v988_v3  ;;  %vm1017_vm6 = vmor %vm1015_vm5, %vm1016_vm4 }
 0x4b8   :  { %v1012_v46 = vsub.f32 1.0, %v1011_v31 }
 0x4b9   :  { %v990_v28 = vmul.f32 %v1302_v25, %v989_v27 }
 0x4ba   :  { %v1013_v40 = vmul.f32 %v1304_v30, %v1012_v46 }
 0x4bb   :  { %v991_v50 = vadd.f32 %v1302_v25, %v990_v28 }
 0x4bc   :  { %v1014_v59 = vadd.f32 %v1304_v30, %v1013_v40 }
 0x4bd   :  { %v995_v54 = vsel %vm994_vm2, %v1302_v25, %v991_v50 }
 0x4be   :  { %v1000_v49 = vsel %vm997_vm3, %v999_v52, %v995_v54  ;;  %v1018_v5 = vsel %vm1017_vm6, %v1304_v30, %v1014_v59 }
 0x4bf   :  { %v1026_v47 = vmul.f32 %v1025_v57, %v1000_v49  ;;  %v1023_v9 = vsel %vm1020_vm7, %v1022_v7, %v1018_v5 }
 0x4c0   :  { %v1031_v12 = vsub.f32 1.0, %v1023_v9  ;;  %v1033_v55 = vmul.f32 %v1023_v9, %v2660_v61 }
 0x4c1   :  { %v1029_v4 = vadd.f32 %v1027_v53, %v1026_v47 }
 0x4c3   :  { %1305 = vtanh.f32 %v1029_v4 }
 0x4c9   :  { %v1306_v51 = vpop.eup %1305 }
 0x4ca   :  { %v1032_v21 = vmul.f32 %v1306_v51, %v1031_v12 }
 0x4cc   :  { %v1034_v60 = vadd.f32 %v1033_v55, %v1032_v21 }
 0x4ce   :  { %1051 = vmatmul.f32.vlgmr.msra.gmra.mxu3 %v1034_v60  ;;  %1075 = vmatmul.f32.vlgmr.msrb.gmra.mxu0 %v1034_v60 }
 0x4cf   :  { %1095 = vmatmul.f32.vlgmr.msrb.gmra.mxu1 %v1034_v60  ;;  %1115 = vmatmul.f32.vlgmr.msrb.gmra.mxu2 %v1034_v60 }
 0x54b   :  { %v1076_v14 = vpop.f32.mrf.mxu0 }
 0x54c   :  { %v1119_v10 = vadd.f32 %v1230_v2, %v1076_v14  ;;  %v1096_v15 = vpop.f32.mrf.mxu1 }
 0x54d   :  { %v1142_v6 = vadd.f32 %v1140_v17, %v1096_v15 }
 0x54e   :  { %v1231_v8 = vmul.f32 -1.442695, %v1119_v10 }
 0x54f   :  { %v1232_v22 = vmul.f32 -1.442695, %v1142_v6 }
 0x550   :  { %1307 = vpow2.f32 %v1231_v8 }
 0x551   :  { %1309 = vpow2.f32 %v1232_v22  ;;  %v1052_v18 = vpop.f32.mrf.mxu3 }
 0x552   :  { %v1053_v13 = vadd.f32 %v2688_v37, %v1052_v18  ;;  %v1116_v35 = vpop.f32.mrf.mxu2 }
 0x553   :  { %v1162_v41 = vadd.f32 %v2497_v19, %v1116_v35 }
 0x554   :  { %1229 = vst [vmem:[%s2716_s5 + $0xc] sm:$0x3] %v1053_v13 }
 0x556   :  { %v1308_v16 = vpop.eup %1307 }
 0x557   :  { %v1310_v20 = vpop.eup %1309  ;;  %v1123_v45 = vadd.f32 1.0, %v1308_v16 }
 0x558   :  { %v1146_v38 = vadd.f32 1.0, %v1310_v20 }
 0x559   :  { %1311 = vrcp.f32 %v1123_v45  ;;  %v1135_v43 = vand.u32 2147483648, %v1123_v45  ;;  %v1133_v36 = vand.u32 2147483647, %v1123_v45  ;;  %vm1129_vm9 = vweird.f32 %v1123_v45 }
 0x55a   :  { %1313 = vrcp.f32 %v1146_v38  ;;  %v1158_v30 = vand.u32 2147483648, %v1146_v38  ;;  %vm1152_vm13 = vweird.f32 %v1146_v38  ;;  %v1156_v3 = vand.u32 2147483647, %v1146_v38 }
 0x55b   :  { %v1136_v63 = vor.u32 1.1754944e-38, %v1135_v43  ;;  %vm1134_vm11 = vcmp.eq.f32.partialorder %v1133_v36, 8.507059e+37 }
 0x55c   :  { %v1159_v46 = vor.u32 1.1754944e-38, %v1158_v30  ;;  %vm1157_vm15 = vcmp.eq.f32.partialorder %v1156_v3, 8.507059e+37 }
 0x55f   :  { %v1312_v33 = vpop.eup %1311 }
 0x560   :  { %v1314_v62 = vpop.eup %1313  ;;  %v1125_v42 = vmul.f32 %v1312_v33, %v1123_v45  ;;  %vm1130_vm8 = vweird.f32 %v1312_v33 }
 0x561   :  { %v1148_v61 = vmul.f32 %v1314_v62, %v1146_v38  ;;  %vm1131_vm10 = vmor %vm1129_vm9, %vm1130_vm8  ;;  %vm1153_vm12 = vweird.f32 %v1314_v62 }
 0x562   :  { %v1126_v23 = vsub.f32 1.0, %v1125_v42  ;;  %vm1154_vm14 = vmor %vm1152_vm13, %vm1153_vm12 }
 0x563   :  { %v1149_v11 = vsub.f32 1.0, %v1148_v61 }
 0x564   :  { %v1127_v29 = vmul.f32 %v1312_v33, %v1126_v23 }
 0x565   :  { %v1150_v32 = vmul.f32 %v1314_v62, %v1149_v11 }
 0x566   :  { %v1128_v48 = vadd.f32 %v1312_v33, %v1127_v29 }
 0x567   :  { %v1151_v56 = vadd.f32 %v1314_v62, %v1150_v32 }
 0x568   :  { %v1132_v39 = vsel %vm1131_vm10, %v1312_v33, %v1128_v48 }
 0x569   :  { %v1137_v44 = vsel %vm1134_vm11, %v1136_v63, %v1132_v39  ;;  %v1155_v27 = vsel %vm1154_vm14, %v1314_v62, %v1151_v56 }
 0x56a   :  { %v1163_v25 = vmul.f32 %v1162_v41, %v1137_v44  ;;  %v1160_v34 = vsel %vm1157_vm15, %v1159_v46, %v1155_v27 }
 0x56b   :  { %v1168_v28 = vsub.f32 1.0, %v1160_v34  ;;  %v1170_v0 = vmul.f32 %v1160_v34, %v1034_v60 }
 0x56c   :  { %v1166_v31 = vadd.f32 %v1164_v24, %v1163_v25 }
 0x56e   :  { %1315 = vtanh.f32 %v1166_v31 }
 0x574   :  { %v1316_v58 = vpop.eup %1315 }
 0x575   :  { %v1169_v40 = vmul.f32 %v1316_v58, %v1168_v28 }
 0x577   :  { %v1171_v50 = vadd.f32 %v1170_v0, %v1169_v40 }
 0x579   :  { %1188 = vmatmul.f32.vlgmr.msrb.gmra.mxu3 %v1171_v50  ;;  %1194 = vst [vmem:[#allocation2] sm:$0x3] %v1171_v50 }
 0x57a   :  { %1195 = vst [vmem:[%s2717_s6] sm:$0x3] %v1171_v50 }
 0x5fc   :  { %v1189_v19 = vpop.f32.mrf.mxu3 }
 0x5fd   :  { %v1190_v52 = vadd.f32 %v2688_v37, %v1189_v19 }
 0x5ff   :  { %1233 = vst [vmem:[%s2716_s5 + $0xe] sm:$0x3] %v1190_v52 }

</bundles_post_ra>
